<compile_context>
chip_gen: v5e
topology: v5e:2x2
jax: 0.10.0
libtpu: 0.0.40
codegen_flags: <defaults>
</compile_context>

<pallas_src>
import functools

import numpy as np
import jax
import jax.numpy as jnp
from jax.experimental import pallas as pl
from jax.experimental.pallas import tpu as pltpu

MID_CHANNELS = 64
NUM_BLOCKS = 7
DEFORM_GROUPS = 16
MAX_RESIDUE_MAGNITUDE = 10.0
UPSCALE = 4  # BasicVSRPlusPlus with is_low_res_input=True always upsamples 4x.

_VMEM_LIMIT = 48 * 1024 * 1024        # <= 64 MiB physical on v7x, fine on v5e/v6e
_CONV_VMEM_BUDGET = 20 * 1024 * 1024  # per-band working-set target


def _round_up(x, m):
    return (x + m - 1) // m * m


def _apply_act(r, act):
    if act == "relu":
        return jnp.maximum(r, 0.0)
    if act == "lrelu":
        return jnp.where(r >= 0, r, 0.1 * r)
    return r


# -----------------------------------------------------------------------------
# Direct convolution kernel: haloed row band in VMEM, taps packed into an
# in-VMEM im2col scratch, ONE full-depth MXU dot with fused bias + activation.
# -----------------------------------------------------------------------------
def _conv_kernel(x_ref, w_ref, b_ref, o_ref, col_ref, *, starts, cin_p, act):
    # x_ref  : (1, (bh+kh)*wp, cin_p)  bf16 flattened, halo-padded band
    # w_ref  : (kk*cin_p, cout_p)      bf16 fused-K weights
    # b_ref  : (1, cout_p)             f32
    # o_ref  : (1, bh*wp, cout_p)
    # col_ref: (bh*wp, kk*cin_p)       bf16 VMEM scratch (in-VMEM im2col)
    m = o_ref.shape[1]
    for t, s in enumerate(starts):
        col_ref[:, t * cin_p:(t + 1) * cin_p] = x_ref[0, s:s + m, :]
    acc = jnp.dot(col_ref[...], w_ref[...], preferred_element_type=jnp.float32)
    acc = _apply_act(acc + b_ref[...], act)
    o_ref[...] = acc[None].astype(o_ref.dtype)


@functools.lru_cache(maxsize=None)
def _build_conv_call(nblk, hp_in, wp, cin_p, cout_p, starts, bh, act,
                     out_dtype_name):
    out_dtype = jnp.dtype(out_dtype_name)
    kk = len(starts)
    kdim = kk * cin_p
    m = bh * wp
    kernel = functools.partial(_conv_kernel, starts=starts, cin_p=cin_p, act=act)
    flops = 2 * nblk * m * kdim * cout_p
    bytes_accessed = (nblk * hp_in * wp * cin_p * 2
                      + kdim * cout_p * 2
                      + nblk * m * cout_p * out_dtype.itemsize)
    call = pl.pallas_call(
        kernel,
        out_shape=jax.ShapeDtypeStruct((nblk, m, cout_p), out_dtype),
        grid_spec=pltpu.PrefetchScalarGridSpec(
            num_scalar_prefetch=0,
            grid=(nblk,),
            in_specs=[
                pl.BlockSpec((1, hp_in * wp, cin_p), lambda i: (i, 0, 0)),
                pl.BlockSpec((kdim, cout_p), lambda i: (0, 0)),
                pl.BlockSpec((1, cout_p), lambda i: (0, 0)),
            ],
            out_specs=pl.BlockSpec((1, m, cout_p), lambda i: (i, 0, 0)),
            scratch_shapes=[pltpu.VMEM((m, kdim), jnp.bfloat16)],
        ),
        compiler_params=pltpu.CompilerParams(
            dimension_semantics=("parallel",),
            vmem_limit_bytes=_VMEM_LIMIT),
        cost_estimate=pl.CostEstimate(flops=flops, transcendentals=0,
                                      bytes_accessed=bytes_accessed),
    )
    return jax.jit(call)


def conv2d(x, w, b, act=None, out_dtype=jnp.bfloat16):
    """Conv2d, stride 1, 'same' zero padding.  x:(N,Cin,H,W) -> (N,Cout,H,W)."""
    n, cin, h, wd = x.shape
    cout, _, kh, kw = w.shape
    ph, pw = kh // 2, kw // 2
    cin_p = _round_up(cin, 8)
    cout_p = _round_up(cout, 128)     # lane-dense output, sliced off below
    wp = wd + kw - 1
    kk = kh * kw
    out_bytes = jnp.dtype(out_dtype).itemsize

    def vmem_bytes(band_h):
        m = band_h * wp
        return (2 * 2 * (band_h + kh) * wp * cin_p    # dbl-buffered bf16 input
                + 2 * m * kk * cin_p                  # bf16 col scratch
                + 2 * kk * cin_p * cout_p             # bf16 weights
                + 2 * out_bytes * m * cout_p          # dbl-buffered output
                + 4 * m * cout_p)                     # f32 epilogue values

    bh = h
    while bh > 1 and vmem_bytes(bh) > _CONV_VMEM_BUDGET:
        bh = (bh + 1) // 2
    nb = -(-h // bh)
    h_eff = nb * bh

    xh = x.astype(jnp.bfloat16).transpose(0, 2, 3, 1)        # NHWC
    xh = jnp.pad(xh, ((0, 0), (ph, ph + 1 + (h_eff - h)), (pw, pw),
                      (0, cin_p - cin)))
    if nb == 1:
        xb = xh.reshape(n, (bh + kh) * wp, cin_p)
    else:
        bands = [xh[:, bi * bh: bi * bh + bh + kh] for bi in range(nb)]
        xb = jnp.stack(bands, axis=1).reshape(n * nb, (bh + kh) * wp, cin_p)

    wt = jnp.pad(w.astype(jnp.bfloat16),
                 ((0, cout_p - cout), (0, cin_p - cin), (0, 0), (0, 0)))
    wt = wt.transpose(2, 3, 1, 0).reshape(kk * cin_p, cout_p)
    bias = jnp.pad(b.astype(jnp.float32), (0, cout_p - cout)).reshape(1, cout_p)

    starts = tuple(ki * wp + kj for ki in range(kh) for kj in range(kw))
    call = _build_conv_call(n * nb, bh + kh, wp, cin_p, cout_p, starts, bh,
                            act, jnp.dtype(out_dtype).name)
    out = call(xb, wt, bias)                                 # (n*nb, bh*wp, cout_p)
    out = out.reshape(n, nb * bh, wp, cout_p)[:, :h, :wd, :cout]
    return out.transpose(0, 3, 1, 2)                         # back to NCHW


# -----------------------------------------------------------------------------
# Generic Pallas matmul + bias + activation (bf16 operands, f32 accumulation).
# Used by the deformable-conv accumulation.
# -----------------------------------------------------------------------------
def _mm_kernel(a_ref, b_ref, bias_ref, o_ref, *, act):
    r = jnp.dot(a_ref[...], b_ref[...], preferred_element_type=jnp.float32)
    r = _apply_act(r + bias_ref[...], act)
    o_ref[...] = r.astype(o_ref.dtype)


@functools.lru_cache(maxsize=None)
def _build_mm_call(mp, k, np_, tm, act, out_dtype_name):
    out_dtype = jnp.dtype(out_dtype_name)
    call = pl.pallas_call(
        functools.partial(_mm_kernel, act=act),
        out_shape=jax.ShapeDtypeStruct((mp, np_), out_dtype),
        grid_spec=pltpu.PrefetchScalarGridSpec(
            num_scalar_prefetch=0,
            grid=(mp // tm,),
            in_specs=[pl.BlockSpec((tm, k), lambda i: (i, 0)),
                      pl.BlockSpec((k, np_), lambda i: (0, 0)),
                      pl.BlockSpec((1, np_), lambda i: (0, 0))],
            out_specs=pl.BlockSpec((tm, np_), lambda i: (i, 0)),
        ),
        compiler_params=pltpu.CompilerParams(
            dimension_semantics=("parallel",),
            vmem_limit_bytes=_VMEM_LIMIT),
        cost_estimate=pl.CostEstimate(
            flops=2 * mp * k * np_, transcendentals=0,
            bytes_accessed=2 * (mp * k + k * np_) + mp * np_ * out_dtype.itemsize),
    )
    return jax.jit(call)


def matmul_bias_act(a, b, bias, act=None, out_dtype=jnp.float32):
    """a:(M,K) @ b:(K,N) + bias:(N,), fused activation; lane-dense padded N."""
    M, K = a.shape
    N = b.shape[1]
    Kp = _round_up(K, 8)
    Np = _round_up(N, 128)
    tm = M if M <= 1024 else 512
    Mp = _round_up(M, tm)
    a = jnp.pad(a.astype(jnp.bfloat16), ((0, Mp - M), (0, Kp - K)))
    b = jnp.pad(b.astype(jnp.bfloat16), ((0, Kp - K), (0, Np - N)))
    bias = jnp.pad(bias.astype(jnp.float32), (0, Np - N)).reshape(1, Np)
    call = _build_mm_call(Mp, Kp, Np, tm, act, jnp.dtype(out_dtype).name)
    out = call(a, b, bias)
    return out[:M, :N]


# -----------------------------------------------------------------------------
# Bilinear gather helpers (grid_sample / flow_warp / resize) — JAX glue.
# Channels-last row gather: one contiguous C-vector per tap.
# -----------------------------------------------------------------------------
def _bilinear_gather(img, px, py, border):
    """img:(B,C,H,W); px,py:(B,S) pixel coords. border=True -> clamp, else zero."""
    B, C, H, W = img.shape
    flat = img.transpose(0, 2, 3, 1).reshape(B, H * W, C)
    x0 = jnp.floor(px)
    y0 = jnp.floor(py)
    x1, y1 = x0 + 1.0, y0 + 1.0
    wx1 = px - x0
    wx0 = 1.0 - wx1
    wy1 = py - y0
    wy0 = 1.0 - wy1

    def gather(xi, yi):
        xc = jnp.clip(xi, 0, W - 1).astype(jnp.int32)
        yc = jnp.clip(yi, 0, H - 1).astype(jnp.int32)
        idx = (yc * W + xc)[:, :, None]                      # (B,S,1)
        v = jnp.take_along_axis(flat, idx, axis=1)           # (B,S,C)
        if not border:
            valid = ((xi >= 0) & (xi <= W - 1) & (yi >= 0) & (yi <= H - 1))
            v = v * valid[:, :, None].astype(v.dtype)
        return v

    out = (gather(x0, y0) * (wx0 * wy0)[:, :, None]
           + gather(x1, y0) * (wx1 * wy0)[:, :, None]
           + gather(x0, y1) * (wx0 * wy1)[:, :, None]
           + gather(x1, y1) * (wx1 * wy1)[:, :, None])
    return out.transpose(0, 2, 1)                            # (B,C,S)


@functools.partial(jax.jit, static_argnames=("padding_mode",))
def flow_warp(x, flow, padding_mode="zeros"):
    """x:(N,C,H,W), flow:(N,H,W,2) pixel displacements (align_corners=True)."""
    n, c, h, w = x.shape
    gy, gx = jnp.meshgrid(jnp.arange(h, dtype=jnp.float32),
                          jnp.arange(w, dtype=jnp.float32), indexing="ij")
    px = gx[None] + flow[..., 0]
    py = gy[None] + flow[..., 1]
    out = _bilinear_gather(x, px.reshape(n, -1), py.reshape(n, -1),
                           border=(padding_mode == "border"))
    return out.reshape(n, c, h, w)


@functools.partial(jax.jit, static_argnums=(1, 2, 3))
def bilinear_resize(x, oh, ow, align_corners):
    n, c, h, w = x.shape
    if align_corners:
        ys = jnp.arange(oh, dtype=jnp.float32) * ((h - 1) / max(oh - 1, 1))
        xs = jnp.arange(ow, dtype=jnp.float32) * ((w - 1) / max(ow - 1, 1))
    else:
        ys = jnp.maximum((jnp.arange(oh, dtype=jnp.float32) + 0.5) * (h / oh) - 0.5, 0.0)
        xs = jnp.maximum((jnp.arange(ow, dtype=jnp.float32) + 0.5) * (w / ow) - 0.5, 0.0)
    py, px = jnp.meshgrid(ys, xs, indexing="ij")
    px = jnp.broadcast_to(px[None], (n, oh, ow)).reshape(n, -1)
    py = jnp.broadcast_to(py[None], (n, oh, ow)).reshape(n, -1)
    out = _bilinear_gather(x, px, py, border=True)
    return out.reshape(n, c, oh, ow)


@jax.jit
def avg_pool2(x):
    n, c, h, w = x.shape
    return x.reshape(n, c, h // 2, 2, w // 2, 2).mean(axis=(3, 5))


@functools.partial(jax.jit, static_argnums=(1,))
def pixel_shuffle(x, r):
    n, c, h, w = x.shape
    co = c // (r * r)
    return (x.reshape(n, co, r, r, h, w)
             .transpose(0, 1, 4, 2, 5, 3)
             .reshape(n, co, h * r, w * r))


# -----------------------------------------------------------------------------
# Deterministic parameter construction (mirrors the PyTorch module __init__)
# -----------------------------------------------------------------------------
class ParamGen:
    def __init__(self, seed=0):
        self.key = jax.random.PRNGKey(seed)
        self.count = 0

    def conv(self, cout, cin, kh, kw, zero=False):
        self.count += 1
        if zero:
            w = jnp.zeros((cout, cin, kh, kw), jnp.float32)
        else:
            k = jax.random.fold_in(self.key, self.count)
            scale = 0.1 * (2.0 / (cin * kh * kw)) ** 0.5
            w = scale * jax.random.normal(k, (cout, cin, kh, kw), dtype=jnp.float32)
        b = jnp.zeros((cout,), jnp.float32)
        return {"w": w, "b": b}


def res_blocks_params(pg, cin, cout, nb):
    return {"in": pg.conv(cout, cin, 3, 3),
            "blocks": [(pg.conv(cout, cout, 3, 3), pg.conv(cout, cout, 3, 3))
                       for _ in range(nb)]}


def build_params(mid=MID_CHANNELS, num_blocks=NUM_BLOCKS, dg=DEFORM_GROUPS):
    pg = ParamGen(0)
    P = {}
    # SPyNet: 6 basic modules, each 5 ConvModules with 7x7 kernels
    P["spynet"] = []
    for _ in range(6):
        P["spynet"].append([pg.conv(32, 8, 7, 7), pg.conv(64, 32, 7, 7),
                            pg.conv(32, 64, 7, 7), pg.conv(16, 32, 7, 7),
                            pg.conv(2, 16, 7, 7)])
    # feat_extract (is_low_res_input=True): ResidualBlocksWithInputConv(3, mid, 5)
    P["feat_extract"] = res_blocks_params(pg, 3, mid, 5)
    # propagation branches
    P["deform_align"], P["backbone"] = {}, {}
    for i, m in enumerate(["backward_1", "forward_1", "backward_2", "forward_2"]):
        P["deform_align"][m] = {
            "conv_offset": [pg.conv(mid, 3 * mid + 4, 3, 3),
                            pg.conv(mid, mid, 3, 3),
                            pg.conv(mid, mid, 3, 3),
                            pg.conv(27 * dg, mid, 3, 3, zero=True)],  # init_offset(): zeros
            "dcn": pg.conv(mid, 2 * mid, 3, 3),
        }
        P["backbone"][m] = res_blocks_params(pg, (2 + i) * mid, mid, num_blocks)
    # upsampling
    P["reconstruction"] = res_blocks_params(pg, 5 * mid, mid, 5)
    P["upsample1"] = pg.conv(mid * 4, mid, 3, 3)
    P["upsample2"] = pg.conv(64 * 4, mid, 3, 3)
    P["conv_hr"] = pg.conv(64, 64, 3, 3)
    P["conv_last"] = pg.conv(3, 64, 3, 3)
    return P


# -----------------------------------------------------------------------------
# Sub-module forwards
# -----------------------------------------------------------------------------
def res_blocks_forward(p, x):
    # f32 skip-chain accumulation; bf16 only inside convs.
    x = conv2d(x, p["in"]["w"], p["in"]["b"], act="lrelu", out_dtype=jnp.float32)
    for c1, c2 in p["blocks"]:
        r = conv2d(x, c1["w"], c1["b"], act="relu", out_dtype=jnp.bfloat16)
        r = conv2d(r, c2["w"], c2["b"], act=None, out_dtype=jnp.float32)
        x = x + r
    return x


_SPY_MEAN = jnp.array([0.485, 0.456, 0.406], jnp.float32).reshape(1, 3, 1, 1)
_SPY_STD = jnp.array([0.229, 0.224, 0.225], jnp.float32).reshape(1, 3, 1, 1)


def spynet_basic_module(p, x):
    acts = ["relu", "relu", "relu", "relu", None]
    for i, (conv, act) in enumerate(zip(p, acts)):
        od = jnp.float32 if i == len(p) - 1 else jnp.bfloat16  # keep flow in f32
        x = conv2d(x, conv["w"], conv["b"], act=act, out_dtype=od)
    return x


def spynet_compute_flow(params, ref, supp):
    n, _, h, w = ref.shape
    refs = [(ref - _SPY_MEAN) / _SPY_STD]
    supps = [(supp - _SPY_MEAN) / _SPY_STD]
    for _ in range(5):
        refs.append(avg_pool2(refs[-1]))
        supps.append(avg_pool2(supps[-1]))
    refs, supps = refs[::-1], supps[::-1]
    flow = jnp.zeros((n, 2, h // 32, w // 32), jnp.float32)
    for level in range(6):
        if level == 0:
            flow_up = flow
        else:
            flow_up = bilinear_resize(flow, flow.shape[2] * 2, flow.shape[3] * 2,
                                      True) * 2.0
        warped = flow_warp(supps[level], flow_up.transpose(0, 2, 3, 1),
                           padding_mode="border")
        inp = jnp.concatenate([refs[level], warped, flow_up], axis=1)
        flow = flow_up + spynet_basic_module(params[level], inp)
    return flow


def spynet_forward(params, ref, supp):
    h, w = ref.shape[2], ref.shape[3]
    w_up = w if w % 32 == 0 else 32 * (w // 32 + 1)
    h_up = h if h % 32 == 0 else 32 * (h // 32 + 1)
    ref_r = bilinear_resize(ref, h_up, w_up, False)
    supp_r = bilinear_resize(supp, h_up, w_up, False)
    flow = spynet_compute_flow(params, ref_r, supp_r)
    flow = bilinear_resize(flow, h, w, False)
    flow = flow * jnp.array([w / float(w_up), h / float(h_up)],
                            jnp.float32).reshape(1, 2, 1, 1)
    return flow


@functools.partial(jax.jit, static_argnums=(5,))
def modulated_deform_conv(x, offset, mask, w, b, dg):
    """x:(N,Cin,H,W) offset:(N,2*dg*KK,H,W) [(dy,dx) per group/tap], mask:(N,dg*KK,H,W)."""
    n, cin, h, wd = x.shape
    cout, _, kh, kw = w.shape
    kk = kh * kw
    cg = cin // dg
    pad = kh // 2
    gy, gx = jnp.meshgrid(jnp.arange(h, dtype=jnp.float32),
                          jnp.arange(wd, dtype=jnp.float32), indexing="ij")
    off = offset.astype(jnp.float32).reshape(n, dg, kk, 2, h, wd)
    dy, dx = off[:, :, :, 0], off[:, :, :, 1]
    kyy, kxx = jnp.meshgrid(jnp.arange(kh, dtype=jnp.float32),
                            jnp.arange(kw, dtype=jnp.float32), indexing="ij")
    kyy = kyy.reshape(kk)
    kxx = kxx.reshape(kk)
    py = gy[None, None, None] + (kyy - pad)[None, None, :, None, None] + dy
    px = gx[None, None, None] + (kxx - pad)[None, None, :, None, None] + dx
    xg = x.astype(jnp.float32).reshape(n * dg, cg, h, wd)
    samp = _bilinear_gather(xg, px.reshape(n * dg, -1), py.reshape(n * dg, -1),
                            border=False)                    # zero padding
    samp = samp.reshape(n, dg, cg, kk, h, wd)
    samp = samp * mask.astype(jnp.float32).reshape(n, dg, 1, kk, h, wd)
    cols = samp.reshape(n, cin, kk, h, wd).transpose(0, 3, 4, 1, 2)
    cols = cols.reshape(n * h * wd, cin * kk)
    out = matmul_bias_act(cols, w.reshape(cout, cin * kk).T, b, act=None,
                          out_dtype=jnp.float32)
    return out.reshape(n, h, wd, cout).transpose(0, 3, 1, 2)


def second_order_deform_align(p, x, extra_feat, flow_1, flow_2):
    ef = jnp.concatenate([extra_feat.astype(jnp.float32), flow_1, flow_2], axis=1)
    co = p["conv_offset"]
    o = conv2d(ef, co[0]["w"], co[0]["b"], act="lrelu")
    o = conv2d(o, co[1]["w"], co[1]["b"], act="lrelu")
    o = conv2d(o, co[2]["w"], co[2]["b"], act="lrelu")
    o = conv2d(o, co[3]["w"], co[3]["b"], act=None, out_dtype=jnp.float32)
    o1, o2, mask = jnp.split(o, 3, axis=1)
    offset = MAX_RESIDUE_MAGNITUDE * jnp.tanh(jnp.concatenate([o1, o2], axis=1))
    offset_1, offset_2 = jnp.split(offset, 2, axis=1)
    offset_1 = offset_1 + jnp.tile(flow_1[:, ::-1], (1, offset_1.shape[1] // 2, 1, 1))
    offset_2 = offset_2 + jnp.tile(flow_2[:, ::-1], (1, offset_2.shape[1] // 2, 1, 1))
    offset = jnp.concatenate([offset_1, offset_2], axis=1)
    mask = jax.nn.sigmoid(mask)
    return modulated_deform_conv(x, offset, mask, p["dcn"]["w"], p["dcn"]["b"],
                                 DEFORM_GROUPS)


def propagate(P, feats, flows, module_name, mid):
    n, t_f, _, h, w = flows.shape
    frame_idx = list(range(0, t_f + 1))
    flow_idx = list(range(-1, t_f))
    mapping_idx = list(range(0, len(feats["spatial"])))
    mapping_idx += mapping_idx[::-1]
    if "backward" in module_name:
        frame_idx = frame_idx[::-1]
        flow_idx = frame_idx
    feat_prop = jnp.zeros((n, mid, h, w), jnp.float32)
    for i, idx in enumerate(frame_idx):
        feat_current = feats["spatial"][mapping_idx[idx]]
        if i > 0:
            flow_n1 = flows[:, flow_idx[i]]
            cond_n1 = flow_warp(feat_prop, flow_n1.transpose(0, 2, 3, 1))
            feat_n2 = jnp.zeros_like(feat_prop)
            flow_n2 = jnp.zeros_like(flow_n1)
            cond_n2 = jnp.zeros_like(cond_n1)
            if i > 1:
                feat_n2 = feats[module_name][-2]
                flow_n2 = flows[:, flow_idx[i - 1]]
                flow_n2 = flow_n1 + flow_warp(flow_n2, flow_n1.transpose(0, 2, 3, 1))
                cond_n2 = flow_warp(feat_n2, flow_n2.transpose(0, 2, 3, 1))
            cond = jnp.concatenate([cond_n1, feat_current, cond_n2], axis=1)
            feat_prop = jnp.concatenate([feat_prop, feat_n2], axis=1)
            feat_prop = second_order_deform_align(P["deform_align"][module_name],
                                                  feat_prop, cond, flow_n1, flow_n2)
        feat = ([feat_current]
                + [feats[k][idx] for k in feats
                   if k not in ("spatial", module_name)]
                + [feat_prop])
        feat = jnp.concatenate(feat, axis=1)
        feat_prop = feat_prop + res_blocks_forward(P["backbone"][module_name], feat)
        feats[module_name].append(feat_prop)
    if "backward" in module_name:
        feats[module_name] = feats[module_name][::-1]
    return feats


def upsample(P, lqs, feats):
    """Frame-batched reconstruction / upsampling tail (single big-M conv calls)."""
    n, t = lqs.shape[0], lqs.shape[1]
    h_lr, w_lr = lqs.shape[3], lqs.shape[4]
    num_outputs = len(feats["spatial"])
    mapping_idx = list(range(num_outputs)) + list(range(num_outputs))[::-1]
    keys = [k for k in feats if k != "spatial"]

    hr_list = []
    for i in range(t):
        hr_i = [feats["spatial"][mapping_idx[i]]] + [feats[k][i] for k in keys]
        hr_list.append(jnp.concatenate(hr_i, axis=1))
    hr = jnp.stack(hr_list, axis=1)                    # (n, t, 5*mid, h, w)
    hr = hr.reshape(n * t, hr.shape[2], h_lr, w_lr)    # batch-major (n outer, t inner)

    hr = res_blocks_forward(P["reconstruction"], hr)
    # lrelu after pixel_shuffle == lrelu before (permutation); fused in conv.
    hr = pixel_shuffle(conv2d(hr, P["upsample1"]["w"], P["upsample1"]["b"],
                              act="lrelu"), 2)
    hr = pixel_shuffle(conv2d(hr, P["upsample2"]["w"], P["upsample2"]["b"],
                              act="lrelu"), 2)
    hr = conv2d(hr, P["conv_hr"]["w"], P["conv_hr"]["b"], act="lrelu")
    hr = conv2d(hr, P["conv_last"]["w"], P["conv_last"]["b"], act=None,
                out_dtype=jnp.float32)

    base = bilinear_resize(lqs.reshape(n * t, lqs.shape[2], h_lr, w_lr),
                           h_lr * UPSCALE, w_lr * UPSCALE, False)
    hr = hr + base
    return hr.reshape(n, t, -1, h_lr * UPSCALE, w_lr * UPSCALE)


def basicvsr_pp_forward(P, lqs, is_mirror=False, mid=MID_CHANNELS):
    n, t, c, h, w = lqs.shape

    # spatial features (f32 at module boundaries)
    feats_ = res_blocks_forward(P["feat_extract"], lqs.reshape(n * t, c, h, w))
    feats_ = feats_.reshape(n, t, mid, h, w)
    feats = {"spatial": [feats_[:, i] for i in range(t)]}

    # optical flows (f32); forward + backward batched into one SPyNet call
    lqs_1 = lqs[:, :-1].reshape(-1, c, h, w)
    lqs_2 = lqs[:, 1:].reshape(-1, c, h, w)
    if is_mirror:
        flows_backward = spynet_forward(P["spynet"], lqs_1, lqs_2).reshape(
            n, t - 1, 2, h, w)
        flows_forward = None
    else:
        ref = jnp.concatenate([lqs_1, lqs_2], axis=0)
        supp = jnp.concatenate([lqs_2, lqs_1], axis=0)
        flows = spynet_forward(P["spynet"], ref, supp)
        fb, ff = jnp.split(flows, 2, axis=0)
        flows_backward = fb.reshape(n, t - 1, 2, h, w)
        flows_forward = ff.reshape(n, t - 1, 2, h, w)

    # second-order propagation
    for iter_ in (1, 2):
        for direction in ("backward", "forward"):
            module = f"{direction}_{iter_}"
            feats[module] = []
            if direction == "backward":
                flows = flows_backward
            elif flows_forward is not None:
                flows = flows_forward
            else:
                flows = flows_backward[:, ::-1]
            feats = propagate(P, feats, flows, module, mid)

    return upsample(P, lqs, feats)


def net_forward(params, batch):
    """Equivalent of Net.forward: {'LR': (N,T,3,H,W)} -> {'HR': (N,T,3,4H,4W)}."""
    lqs = batch["LR"]
    t = lqs.shape[1]
    # check_if_mirror_extended: evaluated on host (numpy), no mid-dispatch sync.
    is_mirror = False
    if t % 2 == 0:
        a = np.asarray(jax.device_get(lqs))
        half = t // 2
        is_mirror = bool(np.linalg.norm(a[:, :half] - a[:, half:][:, ::-1]) == 0)
    return {"HR": basicvsr_pp_forward(params, lqs, is_mirror=is_mirror)}


# -----------------------------------------------------------------------------
if __name__ == "__main__":
    key = jax.random.PRNGKey(0)
    # Small demo shapes for fast compile/run (the PyTorch module normally
    # expects >=64x64 low-res inputs; semantics are size-agnostic).
    N, T, C, H, W = 1, 2, 3, 16, 16
    lr = jax.random.uniform(key, (N, T, C, H, W), dtype=jnp.float32)

    params = build_params()
    out = net_forward(params, {"LR": lr})
    hr = jax.block_until_ready(out["HR"])

    assert hr.shape == (N, T, C, UPSCALE * H, UPSCALE * W), hr.shape
    assert bool(jnp.all(jnp.isfinite(hr)))
    print("KERNEL_OK")
</pallas_src>

<mosaic_0001>
module attributes {stable_mosaic.version = 11 : i64} {
  func.func @_conv_kernel(%arg0: i32, %arg1: memref<1x342x8xbf16, #tpu.memory_space<vmem>>, %arg2: memref<72x128xbf16, #tpu.memory_space<vmem>>, %arg3: memref<1x128xf32, #tpu.memory_space<vmem>>, %arg4: memref<1x288x128xf32, #tpu.memory_space<vmem>>, %arg5: memref<288x72xbf16, #tpu.memory_space<vmem>>) attributes {dimension_semantics = [#tpu.dimension_semantics<parallel>], iteration_bounds = array<i64: 2>, scalar_prefetch = 0 : i64, scratch_operands = 1 : i64, tpu.core_type = #tpu.core_type<tc>, window_params = [{transform_indices = @transform_0, window_bounds = array<i64: 1, 342, 8>}, {pipeline_mode = #tpu.pipeline_mode<synchronous>, transform_indices = @transform_1, window_bounds = array<i64: 72, 128>}, {pipeline_mode = #tpu.pipeline_mode<synchronous>, transform_indices = @transform_2, window_bounds = array<i64: 1, 128>}, {transform_indices = @transform_3, window_bounds = array<i64: 1, 288, 128>}]} {
    %c0 = arith.constant 0 : index
    %c0_0 = arith.constant 0 : index
    %c0_1 = arith.constant 0 : index
    %0 = vector.load %arg1[%c0, %c0_0, %c0_1] : memref<1x342x8xbf16, #tpu.memory_space<vmem>>, vector<1x288x8xbf16>
    %1 = vector.shape_cast %0 : vector<1x288x8xbf16> to vector<288x8xbf16>
    %c0_2 = arith.constant 0 : index
    %c0_3 = arith.constant 0 : index
    %2 = vector.load %arg5[%c0_2, %c0_3] : memref<288x72xbf16, #tpu.memory_space<vmem>>, vector<288x8xbf16>
    tpu.vector_store %arg5[%c0_2, %c0_3], %1 {strides = array<i32>} : memref<288x72xbf16, #tpu.memory_space<vmem>>, vector<288x8xbf16>,
    %c0_4 = arith.constant 0 : index
    %c1 = arith.constant 1 : index
    %c0_5 = arith.constant 0 : index
    %3 = vector.load %arg1[%c0_4, %c1, %c0_5] : memref<1x342x8xbf16, #tpu.memory_space<vmem>>, vector<1x288x8xbf16>
    %4 = vector.shape_cast %3 : vector<1x288x8xbf16> to vector<288x8xbf16>
    %c0_6 = arith.constant 0 : index
    %c8 = arith.constant 8 : index
    %5 = vector.load %arg5[%c0_6, %c8] : memref<288x72xbf16, #tpu.memory_space<vmem>>, vector<288x8xbf16>
    tpu.vector_store %arg5[%c0_6, %c8], %4 {strides = array<i32>} : memref<288x72xbf16, #tpu.memory_space<vmem>>, vector<288x8xbf16>,
    %c0_7 = arith.constant 0 : index
    %c2 = arith.constant 2 : index
    %c0_8 = arith.constant 0 : index
    %6 = vector.load %arg1[%c0_7, %c2, %c0_8] : memref<1x342x8xbf16, #tpu.memory_space<vmem>>, vector<1x288x8xbf16>
    %7 = vector.shape_cast %6 : vector<1x288x8xbf16> to vector<288x8xbf16>
    %c0_9 = arith.constant 0 : index
    %c16 = arith.constant 16 : index
    %8 = vector.load %arg5[%c0_9, %c16] : memref<288x72xbf16, #tpu.memory_space<vmem>>, vector<288x8xbf16>
    tpu.vector_store %arg5[%c0_9, %c16], %7 {strides = array<i32>} : memref<288x72xbf16, #tpu.memory_space<vmem>>, vector<288x8xbf16>,
    %c0_10 = arith.constant 0 : index
    %c18 = arith.constant 18 : index
    %c0_11 = arith.constant 0 : index
    %9 = vector.load %arg1[%c0_10, %c18, %c0_11] : memref<1x342x8xbf16, #tpu.memory_space<vmem>>, vector<1x288x8xbf16>
    %10 = vector.shape_cast %9 : vector<1x288x8xbf16> to vector<288x8xbf16>
    %c0_12 = arith.constant 0 : index
    %c24 = arith.constant 24 : index
    %11 = vector.load %arg5[%c0_12, %c24] : memref<288x72xbf16, #tpu.memory_space<vmem>>, vector<288x8xbf16>
    tpu.vector_store %arg5[%c0_12, %c24], %10 {strides = array<i32>} : memref<288x72xbf16, #tpu.memory_space<vmem>>, vector<288x8xbf16>,
    %c0_13 = arith.constant 0 : index
    %c19 = arith.constant 19 : index
    %c0_14 = arith.constant 0 : index
    %12 = vector.load %arg1[%c0_13, %c19, %c0_14] : memref<1x342x8xbf16, #tpu.memory_space<vmem>>, vector<1x288x8xbf16>
    %13 = vector.shape_cast %12 : vector<1x288x8xbf16> to vector<288x8xbf16>
    %c0_15 = arith.constant 0 : index
    %c32 = arith.constant 32 : index
    %14 = vector.load %arg5[%c0_15, %c32] : memref<288x72xbf16, #tpu.memory_space<vmem>>, vector<288x8xbf16>
    tpu.vector_store %arg5[%c0_15, %c32], %13 {strides = array<i32>} : memref<288x72xbf16, #tpu.memory_space<vmem>>, vector<288x8xbf16>,
    %c0_16 = arith.constant 0 : index
    %c20 = arith.constant 20 : index
    %c0_17 = arith.constant 0 : index
    %15 = vector.load %arg1[%c0_16, %c20, %c0_17] : memref<1x342x8xbf16, #tpu.memory_space<vmem>>, vector<1x288x8xbf16>
    %16 = vector.shape_cast %15 : vector<1x288x8xbf16> to vector<288x8xbf16>
    %c0_18 = arith.constant 0 : index
    %c40 = arith.constant 40 : index
    %17 = vector.load %arg5[%c0_18, %c40] : memref<288x72xbf16, #tpu.memory_space<vmem>>, vector<288x8xbf16>
    tpu.vector_store %arg5[%c0_18, %c40], %16 {strides = array<i32>} : memref<288x72xbf16, #tpu.memory_space<vmem>>, vector<288x8xbf16>,
    %c0_19 = arith.constant 0 : index
    %c36 = arith.constant 36 : index
    %c0_20 = arith.constant 0 : index
    %18 = vector.load %arg1[%c0_19, %c36, %c0_20] : memref<1x342x8xbf16, #tpu.memory_space<vmem>>, vector<1x288x8xbf16>
    %19 = vector.shape_cast %18 : vector<1x288x8xbf16> to vector<288x8xbf16>
    %c0_21 = arith.constant 0 : index
    %c48 = arith.constant 48 : index
    %20 = vector.load %arg5[%c0_21, %c48] : memref<288x72xbf16, #tpu.memory_space<vmem>>, vector<288x8xbf16>
    tpu.vector_store %arg5[%c0_21, %c48], %19 {strides = array<i32>} : memref<288x72xbf16, #tpu.memory_space<vmem>>, vector<288x8xbf16>,
    %c0_22 = arith.constant 0 : index
    %c37 = arith.constant 37 : index
    %c0_23 = arith.constant 0 : index
    %21 = vector.load %arg1[%c0_22, %c37, %c0_23] : memref<1x342x8xbf16, #tpu.memory_space<vmem>>, vector<1x288x8xbf16>
    %22 = vector.shape_cast %21 : vector<1x288x8xbf16> to vector<288x8xbf16>
    %c0_24 = arith.constant 0 : index
    %c56 = arith.constant 56 : index
    %23 = vector.load %arg5[%c0_24, %c56] : memref<288x72xbf16, #tpu.memory_space<vmem>>, vector<288x8xbf16>
    tpu.vector_store %arg5[%c0_24, %c56], %22 {strides = array<i32>} : memref<288x72xbf16, #tpu.memory_space<vmem>>, vector<288x8xbf16>,
    %c0_25 = arith.constant 0 : index
    %c38 = arith.constant 38 : index
    %c0_26 = arith.constant 0 : index
    %24 = vector.load %arg1[%c0_25, %c38, %c0_26] : memref<1x342x8xbf16, #tpu.memory_space<vmem>>, vector<1x288x8xbf16>
    %25 = vector.shape_cast %24 : vector<1x288x8xbf16> to vector<288x8xbf16>
    %c0_27 = arith.constant 0 : index
    %c64 = arith.constant 64 : index
    %26 = vector.load %arg5[%c0_27, %c64] : memref<288x72xbf16, #tpu.memory_space<vmem>>, vector<288x8xbf16>
    tpu.vector_store %arg5[%c0_27, %c64], %25 {strides = array<i32>} : memref<288x72xbf16, #tpu.memory_space<vmem>>, vector<288x8xbf16>,
    %c0_28 = arith.constant 0 : index
    %c0_29 = arith.constant 0 : index
    %27 = vector.load %arg5[%c0_28, %c0_29] : memref<288x72xbf16, #tpu.memory_space<vmem>>, vector<288x72xbf16>
    %c0_30 = arith.constant 0 : index
    %c0_31 = arith.constant 0 : index
    %28 = vector.load %arg2[%c0_30, %c0_31] : memref<72x128xbf16, #tpu.memory_space<vmem>>, vector<72x128xbf16>
    %cst = arith.constant dense<0.000000e+00> : vector<288x128xf32>
    %29 = tpu.matmul %27, %28, %cst {dimension_numbers = #tpu.dot_dimension_numbers<[1], [0], [0], [1], [0, 0, 1, 1], [], []>} : vector<288x72xbf16>, vector<72x128xbf16>, vector<288x128xf32> -> vector<288x128xf32>
    %c0_32 = arith.constant 0 : index
    %c0_33 = arith.constant 0 : index
    %30 = vector.load %arg3[%c0_32, %c0_33] : memref<1x128xf32, #tpu.memory_space<vmem>>, vector<1x128xf32>
    %31 = vector.broadcast %30 : vector<1x128xf32> to vector<288x128xf32>
    %32 = arith.addf %29, %31 : vector<288x128xf32>
    %cst_34 = arith.constant 0.000000e+00 : f32
    %33 = vector.broadcast %cst_34 : f32 to vector<288x128xf32>
    %34 = arith.cmpf oge, %32, %33 : vector<288x128xf32>
    %cst_35 = arith.constant 1.000000e-01 : f32
    %35 = vector.broadcast %cst_35 : f32 to vector<288x128xf32>
    %36 = arith.mulf %35, %32 : vector<288x128xf32>
    %37 = arith.select %34, %32, %36 : vector<288x128xi1>, vector<288x128xf32>
    %38 = vector.shape_cast %37 : vector<288x128xf32> to vector<1x288x128xf32>
    %c0_36 = arith.constant 0 : index
    %c0_37 = arith.constant 0 : index
    %c0_38 = arith.constant 0 : index
    %39 = vector.load %arg4[%c0_36, %c0_37, %c0_38] : memref<1x288x128xf32, #tpu.memory_space<vmem>>, vector<1x288x128xf32>
    tpu.vector_store %arg4[%c0_36, %c0_37, %c0_38], %38 {strides = array<i32>} : memref<1x288x128xf32, #tpu.memory_space<vmem>>, vector<1x288x128xf32>,
    return
  }
  func.func @transform_0(%arg0: i32) -> (i32, i32, i32) {
    %c0_i32 = arith.constant 0 : i32
    %c0_i32_0 = arith.constant 0 : i32
    %c0_i32_1 = arith.constant 0 : i32
    return %arg0, %c0_i32, %c0_i32_0 : i32, i32, i32
  }
  func.func @transform_1(%arg0: i32) -> (i32, i32) {
    %c0_i32 = arith.constant 0 : i32
    %c0_i32_0 = arith.constant 0 : i32
    %c0_i32_1 = arith.constant 0 : i32
    return %c0_i32, %c0_i32_0 : i32, i32
  }
  func.func @transform_2(%arg0: i32) -> (i32, i32) {
    %c0_i32 = arith.constant 0 : i32
    %c0_i32_0 = arith.constant 0 : i32
    %c0_i32_1 = arith.constant 0 : i32
    return %c0_i32, %c0_i32_0 : i32, i32
  }
  func.func @transform_3(%arg0: i32) -> (i32, i32, i32) {
    %c0_i32 = arith.constant 0 : i32
    %c0_i32_0 = arith.constant 0 : i32
    %c0_i32_1 = arith.constant 0 : i32
    return %arg0, %c0_i32, %c0_i32_0 : i32, i32, i32
  }
}

</mosaic_0001>

<bundles_post_ra>
// kernel: tpu_custom_call.1
= control target key start
LH: loop header
LB: loop body
LE: loop exit
PB: predicated region body
PF: predicated region fallthrough
CT: control target
= control target key end

     0   :  { %8 = vsyncpa [#allocation4], 0  ;;  %s6414_s0 = inlined_call_operand.vmem [shape: bf16[2,342,8], index: 0, kind: input, shape index: {}]   ;;  %s6415_s1 = inlined_call_operand.vmem [shape: bf16[72,128], index: 1, kind: input, shape index: {}]   ;;  %s6416_s2 = inlined_call_operand.vmem [shape: f32[1,128], index: 2, kind: input, shape index: {}]   ;;  %s6417_s3 = inlined_call_operand.hbm [shape: f32[2,288,128], index: 3, kind: output, shape index: {}]  }
   0x1   :  { %10 = vsyncpa [#allocation4 + $0x1], 0  ;;  %s4394_s12 = smov 0   ;;  %s4396_s13 = smov 0  }
   0x2   :  { %s4398_s14 = smov 0   ;;  %s4400_s15 = smov 0  }
   0x3 LB: > { %s4415_s16 = sadd.s32 4294967295, %s4363_s15   ;;  %s4093_s17 = sadd.s32 4294967294, %s4363_s15   ;;  %s4363_s15 = sphi %s4400_s15, %s6435_s15   ;;  %s4359_s14 = sphi %s4398_s14, %s6434_s14   ;;  %s4355_s13 = sphi %s4396_s13, %s6433_s13   ;;  %s4351_s12 = sphi %s4394_s12, %s6432_s12  }
   0x4   : > { %s4419_s18 = sadd.s32 1, %s4363_s15   ;;  %s91_s19 = sadd.s32 1, %s4359_s14 }
   0x5   : > { %s88_s20 = ssub.s32 %s4363_s15, %s4419_s18  ;;  %p101_p0 = scmp.ne.s32.totalorder %s4359_s14, %s4355_s13 }
   0x6   : > { %p89_p1 = scmp.eq.s32.totalorder %s88_s20, 0  ;;  %p102_p2 = scmp.eq.s32.totalorder %s4415_s16, 1 }
   0x7   : > { %p107_p3 = scmp.ne.s32.totalorder %s4355_s13, %s4351_s12  ;;  %p108_p4 = scmp.eq.s32.totalorder %s4093_s17, 1 }
   0x8   : > { %s4430_s21 = scalar_select %p89_p1, %s4359_s14, %s91_s19  }
   0x9   : > { %p4432_p5 = por %p102_p2, %p101_p0  ;;  %p4436_p6 = por %p108_p4, %p107_p3 }
   0xa   : > { %p4096_p7 = scmp.ge.s32.totalorder %s4363_s15, 1  ;;  %p140_p8 = scmp.lt.s32.totalorder %s4363_s15, 3 }
   0xc   : > { %p141_p9 = pnand %p4096_p7, %p140_p8 }
   0xd   : > { %p164_p10 = scmp.lt.s32.totalorder (!%p141_p9), %s4415_s16, 1  ;;  %s4365_s29 = smov (!%p141_p9), 8  }
   0xe   : > { %144 = sbr.rel (%p141_p9) target bundleno = 1061 (0x425), region = 32  ;;  %s4366_s30 = smov (!%p141_p9), 16  }
   0xf   : > { %s4367_s4 = smov (!%p141_p9), 24   ;;  %s4368_s5 = smov (!%p141_p9), 32  }
  0x10   : > { %s4369_s6 = smov (!%p141_p9), 40   ;;  %s4370_s7 = smov (!%p141_p9), 48  }
  0x11   : > { %s4371_s8 = smov (!%p141_p9), 56   ;;  %s4372_s9 = smov (!%p141_p9), 64  }
  0x12   : > { %s4321_s27 = scalar_lea.hbm (!%p141_p9), %s6417_s3, 576 }
  0x13   : > { %s165_s24 = scalar_select %p164_p10, %s4415_s16, 1  ;;  %vm280_vm0 = vsmask.f32 3328  ;;  %vm281_vm1 = vsmask.f32 7440  ;;  %vm206_vm3 = vcmask 60416  }
  0x14   : > { %vm4457_vm2 = vmor %vm280_vm0, %vm281_vm1  ;;  %vm866_vm4 = vcmask 1042432   ;;  %vm867_vm5 = vcmask 1046532   ;;  %vm755_vm7 = vcmask 126016   ;;  %vm1086_vm8 = vcmask 191616  }
  0x15   : > { %s4250_s25 = smul.u32 172, %s165_s24  ;;  %vm4608_vm6 = vmor %vm866_vm4, %vm867_vm5  ;;  %vm1488_vm9 = vsmask.f32 2304  ;;  %vm1489_vm10 = vsmask.f32 6416  ;;  %vm1414_vm12 = vcmask 257216  }
  0x16   : > { %vm5036_vm11 = vmor %vm1488_vm9, %vm1489_vm10  ;;  %vm2078_vm13 = vcmask 1041408   ;;  %vm2079_vm14 = vcmask 1045508   ;;  %vm1967_vm0 = vcmask 322816   ;;  %vm2298_vm1 = vcmask 388416  }
  0x17   : > { %s4447_s28 = scalar_lea.vmem %s6414_s0, %s4250_s25  ;;  %vm5235_vm15 = vmor %vm2078_vm13, %vm2079_vm14  ;;  %vm3290_vm5 = vcmask 1040384   ;;  %vm3768_vm9 = vcmask 1043456   ;;  %vm3179_vm10 = vcmask 519616  }
  0x18   : > { %v245_v0 = vld [vmem:[%s4447_s28 + $0x8] sm:$0xf]  ;;  %v246_v1 = vld [vmem:[%s4447_s28 + $0xc] sm:$0xf]  ;;  %v243_v2 = vld [vmem:[%s4447_s28] sm:$0xf] }
  0x19   : > { %v303_v3 = vshll.u32 %v245_v0, 16  ;;  %v307_v4 = vshrl.u32 %v245_v0, 16  ;;  %v313_v5 = vshll.u32 %v246_v1, 16  ;;  %v317_v6 = vshrl.u32 %v246_v1, 16  ;;  %v244_v7 = vld [vmem:[%s4447_s28 + $0x4] sm:$0xf] }
  0x1a   : > { %v284_v8 = vshrl.u32 %v243_v2, 16  ;;  %v287_v9 = vshll.u32 %v243_v2, 16  ;;  %v293_v10 = vshll.u32 %v244_v7, 16  ;;  %v297_v11 = vshrl.u32 %v244_v7, 16  ;;  %v247_v12 = vld [vmem:[%s4447_s28 + $0x10] sm:$0xf] }
  0x1b   : > { %v305_v13 = vrot.slane %v303_v3, 5  ;;  %v309_v14 = vrot.slane %v307_v4, 4  ;;  %v315_v15 = vrot.slane %v313_v5, 5  ;;  %v319_v16 = vrot.slane %v317_v6, 4  ;;  %v250_v17 = vld [vmem:[%s4447_s28 + $0x1c] sm:$0xf] }
  0x1c   : > { %v286_v18 = vrot.slane %v284_v8, 4  ;;  %v289_v19 = vrot.slane %v287_v9, 5  ;;  %v299_v20 = vrot.slane %v297_v11, 4  ;;  %v323_v23 = vshll.u32 %v247_v12, 16  ;;  %v249_v29 = vld [vmem:[%s4447_s28 + $0x18] sm:$0xf] }
  0x1d   : > { %v310_v21 = vor.u32 %v309_v14, %v305_v13  ;;  %v320_v22 = vor.u32 %v319_v16, %v315_v15  ;;  %v295_v26 = vrot.slane %v293_v10, 5  ;;  %v353_v27 = vshll.u32 %v250_v17, 16  ;;  %v248_v33 = vld [vmem:[%s4447_s28 + $0x14] sm:$0xf]  ;;  %v251_v42 = vld [vmem:[%s4447_s28 + $0x20] sm:$0xf] }
  0x1e   : > { %v290_v25 = vor.u32 %v289_v19, %v286_v18  ;;  %v357_v28 = vshrl.u32 %v250_v17, 16  ;;  %v325_v36 = vrot.slane %v323_v23, 5  ;;  %v343_v37 = vshll.u32 %v249_v29, 16  ;;  %v253_v49 = vld [vmem:[%s4447_s28 + $0x28] sm:$0xf] }
  0x1f   : > { %v311_v30 = vrot.slane %v310_v21, 4  ;;  %v300_v32 = vor.u32 %v299_v20, %v295_v26  ;;  %v321_v35 = vrot.slane %v320_v22, 4  ;;  %v355_v39 = vrot.slane %v353_v27, 5  ;;  %v252_v52 = vld [vmem:[%s4447_s28 + $0x24] sm:$0xf] }
  0x20   : > { %v291_v31 = vrot.slane %v290_v25, 4  ;;  %v359_v40 = vrot.slane %v357_v28, 4  ;;  %v347_v41 = vshrl.u32 %v249_v29, 16  ;;  %v327_v43 = vshrl.u32 %v247_v12, 16  ;;  %v254_v6 = vld [vmem:[%s4447_s28 + $0x2c] sm:$0xf] }
  0x21   : > { %v316_v34 = vsel %vm4457_vm2, %v311_v30, %v315_v15  ;;  %v333_v44 = vshll.u32 %v248_v33, 16  ;;  %v337_v45 = vshrl.u32 %v248_v33, 16  ;;  %v301_v46 = vrot.slane %v300_v32, 4  ;;  %v256_v12 = vld [vmem:[%s4447_s28 + $0x34] sm:$0xf] }
  0x22   : > { %651 = vrot.lane.b32.xlu1 %v316_v34, %s4365_s29  ;;  %v296_v38 = vsel %vm4457_vm2, %v291_v31, %v295_v26  ;;  %v345_v47 = vrot.slane %v343_v37, 5  ;;  %v349_v48 = vrot.slane %v347_v41, 4  ;;  %v329_v50 = vrot.slane %v327_v43, 4  ;;  %v255_v14 = vld [vmem:[%s4447_s28 + $0x30] sm:$0xf] }
  0x23   : > { %647 = vrot.lane.b32.xlu0 %v296_v38, %s4365_s29  ;;  %v339_v51 = vrot.slane %v337_v45, 4  ;;  %v326_v53 = vsel %vm4457_vm2, %v321_v35, %v325_v36  ;;  %v360_v54 = vor.u32 %v359_v40, %v355_v39  ;;  %v363_v55 = vshll.u32 %v251_v42, 16  ;;  %v257_v31 = vld [vmem:[%s4447_s28 + $0x38] sm:$0xf]  ;;  %v259_v37 = vld [vmem:[%s4447_s28 + $0x40] sm:$0xf] }
  0x24   : > { %v330_v56 = vor.u32 %v329_v50, %v325_v36  ;;  %v335_v57 = vrot.slane %v333_v44, 5  ;;  %v383_v58 = vshll.u32 %v253_v49, 16  ;;  %v387_v59 = vshrl.u32 %v253_v49, 16  ;;  %v176_v24 = vld [vmem:[%s4447_s28 + $0x18] sm:$0xf] }
  0x25   : > { %v306_v60 = vsel %vm4457_vm2, %v301_v46, %v305_v13  ;;  %v350_v61 = vor.u32 %v349_v48, %v345_v47  ;;  %v373_v62 = vshll.u32 %v252_v52, 16  ;;  %v377_v63 = vshrl.u32 %v252_v52, 16  ;;  %213 = vst.msk [vmem:[#allocation2 + $0x18] sm:$0xf] %vm206_vm3, %v176_v24 }
  0x26   : > { %v331_v0 = vrot.slane %v330_v56, 4  ;;  %v340_v1 = vor.u32 %v339_v51, %v335_v57  ;;  %v365_v2 = vrot.slane %v363_v55, 5  ;;  %v367_v3 = vshrl.u32 %v251_v42, 16 }
  0x27   : > { %v361_v4 = vrot.slane %v360_v54, 4  ;;  %v385_v7 = vrot.slane %v383_v58, 5  ;;  %v389_v8 = vrot.slane %v387_v59, 4  ;;  %v351_v9 = vrot.slane %v350_v61, 4  ;;  %v260_v59 = vld [vmem:[%s4447_s28 + $0x44] sm:$0xf] }
  0x28   : > { %v336_v5 = vsel %vm4457_vm2, %v331_v0, %v335_v57  ;;  %v375_v10 = vrot.slane %v373_v62, 5  ;;  %v379_v11 = vrot.slane %v377_v63, 4  ;;  %v341_v13 = vrot.slane %v340_v1, 4  ;;  %v262_v57 = vld [vmem:[%s4447_s28 + $0x4c] sm:$0xf] }
  0x29   : > { %655 = vrot.lane.b32.xlu2 %v336_v5, %s4365_s29  ;;  %v393_v15 = vshll.u32 %v254_v6, 16  ;;  %v369_v16 = vrot.slane %v367_v3, 4  ;;  %v366_v17 = vsel %vm4457_vm2, %v361_v4, %v365_v2  ;;  %v390_v18 = vor.u32 %v389_v8, %v385_v7  ;;  %v261_v63 = vld [vmem:[%s4447_s28 + $0x48] sm:$0xf] }
  0x2a   : > { %653 = vrot.lane.b32.xlu1 %v326_v53, %s4365_s29  ;;  %v413_v19 = vshll.u32 %v256_v12, 16  ;;  %v417_v20 = vshrl.u32 %v256_v12, 16  ;;  %v356_v21 = vsel %vm4457_vm2, %v351_v9, %v355_v39  ;;  %v380_v22 = vor.u32 %v379_v11, %v375_v10  ;;  %v258_v39 = vld [vmem:[%s4447_s28 + $0x3c] sm:$0xf] }
  0x2b   : > { %649 = vrot.lane.b32.xlu0 %v306_v60, %s4365_s29  ;;  %v403_v23 = vshll.u32 %v255_v14, 16  ;;  %v407_v25 = vshrl.u32 %v255_v14, 16  ;;  %v397_v26 = vshrl.u32 %v254_v6, 16  ;;  %v346_v27 = vsel %vm4457_vm2, %v341_v13, %v345_v47 }
  0x2c   : > { %v370_v28 = vor.u32 %v369_v16, %v365_v2  ;;  %v391_v29 = vrot.slane %v390_v18, 4  ;;  %v395_v30 = vrot.slane %v393_v15, 5  ;;  %v415_v32 = vrot.slane %v413_v19, 5 }
  0x2d   : > { %v419_v33 = vrot.slane %v417_v20, 4  ;;  %v381_v34 = vrot.slane %v380_v22, 4  ;;  %v405_v35 = vrot.slane %v403_v23, 5  ;;  %v409_v36 = vrot.slane %v407_v25, 4  ;;  %v264_v23 = vld [vmem:[%s4447_s28 + $0x54] sm:$0xf] }
  0x2e   : > { %v371_v38 = vrot.slane %v370_v28, 4  ;;  %v399_v40 = vrot.slane %v397_v26, 4  ;;  %v423_v41 = vshll.u32 %v257_v31, 16  ;;  %v396_v42 = vsel %vm4457_vm2, %v391_v29, %v395_v30 }
  0x2f   : > { %v420_v43 = vor.u32 %v419_v33, %v415_v32  ;;  %v443_v44 = vshll.u32 %v259_v37, 16  ;;  %v447_v45 = vshrl.u32 %v259_v37, 16  ;;  %v386_v46 = vsel %vm4457_vm2, %v381_v34, %v385_v7 }
  0x30   : > { %v410_v47 = vor.u32 %v409_v36, %v405_v35  ;;  %v433_v48 = vshll.u32 %v258_v39, 16  ;;  %v437_v49 = vshrl.u32 %v258_v39, 16  ;;  %v427_v50 = vshrl.u32 %v257_v31, 16 }
  0x31   : > { %657 = vrot.lane.b32.xlu2 %v346_v27, %s4365_s29  ;;  %v376_v51 = vsel %vm4457_vm2, %v371_v38, %v375_v10  ;;  %v400_v52 = vor.u32 %v399_v40, %v395_v30  ;;  %v421_v53 = vrot.slane %v420_v43, 4  ;;  %v425_v54 = vrot.slane %v423_v41, 5  ;;  %v266_v40 = vld [vmem:[%s4447_s28 + $0x5c] sm:$0xf] }
  0x32   : > { %661 = vrot.lane.b32.xlu1 %v366_v17, %s4365_s29  ;;  %v445_v55 = vrot.slane %v443_v44, 5  ;;  %v449_v56 = vrot.slane %v447_v45, 4  ;;  %v411_v58 = vrot.slane %v410_v47, 4  ;;  %v435_v60 = vrot.slane %v433_v48, 5  ;;  %v263_v17 = vld [vmem:[%s4447_s28 + $0x50] sm:$0xf] }
  0x33   : > { %659 = vrot.lane.b32.xlu0 %v356_v21, %s4365_s29  ;;  %v439_v61 = vrot.slane %v437_v49, 4  ;;  %v401_v62 = vrot.slane %v400_v52, 4  ;;  %v429_v0 = vrot.slane %v427_v50, 4  ;;  %v473_v1 = vshll.u32 %v262_v57, 16  ;;  %v265_v21 = vld [vmem:[%s4447_s28 + $0x58] sm:$0xf] }
  0x34   : > { %v477_v2 = vshrl.u32 %v262_v57, 16  ;;  %v426_v3 = vsel %vm4457_vm2, %v421_v53, %v425_v54  ;;  %v450_v4 = vor.u32 %v449_v56, %v445_v55  ;;  %v453_v5 = vshll.u32 %v260_v59, 16  ;;  %v267_v48 = vld [vmem:[%s4447_s28 + $0x60] sm:$0xf] }
  0x35   : > { %v416_v6 = vsel %vm4457_vm2, %v411_v58, %v415_v32  ;;  %v440_v7 = vor.u32 %v439_v61, %v435_v60  ;;  %v463_v8 = vshll.u32 %v261_v63, 16  ;;  %v467_v9 = vshrl.u32 %v261_v63, 16 }
  0x36   : > { %v457_v10 = vshrl.u32 %v260_v59, 16  ;;  %v406_v11 = vsel %vm4457_vm2, %v401_v62, %v405_v35  ;;  %v430_v12 = vor.u32 %v429_v0, %v425_v54  ;;  %v475_v13 = vrot.slane %v473_v1, 5 }
  0x37   : > { %v479_v14 = vrot.slane %v477_v2, 4  ;;  %v451_v15 = vrot.slane %v450_v4, 4  ;;  %v455_v16 = vrot.slane %v453_v5, 5  ;;  %v441_v18 = vrot.slane %v440_v7, 4  ;;  %v271_v2 = vld [vmem:[%s4447_s28 + $0x70] sm:$0xf] }
  0x38   : > { %v465_v19 = vrot.slane %v463_v8, 5  ;;  %v469_v20 = vrot.slane %v467_v9, 4  ;;  %v431_v22 = vrot.slane %v430_v12, 4  ;;  %v459_v25 = vrot.slane %v457_v10, 4  ;;  %v269_v4 = vld [vmem:[%s4447_s28 + $0x68] sm:$0xf] }
  0x39   : > { %663 = vrot.lane.b32.xlu2 %v376_v51, %s4365_s29  ;;  %v480_v26 = vor.u32 %v479_v14, %v475_v13  ;;  %v483_v27 = vshll.u32 %v263_v17, 16  ;;  %v456_v28 = vsel %vm4457_vm2, %v451_v15, %v455_v16  ;;  %v503_v29 = vshll.u32 %v265_v21, 16  ;;  %v270_v8 = vld [vmem:[%s4447_s28 + $0x6c] sm:$0xf] }
  0x3a   : > { %667 = vrot.lane.b32.xlu1 %v396_v42, %s4365_s29  ;;  %v507_v30 = vshrl.u32 %v265_v21, 16  ;;  %v446_v31 = vsel %vm4457_vm2, %v441_v18, %v445_v55  ;;  %v470_v32 = vor.u32 %v469_v20, %v465_v19  ;;  %v493_v33 = vshll.u32 %v264_v23, 16 }
  0x3b   : > { %665 = vrot.lane.b32.xlu0 %v386_v46, %s4365_s29  ;;  %v497_v34 = vshrl.u32 %v264_v23, 16  ;;  %v487_v35 = vshrl.u32 %v263_v17, 16  ;;  %v436_v36 = vsel %vm4457_vm2, %v431_v22, %v435_v60  ;;  %v460_v37 = vor.u32 %v459_v25, %v455_v16  ;;  %v268_v46 = vld [vmem:[%s4447_s28 + $0x64] sm:$0xf] }
  0x3c   : > { %v481_v38 = vrot.slane %v480_v26, 4  ;;  %v485_v39 = vrot.slane %v483_v27, 5  ;;  %v505_v41 = vrot.slane %v503_v29, 5  ;;  %v509_v42 = vrot.slane %v507_v30, 4  ;;  %v272_v27 = vld [vmem:[%s4447_s28 + $0x74] sm:$0xf] }
  0x3d   : > { %v471_v43 = vrot.slane %v470_v32, 4  ;;  %v495_v44 = vrot.slane %v493_v33, 5  ;;  %v499_v45 = vrot.slane %v497_v34, 4  ;;  %v461_v47 = vrot.slane %v460_v37, 4  ;;  %v273_v33 = vld [vmem:[%s4447_s28 + $0x78] sm:$0xf] }
  0x3e   : > { %v489_v49 = vrot.slane %v487_v35, 4  ;;  %v486_v50 = vsel %vm4457_vm2, %v481_v38, %v485_v39  ;;  %v510_v51 = vor.u32 %v509_v42, %v505_v41  ;;  %v513_v52 = vshll.u32 %v266_v40, 16 }
  0x3f   : > { %v533_v53 = vshll.u32 %v268_v46, 16  ;;  %v537_v54 = vshrl.u32 %v268_v46, 16  ;;  %v476_v55 = vsel %vm4457_vm2, %v471_v43, %v475_v13  ;;  %v500_v56 = vor.u32 %v499_v45, %v495_v44 }
  0x40   : > { %v523_v57 = vshll.u32 %v267_v48, 16  ;;  %v527_v58 = vshrl.u32 %v267_v48, 16  ;;  %v517_v59 = vshrl.u32 %v266_v40, 16  ;;  %v466_v60 = vsel %vm4457_vm2, %v461_v47, %v465_v19 }
  0x41   : > { %669 = vrot.lane.b32.xlu2 %v406_v11, %s4365_s29  ;;  %v490_v61 = vor.u32 %v489_v49, %v485_v39  ;;  %v511_v62 = vrot.slane %v510_v51, 4  ;;  %v515_v63 = vrot.slane %v513_v52, 5  ;;  %v535_v0 = vrot.slane %v533_v53, 5  ;;  %v275_v49 = vld [vmem:[%s4447_s28 + $0x80] sm:$0xf] }
  0x42   : > { %673 = vrot.lane.b32.xlu1 %v426_v3, %s4365_s29  ;;  %v539_v1 = vrot.slane %v537_v54, 4  ;;  %v501_v3 = vrot.slane %v500_v56, 4  ;;  %v525_v5 = vrot.slane %v523_v57, 5  ;;  %v519_v9 = vrot.slane %v517_v59, 4  ;;  %v277_v52 = vld [vmem:[%s4447_s28 + $0x88] sm:$0xf] }
  0x43   : > { %671 = vrot.lane.b32.xlu0 %v416_v6, %s4365_s29  ;;  %v529_v6 = vrot.slane %v527_v58, 4  ;;  %v491_v7 = vrot.slane %v490_v61, 4  ;;  %v563_v10 = vshll.u32 %v271_v2, 16  ;;  %v567_v11 = vshrl.u32 %v271_v2, 16  ;;  %v276_v56 = vld [vmem:[%s4447_s28 + $0x84] sm:$0xf] }
  0x44   : > { %v516_v12 = vsel %vm4457_vm2, %v511_v62, %v515_v63  ;;  %v540_v13 = vor.u32 %v539_v1, %v535_v0  ;;  %v543_v14 = vshll.u32 %v269_v4, 16  ;;  %v506_v15 = vsel %vm4457_vm2, %v501_v3, %v505_v41 }
  0x45   : > { %v530_v16 = vor.u32 %v529_v6, %v525_v5  ;;  %v553_v17 = vshll.u32 %v270_v8, 16  ;;  %v557_v18 = vshrl.u32 %v270_v8, 16  ;;  %v547_v19 = vshrl.u32 %v269_v4, 16 }
  0x46   : > { %v496_v20 = vsel %vm4457_vm2, %v491_v7, %v495_v44  ;;  %v520_v21 = vor.u32 %v519_v9, %v515_v63  ;;  %v565_v22 = vrot.slane %v563_v10, 5  ;;  %v569_v23 = vrot.slane %v567_v11, 4  ;;  %v278_v11 = vld [vmem:[%s4447_s28 + $0x8c] sm:$0xf] }
  0x47   : > { %v541_v25 = vrot.slane %v540_v13, 4  ;;  %v545_v26 = vrot.slane %v543_v14, 5  ;;  %v555_v29 = vrot.slane %v553_v17, 5  ;;  %v559_v30 = vrot.slane %v557_v18, 4 }
  0x48   : > { %v521_v32 = vrot.slane %v520_v21, 4  ;;  %v549_v34 = vrot.slane %v547_v19, 4  ;;  %v570_v35 = vor.u32 %v569_v23, %v565_v22  ;;  %v583_v42 = vshll.u32 %v273_v33, 16 }
  0x49   : > { %675 = vrot.lane.b32.xlu2 %v436_v36, %s4365_s29  ;;  %v573_v36 = vshll.u32 %v272_v27, 16  ;;  %v546_v37 = vsel %vm4457_vm2, %v541_v25, %v545_v26  ;;  %v560_v41 = vor.u32 %v559_v30, %v555_v29  ;;  %v587_v43 = vshrl.u32 %v273_v33, 16  ;;  %v174_v30 = vld [vmem:[%s4447_s28 + $0x10] sm:$0xf] }
  0x4a   : > { %679 = vrot.lane.b32.xlu1 %v456_v28, %s4365_s29  ;;  %v531_v28 = vrot.slane %v530_v16, 4  ;;  %v577_v44 = vshrl.u32 %v272_v27, 16  ;;  %v526_v45 = vsel %vm4457_vm2, %v521_v32, %v525_v5  ;;  %v550_v46 = vor.u32 %v549_v34, %v545_v26  ;;  %211 = vst.msk [vmem:[#allocation2 + $0x10] sm:$0xf] %vm206_vm3, %v174_v30  ;;  %v170_v32 = vld [vmem:[%s4447_s28] sm:$0xf] }
  0x4b   : > { %677 = vrot.lane.b32.xlu0 %v446_v31, %s4365_s29  ;;  %v274_v31 = vld [vmem:[%s4447_s28 + $0x7c] sm:$0xf]  ;;  %v571_v47 = vrot.slane %v570_v35, 4  ;;  %v575_v48 = vrot.slane %v573_v36, 5  ;;  %v561_v53 = vrot.slane %v560_v41, 4  ;;  %v585_v54 = vrot.slane %v583_v42, 5 }
  0x4c   : > { %v593_v38 = vshll.u32 %v274_v31, 16  ;;  %v597_v39 = vshrl.u32 %v274_v31, 16  ;;  %v536_v40 = vsel %vm4457_vm2, %v531_v28, %v535_v0  ;;  %v551_v57 = vrot.slane %v550_v46, 4  ;;  %v172_v31 = vld [vmem:[%s4447_s28 + $0x8] sm:$0xf] }
  0x4d   : > { %v579_v58 = vrot.slane %v577_v44, 4  ;;  %v576_v59 = vsel %vm4457_vm2, %v571_v47, %v575_v48  ;;  %v627_v61 = vshrl.u32 %v277_v52, 16  ;;  %v603_v63 = vshll.u32 %v275_v49, 16  ;;  %209 = vst.msk [vmem:[#allocation2 + $0x8] sm:$0xf] %vm206_vm3, %v172_v31 }
  0x4e   : > { %v599_v51 = vrot.slane %v597_v39, 4  ;;  %v613_v0 = vshll.u32 %v276_v56, 16  ;;  %v617_v1 = vshrl.u32 %v276_v56, 16  ;;  %v566_v2 = vsel %vm4457_vm2, %v561_v53, %v565_v22  ;;  %v279_v36 = vld [vmem:[%s4447_s28 + $0x90] sm:$0x1] }
  0x4f   : > { %v607_v4 = vshrl.u32 %v275_v49, 16  ;;  %v556_v5 = vsel %vm4457_vm2, %v551_v57, %v555_v29  ;;  %v580_v6 = vor.u32 %v579_v58, %v575_v48  ;;  %v629_v8 = vrot.slane %v627_v61, 4  ;;  %v793_v29 = vld [vmem:[%s4447_s28 + $0x4] sm:$0xf]  ;;  %207 = vst.msk [vmem:[#allocation2] sm:$0xf] %vm206_vm3, %v170_v32 }
  0x50   : > { %v605_v10 = vrot.slane %v603_v63, 5  ;;  %v619_v13 = vrot.slane %v617_v1, 4  ;;  %v633_v18 = vshll.u32 %v278_v11, 16  ;;  %v637_v22 = vshrl.u32 %v278_v11, 16  ;;  %v792_v39 = vld [vmem:[%s4447_s28] sm:$0xe] }
  0x51   : > { %681 = vrot.lane.b32.xlu2 %v466_v60, %s4365_s29  ;;  %v623_v60 = vshll.u32 %v277_v52, 16  ;;  %v609_v16 = vrot.slane %v607_v4, 4  ;;  %v871_v35 = vrot.slane %v793_v29, 5  ;;  %v4098_v46 = vrot.slane %v792_v39, 9  ;;  %v796_v47 = vld [vmem:[%s4447_s28 + $0x10] sm:$0xf] }
  0x52   : > { %685 = vrot.lane.b32.xlu1 %v486_v50, %s4365_s29  ;;  %v595_v50 = vrot.slane %v593_v38, 5  ;;  %v635_v27 = vrot.slane %v633_v18, 5  ;;  %v639_v34 = vrot.slane %v637_v22, 4  ;;  %v794_v38 = vld [vmem:[%s4447_s28 + $0x8] sm:$0xf] }
  0x53   : > { %683 = vrot.lane.b32.xlu0 %v476_v55, %s4365_s29  ;;  %v589_v55 = vrot.slane %v587_v43, 4  ;;  %v625_v7 = vrot.slane %v623_v60, 5  ;;  %v610_v25 = vor.u32 %v609_v16, %v605_v10  ;;  %v643_v43 = vshll.u32 %v279_v36, 16  ;;  %v795_v48 = vld [vmem:[%s4447_s28 + $0xc] sm:$0xf] }
  0x54   : > { %v600_v62 = vor.u32 %v599_v51, %v595_v50  ;;  %v640_v42 = vor.u32 %v639_v34, %v635_v27  ;;  %v873_v44 = vrot.slane %v871_v35, 4  ;;  %v175_v49 = vld [vmem:[%s4447_s28 + $0x14] sm:$0xf]  ;;  %v173_v51 = vld [vmem:[%s4447_s28 + $0xc] sm:$0xf]  ;;  %v877_v58 = vrot.slane %v795_v48, 5 }
  0x55   : > { %v590_v3 = vor.u32 %v589_v55, %v585_v54  ;;  %v630_v17 = vor.u32 %v629_v8, %v625_v7  ;;  %v611_v33 = vrot.slane %v610_v25, 4  ;;  %212 = vst.msk [vmem:[#allocation2 + $0x14] sm:$0xf] %vm206_vm3, %v175_v49  ;;  %v171_v52 = vld [vmem:[%s4447_s28 + $0x4] sm:$0xf]  ;;  %v880_v55 = vrot.slane %v796_v47, 5 }
  0x56   : > { %v601_v9 = vrot.slane %v600_v62, 4  ;;  %v641_v53 = vrot.slane %v640_v42, 4  ;;  %210 = vst.msk [vmem:[#allocation2 + $0xc] sm:$0xf] %vm206_vm3, %v173_v51  ;;  %v797_v57 = vld [vmem:[%s4447_s28 + $0x14] sm:$0xf] }
  0x57   : > { %v591_v14 = vrot.slane %v590_v3, 4  ;;  %v631_v26 = vrot.slane %v630_v17, 4  ;;  %208 = vst.msk [vmem:[#allocation2 + $0x4] sm:$0xf] %vm206_vm3, %v171_v52  ;;  %v882_v61 = vrot.slane %v880_v55, 4  ;;  %v883_v62 = vrot.slane %v797_v57, 5 }
  0x58   : > { %v606_v19 = vsel %vm4457_vm2, %v601_v9, %v605_v10  ;;  %v799_v63 = vld [vmem:[%s4447_s28 + $0x1c] sm:$0xf]  ;;  %v798_v1 = vld [vmem:[%s4447_s28 + $0x18] sm:$0xf]  ;;  %v800_v9 = vld [vmem:[%s4447_s28 + $0x20] sm:$0xf] }
  0x59   : > { %687 = vrot.lane.b32.xlu2 %v496_v20, %s4365_s29  ;;  %v596_v21 = vsel %vm4457_vm2, %v591_v14, %v595_v50  ;;  %v177_v3 = vld [vmem:[%s4447_s28 + $0x1c] sm:$0xf]  ;;  %v884_v8 = vsel %vm4608_vm6, %v882_v61, %v883_v62  ;;  %v801_v16 = vld [vmem:[%s4447_s28 + $0x24] sm:$0xf]  ;;  %v181_v17 = vld [vmem:[%s4447_s28 + $0x2c] sm:$0xf] }
  0x5a   : > { %691 = vrot.lane.b32.xlu1 %v516_v12, %s4365_s29  ;;  %v615_v12 = vrot.slane %v613_v0, 5  ;;  %v879_v0 = vrot.slane %v877_v58, 4  ;;  %214 = vst.msk [vmem:[#allocation2 + $0x1c] sm:$0xf] %vm206_vm3, %v177_v3  ;;  %v180_v18 = vld [vmem:[%s4447_s28 + $0x28] sm:$0xf] }
  0x5b   : > { %689 = vrot.lane.b32.xlu0 %v506_v15, %s4365_s29  ;;  %v581_v15 = vrot.slane %v580_v6, 4  ;;  %v886_v6 = vrot.slane %v798_v1, 5  ;;  %218 = vst.msk [vmem:[#allocation2 + $0x2c] sm:$0xf] %vm206_vm3, %v181_v17  ;;  %v895_v25 = vrot.slane %v801_v16, 5 }
  0x5c   : > { %v620_v20 = vor.u32 %v619_v13, %v615_v12  ;;  %v616_v41 = vsel %vm4457_vm2, %v611_v33, %v615_v12  ;;  %v881_v10 = vsel %vm4608_vm6, %v879_v0, %v880_v55  ;;  %v892_v13 = vrot.slane %v800_v9, 5  ;;  %217 = vst.msk [vmem:[#allocation2 + $0x28] sm:$0xf] %vm206_vm3, %v180_v18  ;;  %v184_v32 = vld [vmem:[%s4447_s28 + $0x38] sm:$0xf] }
  0x5d   : > { %v586_v23 = vsel %vm4457_vm2, %v581_v15, %v585_v54  ;;  %v645_v54 = vrot.slane %v643_v43, 5  ;;  %v888_v14 = vrot.slane %v886_v6, 4  ;;  %v802_v15 = vld [vmem:[%s4447_s28 + $0x28] sm:$0xf]  ;;  %v897_v31 = vrot.slane %v895_v25, 4 }
  0x5e   : > { %v621_v28 = vrot.slane %v620_v20, 4  ;;  %v885_v20 = vrot.slane %v883_v62, 4  ;;  %v805_v34 = vld [vmem:[%s4447_s28 + $0x34] sm:$0xf]  ;;  %221 = vst.msk [vmem:[#allocation2 + $0x38] sm:$0xf] %vm206_vm3, %v184_v32 }
  0x5f   : > { %v646_v60 = vsel %vm4457_vm2, %v641_v53, %v645_v54  ;;  %v907_v42 = vrot.slane %v805_v34, 5  ;;  %v187_v51 = vld [vmem:[%s4447_s28 + $0x44] sm:$0xf]  ;;  %v808_v53 = vld [vmem:[%s4447_s28 + $0x40] sm:$0xf] }
  0x60   : > { %v807_v54 = vld [vmem:[%s4447_s28 + $0x3c] sm:$0xf]  ;;  %224 = vst.msk [vmem:[#allocation2 + $0x44] sm:$0xf] %vm206_vm3, %v187_v51  ;;  %v186_v57 = vld [vmem:[%s4447_s28 + $0x40] sm:$0xf] }
  0x61   : > { %693 = vrot.lane.b32.xlu2 %v526_v45, %s4365_s29  ;;  %v874_v45 = vrot.slane %v794_v38, 5  ;;  %v183_v38 = vld [vmem:[%s4447_s28 + $0x34] sm:$0xf]  ;;  %v909_v47 = vrot.slane %v907_v42, 4  ;;  %v916_v61 = vrot.slane %v808_v53, 5  ;;  %v913_v62 = vrot.slane %v807_v54, 5 }
  0x62   : > { %697 = vrot.lane.b32.xlu1 %v546_v37, %s4365_s29  ;;  %v636_v37 = vsel %vm4457_vm2, %v631_v26, %v635_v27  ;;  %v803_v27 = vld [vmem:[%s4447_s28 + $0x2c] sm:$0xf]  ;;  %220 = vst.msk [vmem:[#allocation2 + $0x34] sm:$0xf] %vm206_vm3, %v183_v38  ;;  %v809_v0 = vld [vmem:[%s4447_s28 + $0x44] sm:$0xf] }
  0x63   : > { %695 = vrot.lane.b32.xlu0 %v536_v40, %s4365_s29  ;;  %v626_v40 = vsel %vm4457_vm2, %v621_v28, %v625_v7  ;;  %v875_v56 = vsel %vm4608_vm6, %v873_v44, %v874_v45  ;;  %v876_v4 = vrot.slane %v874_v45, 4  ;;  %v887_v28 = vsel %vm4608_vm6, %v885_v20, %v886_v6  ;;  %v806_v45 = vld [vmem:[%s4447_s28 + $0x38] sm:$0xf]  ;;  %223 = vst.msk [vmem:[#allocation2 + $0x40] sm:$0xf] %vm206_vm3, %v186_v57 }
  0x64   : > { %v901_v30 = vrot.slane %v803_v27, 5  ;;  %v910_v48 = vrot.slane %v806_v45, 5  ;;  %v919_v3 = vrot.slane %v809_v0, 5  ;;  %v915_v24 = vrot.slane %v913_v62, 4  ;;  %v811_v6 = vld [vmem:[%s4447_s28 + $0x4c] sm:$0xf] }
  0x65   : > { %v878_v11 = vsel %vm4608_vm6, %v876_v4, %v877_v58  ;;  %v190_v4 = vld [vmem:[%s4447_s28 + $0x50] sm:$0xf]  ;;  %vm2700_vm2 = vsmask.f32 1280 }
  0x66   : > { %227 = vst.msk [vmem:[#allocation2 + $0x50] sm:$0xf] %vm206_vm3, %v190_v4  ;;  %v912_v9 = vrot.slane %v910_v48, 4  ;;  %v917_v16 = vsel %vm4608_vm6, %v915_v24, %v916_v61  ;;  %v812_v17 = vld [vmem:[%s4447_s28 + $0x50] sm:$0xf] }
  0x67   : > { %v928_v20 = vrot.slane %v812_v17, 5  ;;  %v197_v24 = vld [vmem:[%s4447_s28 + $0x6c] sm:$0xf] }
  0x68   : > { %v914_v18 = vsel %vm4608_vm6, %v912_v9, %v913_v62  ;;  %v820_v62 = vld [vmem:[%s4447_s28 + $0x70] sm:$0xf]  ;;  %234 = vst.msk [vmem:[#allocation2 + $0x6c] sm:$0xf] %vm206_vm3, %v197_v24 }
  0x69   : > { %699 = vrot.lane.b32.xlu2 %v556_v5, %s4365_s29  ;;  %v889_v5 = vrot.slane %v799_v63, 5 }
  0x6a   : > { %703 = vrot.lane.b32.xlu1 %v576_v59, %s4365_s29  ;;  %v872_v59 = vsel %vm4608_vm6, %v4098_v46, %v871_v35  ;;  %v804_v35 = vld [vmem:[%s4447_s28 + $0x30] sm:$0xf] }
  0x6b   : > { %701 = vrot.lane.b32.xlu0 %v566_v2, %s4365_s29  ;;  %v178_v2 = vld [vmem:[%s4447_s28 + $0x20] sm:$0xf]  ;;  %v891_v12 = vrot.slane %v889_v5, 4  ;;  %v890_v26 = vsel %vm4608_vm6, %v888_v14, %v889_v5  ;;  %v904_v43 = vrot.slane %v804_v35, 5  ;;  %v925_v14 = vrot.slane %v811_v6, 5 }
  0x6c   : > { %215 = vst.msk [vmem:[#allocation2 + $0x20] sm:$0xf] %vm206_vm3, %v178_v2  ;;  %v918_v2 = vrot.slane %v916_v61, 4 }
  0x6d   : > { %v893_v22 = vsel %vm4608_vm6, %v891_v12, %v892_v13  ;;  %v906_v49 = vrot.slane %v904_v43, 4  ;;  %v188_v12 = vld [vmem:[%s4447_s28 + $0x48] sm:$0xf] }
  0x6e   : > { %225 = vst.msk [vmem:[#allocation2 + $0x48] sm:$0xf] %vm206_vm3, %v188_v12 }
  0x6f   : > { %v908_v63 = vsel %vm4608_vm6, %v906_v49, %v907_v42  ;;  %v194_v49 = vld [vmem:[%s4447_s28 + $0x60] sm:$0xf] }
  0x70   : > { %231 = vst.msk [vmem:[#allocation2 + $0x60] sm:$0xf] %vm206_vm3, %v194_v49 }
  0x71   : > { %705 = vrot.lane.b32.xlu2 %v586_v23, %s4365_s29  ;;  %v898_v23 = vrot.slane %v802_v15, 5 }
  0x72   : > { %709 = vrot.lane.b32.xlu1 %v606_v19, %s4365_s29  ;;  %v179_v19 = vld [vmem:[%s4447_s28 + $0x24] sm:$0xf] }
  0x73   : > { %707 = vrot.lane.b32.xlu0 %v596_v21, %s4365_s29  ;;  %216 = vst.msk [vmem:[#allocation2 + $0x24] sm:$0xf] %vm206_vm3, %v179_v19  ;;  %v900_v29 = vrot.slane %v898_v23, 4  ;;  %v899_v44 = vsel %vm4608_vm6, %v897_v31, %v898_v23  ;;  %v927_v19 = vrot.slane %v925_v14, 4  ;;  %v191_v31 = vld [vmem:[%s4447_s28 + $0x54] sm:$0xf] }
  0x74   : > { %228 = vst.msk [vmem:[#allocation2 + $0x54] sm:$0xf] %vm206_vm3, %v191_v31 }
  0x75   : > { %v929_v32 = vsel %vm4608_vm6, %v927_v19, %v928_v20  ;;  %v201_v19 = vld [vmem:[%s4447_s28 + $0x7c] sm:$0xf] }
  0x76   : > { %238 = vst.msk [vmem:[#allocation2 + $0x7c] sm:$0xf] %vm206_vm3, %v201_v19 }
  0x79   : > { %711 = vrot.lane.b32.xlu2 %v616_v41, %s4365_s29  ;;  %v902_v41 = vsel %vm4608_vm6, %v900_v29, %v901_v30  ;;  %v192_v29 = vld [vmem:[%s4447_s28 + $0x58] sm:$0xf] }
  0x7a   : > { %715 = vrot.lane.b32.xlu1 %v636_v37, %s4365_s29  ;;  %v894_v37 = vrot.slane %v892_v13, 4  ;;  %v920_v13 = vsel %vm4608_vm6, %v918_v2, %v919_v3  ;;  %229 = vst.msk [vmem:[#allocation2 + $0x58] sm:$0xf] %vm206_vm3, %v192_v29  ;;  %v198_v2 = vld [vmem:[%s4447_s28 + $0x70] sm:$0xf] }
  0x7b   : > { %713 = vrot.lane.b32.xlu0 %v626_v40, %s4365_s29  ;;  %v182_v40 = vld [vmem:[%s4447_s28 + $0x30] sm:$0xf]  ;;  %235 = vst.msk [vmem:[#allocation2 + $0x70] sm:$0xf] %vm206_vm3, %v198_v2 }
  0x7c   : > { %v896_v46 = vsel %vm4608_vm6, %v894_v37, %v895_v25  ;;  %219 = vst.msk [vmem:[#allocation2 + $0x30] sm:$0xf] %vm206_vm3, %v182_v40  ;;  %v814_v25 = vld [vmem:[%s4447_s28 + $0x58] sm:$0xf] }
  0x81   : > { %717 = vrot.lane.b32.xlu2 %v646_v60, %s4365_s29  ;;  %v911_v60 = vsel %vm4608_vm6, %v909_v47, %v910_v48  ;;  %v195_v47 = vld [vmem:[%s4447_s28 + $0x64] sm:$0xf] }
  0x82   : > { %980 = vrot.lane.b32.xlu1 %v875_v56, %s4366_s30  ;;  %v903_v56 = vrot.slane %v901_v30, 4  ;;  %232 = vst.msk [vmem:[#allocation2 + $0x64] sm:$0xf] %vm206_vm3, %v195_v47 }
  0x83   : > { %978 = vrot.lane.b32.xlu0 %v872_v59, %s4366_s30  ;;  %v656_v7 = vpop.permute.xlu2 %655  ;;  %v185_v59 = vld [vmem:[%s4447_s28 + $0x3c] sm:$0xf] }
  0x84   : > { %760 = vst.msk [vmem:[#allocation2 + $0x10] sm:$0xf] %vm755_vm7, %v656_v7  ;;  %v905_v1 = vsel %vm4608_vm6, %v903_v56, %v904_v43  ;;  %v810_v7 = vld [vmem:[%s4447_s28 + $0x48] sm:$0xf]  ;;  %v817_v43 = vld [vmem:[%s4447_s28 + $0x64] sm:$0xf] }
  0x85   : > { %222 = vst.msk [vmem:[#allocation2 + $0x3c] sm:$0xf] %vm206_vm3, %v185_v59  ;;  %v922_v15 = vrot.slane %v810_v7, 5 }
  0x89   : > { %982 = vrot.lane.b32.xlu2 %v878_v11, %s4366_s30 }
  0x8a   : > { %986 = vrot.lane.b32.xlu1 %v884_v8, %s4366_s30 }
  0x8b   : > { %984 = vrot.lane.b32.xlu0 %v881_v10, %s4366_s30  ;;  %v658_v21 = vpop.permute.xlu2 %657  ;;  %v189_v10 = vld [vmem:[%s4447_s28 + $0x4c] sm:$0xf] }
  0x8c   : > { %761 = vst.msk [vmem:[#allocation2 + $0x14] sm:$0xf] %vm755_vm7, %v658_v21  ;;  %v924_v21 = vrot.slane %v922_v15, 4 }
  0x8d   : > { %226 = vst.msk [vmem:[#allocation2 + $0x4c] sm:$0xf] %vm206_vm3, %v189_v10 }
  0x8e   : > { %v926_v35 = vsel %vm4608_vm6, %v924_v21, %v925_v14  ;;  %v200_v21 = vld [vmem:[%s4447_s28 + $0x78] sm:$0xf] }
  0x8f   : > { %237 = vst.msk [vmem:[#allocation2 + $0x78] sm:$0xf] %vm206_vm3, %v200_v21 }
  0x91   : > { %988 = vrot.lane.b32.xlu2 %v887_v28, %s4366_s30  ;;  %v921_v28 = vrot.slane %v919_v3, 4 }
  0x92   : > { %992 = vrot.lane.b32.xlu1 %v893_v22, %s4366_s30  ;;  %v193_v22 = vld [vmem:[%s4447_s28 + $0x5c] sm:$0xf] }
  0x93   : > { %990 = vrot.lane.b32.xlu0 %v890_v26, %s4366_s30  ;;  %v664_v39 = vpop.permute.xlu2 %663  ;;  %v813_v26 = vld [vmem:[%s4447_s28 + $0x54] sm:$0xf]  ;;  %230 = vst.msk [vmem:[#allocation2 + $0x5c] sm:$0xf] %vm206_vm3, %v193_v22  ;;  %v923_v37 = vsel %vm4608_vm6, %v921_v28, %v922_v15  ;;  %v823_v15 = vld [vmem:[%s4447_s28 + $0x7c] sm:$0xf] }
  0x94   : > { %v652_v33 = vpop.permute.xlu1 %651  ;;  %764 = vst.msk [vmem:[#allocation2 + $0x20] sm:$0xf] %vm755_vm7, %v664_v39  ;;  %v931_v34 = vrot.slane %v813_v26, 5 }
  0x95   : > { %758 = vst.msk [vmem:[#allocation2 + $0x8] sm:$0xf] %vm755_vm7, %v652_v33  ;;  %v648_v36 = vpop.permute.xlu0 %647  ;;  %v934_v33 = vrot.slane %v814_v25, 5 }
  0x96   : > { %756 = vst.msk [vmem:[#allocation2] sm:$0xf] %vm755_vm7, %v648_v36  ;;  %v815_v36 = vld [vmem:[%s4447_s28 + $0x5c] sm:$0xf]  ;;  %v933_v40 = vrot.slane %v931_v34, 4 }
  0x97   : > { %v936_v38 = vrot.slane %v934_v33, 4  ;;  %v937_v39 = vrot.slane %v815_v36, 5 }
  0x98   : > { %v935_v54 = vsel %vm4608_vm6, %v933_v40, %v934_v33  ;;  %v203_v40 = vld [vmem:[%s4447_s28 + $0x84] sm:$0xf] }
  0x99   : > { %994 = vrot.lane.b32.xlu2 %v896_v46, %s4366_s30  ;;  %v930_v46 = vrot.slane %v928_v20, 4  ;;  %v938_v51 = vsel %vm4608_vm6, %v936_v38, %v937_v39  ;;  %v204_v38 = vld [vmem:[%s4447_s28 + $0x88] sm:$0xf]  ;;  %240 = vst.msk [vmem:[#allocation2 + $0x84] sm:$0xf] %vm206_vm3, %v203_v40 }
  0x9a   : > { %998 = vrot.lane.b32.xlu1 %v902_v41, %s4366_s30  ;;  %v196_v41 = vld [vmem:[%s4447_s28 + $0x68] sm:$0xf]  ;;  %241 = vst.msk [vmem:[#allocation2 + $0x88] sm:$0xf] %vm206_vm3, %v204_v38 }
  0x9b   : > { %996 = vrot.lane.b32.xlu0 %v899_v44, %s4366_s30  ;;  %v670_v58 = vpop.permute.xlu2 %669  ;;  %v816_v44 = vld [vmem:[%s4447_s28 + $0x60] sm:$0xf]  ;;  %233 = vst.msk [vmem:[#allocation2 + $0x68] sm:$0xf] %vm206_vm3, %v196_v41  ;;  %v932_v56 = vsel %vm4608_vm6, %v930_v46, %v931_v34  ;;  %v826_v34 = vld [vmem:[%s4447_s28 + $0x88] sm:$0xf] }
  0x9c   : > { %v654_v52 = vpop.permute.xlu1 %653  ;;  %767 = vst.msk [vmem:[#allocation2 + $0x2c] sm:$0xf] %vm755_vm7, %v670_v58  ;;  %v940_v53 = vrot.slane %v816_v44, 5  ;;  %v827_v44 = vld [vmem:[%s4447_s28 + $0x8c] sm:$0xf] }
  0x9d   : > { %759 = vst.msk [vmem:[#allocation2 + $0xc] sm:$0xf] %vm755_vm7, %v654_v52  ;;  %v650_v55 = vpop.permute.xlu0 %649  ;;  %v943_v52 = vrot.slane %v817_v43, 5 }
  0x9e   : > { %757 = vst.msk [vmem:[#allocation2 + $0x4] sm:$0xf] %vm755_vm7, %v650_v55  ;;  %v818_v55 = vld [vmem:[%s4447_s28 + $0x68] sm:$0xf]  ;;  %v942_v59 = vrot.slane %v940_v53, 4 }
  0x9f   : > { %v945_v57 = vrot.slane %v943_v52, 4  ;;  %v946_v58 = vrot.slane %v818_v55, 5 }
  0xa0   : > { %v944_v7 = vsel %vm4608_vm6, %v942_v59, %v943_v52  ;;  %v1124_v52 = vld [vmem:[%s4447_s28 + $0xc] sm:$0xf]  ;;  %v1125_v59 = vld [vmem:[%s4447_s28 + $0x10] sm:$0xf] }
  0xa1   : > { %1000 = vrot.lane.b32.xlu2 %v905_v1, %s4366_s30  ;;  %v939_v1 = vrot.slane %v937_v39, 4  ;;  %v947_v4 = vsel %vm4608_vm6, %v945_v57, %v946_v58  ;;  %v1199_v57 = vrot.slane %v1124_v52, 5  ;;  %v1135_v52 = vld [vmem:[%s4447_s28 + $0x38] sm:$0xf] }
  0xa2   : > { %1004 = vrot.lane.b32.xlu1 %v911_v60, %s4366_s30  ;;  %v199_v60 = vld [vmem:[%s4447_s28 + $0x74] sm:$0xf] }
  0xa3   : > { %1002 = vrot.lane.b32.xlu0 %v908_v63, %s4366_s30  ;;  %v676_v11 = vpop.permute.xlu2 %675  ;;  %v819_v63 = vld [vmem:[%s4447_s28 + $0x6c] sm:$0xf]  ;;  %236 = vst.msk [vmem:[#allocation2 + $0x74] sm:$0xf] %vm206_vm3, %v199_v60  ;;  %v941_v9 = vsel %vm4608_vm6, %v939_v1, %v940_v53  ;;  %v1123_v60 = vld [vmem:[%s4447_s28 + $0x8] sm:$0xe] }
  0xa4   : > { %v662_v5 = vpop.permute.xlu1 %661  ;;  %770 = vst.msk [vmem:[#allocation2 + $0x38] sm:$0xf] %vm755_vm7, %v676_v11  ;;  %v949_v6 = vrot.slane %v819_v63, 5  ;;  %v1201_v63 = vrot.slane %v1199_v57, 4  ;;  %v4099_v2 = vrot.slane %v1123_v60, 9 }
  0xa5   : > { %763 = vst.msk [vmem:[#allocation2 + $0x1c] sm:$0xf] %vm755_vm7, %v662_v5  ;;  %v660_v8 = vpop.permute.xlu0 %659  ;;  %v952_v5 = vrot.slane %v820_v62, 5  ;;  %v828_v62 = vld [vmem:[%s4447_s28 + $0x90] sm:$0x1] }
  0xa6   : > { %762 = vst.msk [vmem:[#allocation2 + $0x18] sm:$0xf] %vm755_vm7, %v660_v8  ;;  %v821_v8 = vld [vmem:[%s4447_s28 + $0x74] sm:$0xf]  ;;  %v951_v12 = vrot.slane %v949_v6, 4 }
  0xa7   : > { %v954_v10 = vrot.slane %v952_v5, 4  ;;  %v955_v11 = vrot.slane %v821_v8, 5 }
  0xa8   : > { %v953_v26 = vsel %vm4608_vm6, %v951_v12, %v952_v5 }
  0xa9   : > { %1006 = vrot.lane.b32.xlu2 %v914_v18, %s4366_s30  ;;  %v948_v18 = vrot.slane %v946_v58, 4  ;;  %v956_v22 = vsel %vm4608_vm6, %v954_v10, %v955_v11  ;;  %v1200_v10 = vsel %vm4608_vm6, %v4099_v2, %v1199_v57 }
  0xaa   : > { %1010 = vrot.lane.b32.xlu1 %v920_v13, %s4366_s30  ;;  %v202_v13 = vld [vmem:[%s4447_s28 + $0x80] sm:$0xf] }
  0xab   : > { %1008 = vrot.lane.b32.xlu0 %v917_v16, %s4366_s30  ;;  %v682_v30 = vpop.permute.xlu2 %681  ;;  %v822_v16 = vld [vmem:[%s4447_s28 + $0x78] sm:$0xf]  ;;  %239 = vst.msk [vmem:[#allocation2 + $0x80] sm:$0xf] %vm206_vm3, %v202_v13  ;;  %v950_v28 = vsel %vm4608_vm6, %v948_v18, %v949_v6  ;;  %v976_v6 = vrot.slane %v828_v62, 5 }
  0xac   : > { %v668_v23 = vpop.permute.xlu1 %667  ;;  %773 = vst.msk [vmem:[#allocation2 + $0x44] sm:$0xf] %vm755_vm7, %v682_v30  ;;  %v958_v25 = vrot.slane %v822_v16, 5  ;;  %v1130_v18 = vld [vmem:[%s4447_s28 + $0x24] sm:$0xf] }
  0xad   : > { %766 = vst.msk [vmem:[#allocation2 + $0x28] sm:$0xf] %vm755_vm7, %v668_v23  ;;  %v666_v27 = vpop.permute.xlu0 %665  ;;  %v961_v23 = vrot.slane %v823_v15, 5 }
  0xae   : > { %765 = vst.msk [vmem:[#allocation2 + $0x24] sm:$0xf] %vm755_vm7, %v666_v27  ;;  %v824_v27 = vld [vmem:[%s4447_s28 + $0x80] sm:$0xf]  ;;  %v960_v31 = vrot.slane %v958_v25, 4 }
  0xaf   : > { %v963_v29 = vrot.slane %v961_v23, 4  ;;  %v964_v30 = vrot.slane %v824_v27, 5  ;;  %v1131_v27 = vld [vmem:[%s4447_s28 + $0x28] sm:$0xf] }
  0xb0   : > { %v962_v43 = vsel %vm4608_vm6, %v960_v31, %v961_v23  ;;  %v1220_v31 = vrot.slane %v1131_v27, 5 }
  0xb1   : > { %1012 = vrot.lane.b32.xlu2 %v923_v37, %s4366_s30  ;;  %v957_v37 = vrot.slane %v955_v11, 4  ;;  %v965_v41 = vsel %vm4608_vm6, %v963_v29, %v964_v30  ;;  %v1128_v11 = vld [vmem:[%s4447_s28 + $0x1c] sm:$0xf] }
  0xb2   : > { %1016 = vrot.lane.b32.xlu1 %v929_v32, %s4366_s30  ;;  %v205_v32 = vld [vmem:[%s4447_s28 + $0x8c] sm:$0xf]  ;;  %v1211_v15 = vrot.slane %v1128_v11, 5 }
  0xb3   : > { %1014 = vrot.lane.b32.xlu0 %v926_v35, %s4366_s30  ;;  %v688_v48 = vpop.permute.xlu2 %687  ;;  %v825_v35 = vld [vmem:[%s4447_s28 + $0x84] sm:$0xf]  ;;  %242 = vst.msk [vmem:[#allocation2 + $0x8c] sm:$0xf] %vm206_vm3, %v205_v32  ;;  %v959_v46 = vsel %vm4608_vm6, %v957_v37, %v958_v25  ;;  %v1217_v25 = vrot.slane %v1130_v18, 5 }
  0xb4   : > { %v674_v42 = vpop.permute.xlu1 %673  ;;  %776 = vst.msk [vmem:[#allocation2 + $0x50] sm:$0xf] %vm755_vm7, %v688_v48  ;;  %v973_v48 = vrot.slane %v827_v44, 5  ;;  %v1213_v37 = vrot.slane %v1211_v15, 4  ;;  %vm2701_vm3 = vsmask.f32 5392 }
  0xb5   : > { %769 = vst.msk [vmem:[#allocation2 + $0x34] sm:$0xf] %vm755_vm7, %v674_v42  ;;  %v672_v45 = vpop.permute.xlu0 %671  ;;  %v970_v42 = vrot.slane %v826_v34, 5  ;;  %v1133_v34 = vld [vmem:[%s4447_s28 + $0x30] sm:$0xf]  ;;  %vm5534_vm4 = vmor %vm2700_vm2, %vm2701_vm3 }
  0xb6   : > { %768 = vst.msk [vmem:[#allocation2 + $0x30] sm:$0xf] %vm755_vm7, %v672_v45  ;;  %v967_v45 = vrot.slane %v825_v35, 5  ;;  %v975_v5 = vrot.slane %v973_v48, 4  ;;  %v1226_v40 = vrot.slane %v1133_v34, 5 }
  0xb7   : > { %v972_v47 = vrot.slane %v970_v42, 4 }
  0xb8   : > { %v977_v13 = vsel %vm4608_vm6, %v975_v5, %v976_v6 }
  0xb9   : > { %1018 = vrot.lane.b32.xlu2 %v932_v56, %s4366_s30  ;;  %v974_v56 = vsel %vm4608_vm6, %v972_v47, %v973_v48 }
  0xba   : > { %1022 = vrot.lane.b32.xlu1 %v938_v51, %s4366_s30  ;;  %v969_v51 = vrot.slane %v967_v45, 4 }
  0xbb   : > { %1020 = vrot.lane.b32.xlu0 %v935_v54, %s4366_s30  ;;  %v694_v3 = vpop.permute.xlu2 %693  ;;  %v966_v54 = vrot.slane %v964_v30, 4  ;;  %v1219_v30 = vrot.slane %v1217_v25, 4 }
  0xbc   : > { %v680_v61 = vpop.permute.xlu1 %679  ;;  %779 = vst.msk [vmem:[#allocation2 + $0x5c] sm:$0xf] %vm755_vm7, %v694_v3  ;;  %v971_v58 = vsel %vm4608_vm6, %v969_v51, %v970_v42  ;;  %v1127_v3 = vld [vmem:[%s4447_s28 + $0x18] sm:$0xf]  ;;  %v1134_v42 = vld [vmem:[%s4447_s28 + $0x34] sm:$0xf] }
  0xbd   : > { %772 = vst.msk [vmem:[#allocation2 + $0x40] sm:$0xf] %vm755_vm7, %v680_v61  ;;  %v678_v0 = vpop.permute.xlu0 %677  ;;  %v968_v61 = vsel %vm4608_vm6, %v966_v54, %v967_v45  ;;  %v1228_v45 = vrot.slane %v1226_v40, 4 }
  0xbe   : > { %771 = vst.msk [vmem:[#allocation2 + $0x3c] sm:$0xf] %vm755_vm7, %v678_v0  ;;  %v1202_v0 = vrot.slane %v1125_v59, 5  ;;  %v1232_v59 = vrot.slane %v1135_v52, 5 }
  0xc0   : > { %v1203_v8 = vsel %vm4608_vm6, %v1201_v63, %v1202_v0  ;;  %v1204_v21 = vrot.slane %v1202_v0, 4  ;;  %v1234_v0 = vrot.slane %v1232_v59, 4 }
  0xc1   : > { %1024 = vrot.lane.b32.xlu2 %v941_v9, %s4366_s30  ;;  %v1208_v9 = vrot.slane %v1127_v3, 5  ;;  %v1138_v3 = vld [vmem:[%s4447_s28 + $0x44] sm:$0xf] }
  0xc2   : > { %1028 = vrot.lane.b32.xlu1 %v947_v4, %s4366_s30  ;;  %v1126_v4 = vld [vmem:[%s4447_s28 + $0x14] sm:$0xf] }
  0xc3   : > { %1026 = vrot.lane.b32.xlu0 %v944_v7, %s4366_s30  ;;  %v700_v20 = vpop.permute.xlu2 %699  ;;  %v1205_v12 = vrot.slane %v1126_v4, 5 }
  0xc4   : > { %v686_v14 = vpop.permute.xlu1 %685  ;;  %782 = vst.msk [vmem:[#allocation2 + $0x68] sm:$0xf] %vm755_vm7, %v700_v20  ;;  %v1129_v20 = vld [vmem:[%s4447_s28 + $0x20] sm:$0xf] }
  0xc5   : > { %775 = vst.msk [vmem:[#allocation2 + $0x4c] sm:$0xf] %vm755_vm7, %v686_v14  ;;  %v684_v17 = vpop.permute.xlu0 %683  ;;  %v1210_v14 = vrot.slane %v1208_v9, 4  ;;  %v1206_v29 = vsel %vm4608_vm6, %v1204_v21, %v1205_v12 }
  0xc6   : > { %774 = vst.msk [vmem:[#allocation2 + $0x48] sm:$0xf] %vm755_vm7, %v684_v17  ;;  %v1207_v17 = vrot.slane %v1205_v12, 4 }
  0xc7   : > { %v1212_v23 = vsel %vm4608_vm6, %v1210_v14, %v1211_v15  ;;  %v1142_v15 = vld [vmem:[%s4447_s28 + $0x54] sm:$0xf] }
  0xc8   : > { %v1253_v21 = vrot.slane %v1142_v15, 5 }
  0xc9   : > { %1030 = vrot.lane.b32.xlu2 %v950_v28, %s4366_s30  ;;  %v1214_v28 = vrot.slane %v1129_v20, 5 }
  0xca   : > { %1034 = vrot.lane.b32.xlu1 %v956_v22, %s4366_s30  ;;  %v1255_v27 = vrot.slane %v1253_v21, 4 }
  0xcb   : > { %1032 = vrot.lane.b32.xlu0 %v953_v26, %s4366_s30  ;;  %v706_v39 = vpop.permute.xlu2 %705  ;;  %v1209_v26 = vsel %vm4608_vm6, %v1207_v17, %v1208_v9  ;;  %v1215_v44 = vsel %vm4608_vm6, %v1213_v37, %v1214_v28  ;;  %v1241_v9 = vrot.slane %v1138_v3, 5  ;;  %v1141_v17 = vld [vmem:[%s4447_s28 + $0x50] sm:$0xf] }
  0xcc   : > { %v692_v33 = vpop.permute.xlu1 %691  ;;  %785 = vst.msk [vmem:[#allocation2 + $0x74] sm:$0xf] %vm755_vm7, %v706_v39  ;;  %v1221_v39 = vsel %vm4608_vm6, %v1219_v30, %v1220_v31 }
  0xcd   : > { %778 = vst.msk [vmem:[#allocation2 + $0x58] sm:$0xf] %vm755_vm7, %v692_v33  ;;  %v690_v36 = vpop.permute.xlu0 %689  ;;  %v1216_v33 = vrot.slane %v1214_v28, 4  ;;  %v1243_v14 = vrot.slane %v1241_v9, 4 }
  0xce   : > { %777 = vst.msk [vmem:[#allocation2 + $0x54] sm:$0xf] %vm755_vm7, %v690_v36  ;;  %v1132_v36 = vld [vmem:[%s4447_s28 + $0x2c] sm:$0xf] }
  0xd1   : > { %1036 = vrot.lane.b32.xlu2 %v959_v46, %s4366_s30  ;;  %v1229_v46 = vrot.slane %v1134_v42, 5 }
  0xd2   : > { %1040 = vrot.lane.b32.xlu1 %v965_v41, %s4366_s30  ;;  %v1218_v41 = vsel %vm4608_vm6, %v1216_v33, %v1217_v25  ;;  %v1250_v25 = vrot.slane %v1141_v17, 5  ;;  %v1144_v33 = vld [vmem:[%s4447_s28 + $0x5c] sm:$0xf] }
  0xd3   : > { %1038 = vrot.lane.b32.xlu0 %v962_v43, %s4366_s30  ;;  %v712_v55 = vpop.permute.xlu2 %711  ;;  %v1223_v43 = vrot.slane %v1132_v36, 5 }
  0xd4   : > { %v698_v49 = vpop.permute.xlu1 %697  ;;  %788 = vst.msk [vmem:[#allocation2 + $0x80] sm:$0xf] %vm755_vm7, %v712_v55  ;;  %v1230_v55 = vsel %vm4608_vm6, %v1228_v45, %v1229_v46  ;;  %v1252_v30 = vrot.slane %v1250_v25, 4 }
  0xd5   : > { %781 = vst.msk [vmem:[#allocation2 + $0x64] sm:$0xf] %vm755_vm7, %v698_v49  ;;  %v696_v53 = vpop.permute.xlu0 %695  ;;  %v1225_v48 = vrot.slane %v1223_v43, 4  ;;  %v1136_v49 = vld [vmem:[%s4447_s28 + $0x3c] sm:$0xf] }
  0xd6   : > { %780 = vst.msk [vmem:[#allocation2 + $0x60] sm:$0xf] %vm755_vm7, %v696_v53  ;;  %v1222_v53 = vrot.slane %v1220_v31, 4  ;;  %v1145_v31 = vld [vmem:[%s4447_s28 + $0x60] sm:$0xf] }
  0xd7   : > { %v1227_v57 = vsel %vm4608_vm6, %v1225_v48, %v1226_v40  ;;  %v1262_v37 = vrot.slane %v1145_v31, 5  ;;  %v1259_v40 = vrot.slane %v1144_v33, 5  ;;  %v1147_v48 = vld [vmem:[%s4447_s28 + $0x68] sm:$0xf] }
  0xd8   : > { %v1224_v60 = vsel %vm4608_vm6, %v1222_v53, %v1223_v43  ;;  %v1451_v33 = vld [vmem:[%s4447_s28 + $0x8] sm:$0xe] }
  0xd9   : > { %1042 = vrot.lane.b32.xlu2 %v968_v61, %s4366_s30  ;;  %v1264_v42 = vrot.slane %v1262_v37, 4  ;;  %v1261_v45 = vrot.slane %v1259_v40, 4 }
  0xda   : > { %1046 = vrot.lane.b32.xlu1 %v974_v56, %s4366_s30  ;;  %v1235_v56 = vrot.slane %v1136_v49, 5 }
  0xdb   : > { %1044 = vrot.lane.b32.xlu0 %v971_v58, %s4366_s30  ;;  %v718_v7 = vpop.permute.xlu2 %717  ;;  %v1137_v58 = vld [vmem:[%s4447_s28 + $0x40] sm:$0xf] }
  0xdc   : > { %v704_v1 = vpop.permute.xlu1 %703  ;;  %791 = vst.msk [vmem:[#allocation2 + $0x8c] sm:$0xf] %vm755_vm7, %v718_v7  ;;  %v1237_v61 = vrot.slane %v1235_v56, 4  ;;  %v1238_v62 = vrot.slane %v1137_v58, 5  ;;  %v1236_v7 = vsel %vm4608_vm6, %v1234_v0, %v1235_v56  ;;  %v1268_v56 = vrot.slane %v1147_v48, 5 }
  0xdd   : > { %784 = vst.msk [vmem:[#allocation2 + $0x70] sm:$0xf] %vm755_vm7, %v704_v1  ;;  %v702_v24 = vpop.permute.xlu0 %701  ;;  %v1139_v1 = vld [vmem:[%s4447_s28 + $0x48] sm:$0xf]  ;;  %v1150_v0 = vld [vmem:[%s4447_s28 + $0x74] sm:$0xf] }
  0xde   : > { %783 = vst.msk [vmem:[#allocation2 + $0x6c] sm:$0xf] %vm755_vm7, %v702_v24  ;;  %v1231_v24 = vrot.slane %v1229_v46, 4  ;;  %v1239_v5 = vsel %vm4608_vm6, %v1237_v61, %v1238_v62  ;;  %v1244_v6 = vrot.slane %v1139_v1, 5  ;;  %v1240_v18 = vrot.slane %v1238_v62, 4 }
  0xdf   : > { %v1148_v46 = vld [vmem:[%s4447_s28 + $0x6c] sm:$0xf]  ;;  %v1270_v61 = vrot.slane %v1268_v56, 4  ;;  %v1151_v62 = vld [vmem:[%s4447_s28 + $0x78] sm:$0xf] }
  0xe0   : > { %v1246_v11 = vrot.slane %v1244_v6, 4  ;;  %v1271_v53 = vrot.slane %v1148_v46, 5 }
  0xe1   : > { %1048 = vrot.lane.b32.xlu2 %v977_v13, %s4366_s30 }
  0xe2   : > { %1308 = vrot.lane.b32.xlu1 %v1203_v8, %s4367_s4  ;;  %v1140_v8 = vld [vmem:[%s4447_s28 + $0x4c] sm:$0xf]  ;;  %v1273_v58 = vrot.slane %v1271_v53, 4 }
  0xe3   : > { %1306 = vrot.lane.b32.xlu0 %v1200_v10, %s4367_s4  ;;  %v983_v22 = vpop.permute.xlu2 %982  ;;  %v1233_v10 = vsel %vm4608_vm6, %v1231_v24, %v1232_v59  ;;  %v1247_v12 = vrot.slane %v1140_v8, 5  ;;  %v1280_v24 = vrot.slane %v1151_v62, 5 }
  0xe4   : > { %v710_v16 = vpop.permute.xlu1 %709  ;;  %1089 = vst.msk [vmem:[#allocation2 + $0x8] sm:$0xf] %vm1086_vm8, %v983_v22  ;;  %v1245_v22 = vsel %vm4608_vm6, %v1243_v14, %v1244_v6  ;;  %v1277_v6 = vrot.slane %v1150_v0, 5  ;;  %v1153_v14 = vld [vmem:[%s4447_s28 + $0x80] sm:$0xf] }
  0xe5   : > { %787 = vst.msk [vmem:[#allocation2 + $0x7c] sm:$0xf] %vm755_vm7, %v710_v16  ;;  %v708_v19 = vpop.permute.xlu0 %707  ;;  %v1248_v20 = vsel %vm4608_vm6, %v1246_v11, %v1247_v12  ;;  %v1249_v34 = vrot.slane %v1247_v12, 4  ;;  %v1282_v8 = vrot.slane %v1280_v24, 4  ;;  %v1154_v12 = vld [vmem:[%s4447_s28 + $0x84] sm:$0xf] }
  0xe6   : > { %786 = vst.msk [vmem:[#allocation2 + $0x78] sm:$0xf] %vm755_vm7, %v708_v19  ;;  %v1279_v11 = vrot.slane %v1277_v6, 4 }
  0xe9   : > { %1310 = vrot.lane.b32.xlu2 %v1206_v29, %s4367_s4 }
  0xea   : > { %1314 = vrot.lane.b32.xlu1 %v1212_v23, %s4367_s4  ;;  %v1143_v23 = vld [vmem:[%s4447_s28 + $0x58] sm:$0xf] }
  0xeb   : > { %1312 = vrot.lane.b32.xlu0 %v1209_v26, %s4367_s4  ;;  %v989_v38 = vpop.permute.xlu2 %988  ;;  %v1242_v26 = vsel %vm4608_vm6, %v1240_v18, %v1241_v9  ;;  %v1256_v28 = vrot.slane %v1143_v23, 5  ;;  %v1289_v18 = vrot.slane %v1154_v12, 5 }
  0xec   : > { %v716_v32 = vpop.permute.xlu1 %715  ;;  %1092 = vst.msk [vmem:[#allocation2 + $0x14] sm:$0xf] %vm1086_vm8, %v989_v38  ;;  %v1254_v38 = vsel %vm4608_vm6, %v1252_v30, %v1253_v21  ;;  %v1286_v21 = vrot.slane %v1153_v14, 5  ;;  %v1156_v30 = vld [vmem:[%s4447_s28 + $0x8c] sm:$0xf] }
  0xed   : > { %790 = vst.msk [vmem:[#allocation2 + $0x88] sm:$0xf] %vm755_vm7, %v716_v32  ;;  %v714_v35 = vpop.permute.xlu0 %713  ;;  %v1257_v36 = vsel %vm4608_vm6, %v1255_v27, %v1256_v28  ;;  %v1258_v49 = vrot.slane %v1256_v28, 4  ;;  %v1291_v23 = vrot.slane %v1289_v18, 4 }
  0xee   : > { %789 = vst.msk [vmem:[#allocation2 + $0x84] sm:$0xf] %vm755_vm7, %v714_v35  ;;  %v1288_v28 = vrot.slane %v1286_v21, 4 }
  0xf1   : > { %1316 = vrot.lane.b32.xlu2 %v1215_v44, %s4367_s4 }
  0xf2   : > { %1320 = vrot.lane.b32.xlu1 %v1221_v39, %s4367_s4  ;;  %v1146_v39 = vld [vmem:[%s4447_s28 + $0x64] sm:$0xf] }
  0xf3   : > { %1318 = vrot.lane.b32.xlu0 %v1218_v41, %s4367_s4  ;;  %v995_v54 = vpop.permute.xlu2 %994  ;;  %v1251_v41 = vsel %vm4608_vm6, %v1249_v34, %v1250_v25  ;;  %v1265_v43 = vrot.slane %v1146_v39, 5  ;;  %v1453_v39 = vld [vmem:[%s4447_s28 + $0x10] sm:$0xf] }
  0xf4   : > { %v981_v47 = vpop.permute.xlu1 %980  ;;  %1095 = vst.msk [vmem:[#allocation2 + $0x20] sm:$0xf] %vm1086_vm8, %v995_v54  ;;  %v1263_v54 = vsel %vm4608_vm6, %v1261_v45, %v1262_v37  ;;  %v1511_v48 = vshrl.u32 %v1453_v39, 16 }
  0xf5   : > { %1088 = vst.msk [vmem:[#allocation2 + $0x4] sm:$0xf] %vm1086_vm8, %v981_v47  ;;  %v979_v51 = vpop.permute.xlu0 %978  ;;  %v1266_v52 = vsel %vm4608_vm6, %v1264_v42, %v1265_v43  ;;  %v1267_v1 = vrot.slane %v1265_v43, 4  ;;  %v1295_v42 = vrot.slane %v1156_v30, 5  ;;  %v1492_v43 = vshrl.u32 %v1451_v33, 16 }
  0xf6   : > { %1087 = vst.msk [vmem:[#allocation2] sm:$0xf] %vm1086_vm8, %v979_v51  ;;  %v1513_v62 = vrot.slane %v1511_v48, 5 }
  0xf9   : > { %1322 = vrot.lane.b32.xlu2 %v1224_v60, %s4367_s4 }
  0xfa   : > { %1326 = vrot.lane.b32.xlu1 %v1230_v55, %s4367_s4  ;;  %v1149_v55 = vld [vmem:[%s4447_s28 + $0x70] sm:$0xf] }
  0xfb   : > { %1324 = vrot.lane.b32.xlu0 %v1227_v57, %s4367_s4  ;;  %v1001_v4 = vpop.permute.xlu2 %1000  ;;  %v1260_v57 = vsel %vm4608_vm6, %v1258_v49, %v1259_v40  ;;  %v1274_v59 = vrot.slane %v1149_v55, 5  ;;  %v1290_v40 = vsel %vm4608_vm6, %v1288_v28, %v1289_v18  ;;  %v1514_v49 = vshll.u32 %v1453_v39, 16 }
  0xfc   : > { %v987_v63 = vpop.permute.xlu1 %986  ;;  %1098 = vst.msk [vmem:[#allocation2 + $0x2c] sm:$0xf] %vm1086_vm8, %v1001_v4  ;;  %v1272_v4 = vsel %vm4608_vm6, %v1270_v61, %v1271_v53  ;;  %v1494_v55 = vrot.slane %v1492_v43, 5 }
  0xfd   : > { %1091 = vst.msk [vmem:[#allocation2 + $0x10] sm:$0xf] %vm1086_vm8, %v987_v63  ;;  %v985_v2 = vpop.permute.xlu0 %984  ;;  %v1275_v3 = vsel %vm4608_vm6, %v1273_v58, %v1274_v59  ;;  %v1276_v15 = vrot.slane %v1274_v59, 4 }
  0xfe   : > { %1090 = vst.msk [vmem:[#allocation2 + $0xc] sm:$0xf] %vm1086_vm8, %v985_v2 }
 0x101   : > { %1328 = vrot.lane.b32.xlu2 %v1233_v10, %s4367_s4 }
 0x102   : > { %1332 = vrot.lane.b32.xlu1 %v1239_v5, %s4367_s4  ;;  %v1152_v5 = vld [vmem:[%s4447_s28 + $0x7c] sm:$0xf] }
 0x103   : > { %1330 = vrot.lane.b32.xlu0 %v1236_v7, %s4367_s4  ;;  %v1007_v19 = vpop.permute.xlu2 %1006  ;;  %v1269_v7 = vsel %vm4608_vm6, %v1267_v1, %v1268_v56  ;;  %v1283_v9 = vrot.slane %v1152_v5, 5  ;;  %v1456_v5 = vld [vmem:[%s4447_s28 + $0x1c] sm:$0xf] }
 0x104   : > { %v993_v13 = vpop.permute.xlu1 %992  ;;  %1101 = vst.msk [vmem:[#allocation2 + $0x38] sm:$0xf] %vm1086_vm8, %v1007_v19  ;;  %v1281_v19 = vsel %vm4608_vm6, %v1279_v11, %v1280_v24  ;;  %v1159_v11 = vld [vmem:[%s4447_s28 + $0x98] sm:$0x1]  ;;  %v1541_v14 = vshrl.u32 %v1456_v5, 16 }
 0x105   : > { %1094 = vst.msk [vmem:[#allocation2 + $0x1c] sm:$0xf] %vm1086_vm8, %v993_v13  ;;  %v991_v16 = vpop.permute.xlu0 %990  ;;  %v1284_v17 = vsel %vm4608_vm6, %v1282_v8, %v1283_v9 }
 0x106   : > { %1093 = vst.msk [vmem:[#allocation2 + $0x18] sm:$0xf] %vm1086_vm8, %v991_v16 }
 0x109   : > { %1334 = vrot.lane.b32.xlu2 %v1242_v26, %s4367_s4  ;;  %v1452_v26 = vld [vmem:[%s4447_s28 + $0xc] sm:$0xf] }
 0x10a   : > { %1338 = vrot.lane.b32.xlu1 %v1248_v20, %s4367_s4  ;;  %v1155_v20 = vld [vmem:[%s4447_s28 + $0x88] sm:$0xf] }
 0x10b   : > { %1336 = vrot.lane.b32.xlu0 %v1245_v22, %s4367_s4  ;;  %v1013_v35 = vpop.permute.xlu2 %1012  ;;  %v1278_v22 = vsel %vm4608_vm6, %v1276_v15, %v1277_v6  ;;  %v1292_v25 = vrot.slane %v1155_v20, 5  ;;  %v1544_v15 = vshll.u32 %v1456_v5, 16 }
 0x10c   : > { %v999_v29 = vpop.permute.xlu1 %998  ;;  %1104 = vst.msk [vmem:[#allocation2 + $0x44] sm:$0xf] %vm1086_vm8, %v1013_v35  ;;  %v1501_v35 = vshrl.u32 %v1452_v26, 16 }
 0x10d   : > { %1097 = vst.msk [vmem:[#allocation2 + $0x28] sm:$0xf] %vm1086_vm8, %v999_v29  ;;  %v997_v32 = vpop.permute.xlu0 %996  ;;  %v1157_v29 = vld [vmem:[%s4447_s28 + $0x90] sm:$0xf]  ;;  %v1293_v37 = vsel %vm4608_vm6, %v1291_v23, %v1292_v25  ;;  %v1294_v59 = vrot.slane %v1292_v25, 4  ;;  %v1304_v25 = vrot.slane %v1159_v11, 5 }
 0x10e   : > { %1096 = vst.msk [vmem:[#allocation2 + $0x24] sm:$0xf] %vm1086_vm8, %v997_v32  ;;  %v1285_v32 = vrot.slane %v1283_v9, 4  ;;  %v1503_v46 = vrot.slane %v1501_v35, 5 }
 0x10f   : > { %v1296_v8 = vsel %vm4608_vm6, %v1294_v59, %v1295_v42 }
 0x110   : > { %v1287_v45 = vsel %vm4608_vm6, %v1285_v32, %v1286_v21  ;;  %v1543_v32 = vrot.slane %v1541_v14, 5 }
 0x111   : > { %1340 = vrot.lane.b32.xlu2 %v1251_v41, %s4367_s4  ;;  %v1158_v41 = vld [vmem:[%s4447_s28 + $0x94] sm:$0xf] }
 0x112   : > { %1344 = vrot.lane.b32.xlu1 %v1257_v36, %s4367_s4  ;;  %v1504_v36 = vshll.u32 %v1452_v26, 16  ;;  %v1457_v26 = vld [vmem:[%s4447_s28 + $0x20] sm:$0xf] }
 0x113   : > { %1342 = vrot.lane.b32.xlu0 %v1254_v38, %s4367_s4  ;;  %v1019_v51 = vpop.permute.xlu2 %1018  ;;  %v1298_v38 = vrot.slane %v1157_v29, 5 }
 0x114   : > { %v1005_v44 = vpop.permute.xlu1 %1004  ;;  %1107 = vst.msk [vmem:[#allocation2 + $0x50] sm:$0xf] %vm1086_vm8, %v1019_v51 }
 0x115   : > { %1100 = vst.msk [vmem:[#allocation2 + $0x34] sm:$0xf] %vm1086_vm8, %v1005_v44  ;;  %v1003_v47 = vpop.permute.xlu0 %1002  ;;  %v1495_v44 = vshll.u32 %v1451_v33, 16  ;;  %v1300_v51 = vrot.slane %v1298_v38, 4  ;;  %v1546_v33 = vrot.slane %v1544_v15, 6 }
 0x116   : > { %1099 = vst.msk [vmem:[#allocation2 + $0x30] sm:$0xf] %vm1086_vm8, %v1003_v47  ;;  %v1506_v47 = vrot.slane %v1504_v36, 6  ;;  %v1463_v15 = vld [vmem:[%s4447_s28 + $0x38] sm:$0xf] }
 0x117   : > { %v1497_v56 = vrot.slane %v1495_v44, 6 }
 0x118   : > { %v1507_v61 = vor.u32 %v1506_v47, %v1503_v46 }
 0x119   : > { %1346 = vrot.lane.b32.xlu2 %v1260_v57, %s4367_s4  ;;  %v1455_v57 = vld [vmem:[%s4447_s28 + $0x18] sm:$0xf] }
 0x11a   : > { %1350 = vrot.lane.b32.xlu1 %v1266_v52, %s4367_s4  ;;  %v1301_v52 = vrot.slane %v1158_v41, 5  ;;  %v1509_v9 = vrot.slane %v1507_v61, 4 }
 0x11b   : > { %1348 = vrot.lane.b32.xlu0 %v1263_v54, %s4367_s4  ;;  %v1025_v2 = vpop.permute.xlu2 %1024  ;;  %v1297_v54 = vrot.slane %v1295_v42, 4 }
 0x11c   : > { %v1011_v60 = vpop.permute.xlu1 %1010  ;;  %1110 = vst.msk [vmem:[#allocation2 + $0x5c] sm:$0xf] %vm1086_vm8, %v1025_v2  ;;  %v1302_v1 = vsel %vm4608_vm6, %v1300_v51, %v1301_v52  ;;  %v1531_v2 = vshrl.u32 %v1455_v57, 16  ;;  %v1303_v23 = vrot.slane %v1301_v52, 4 }
 0x11d   : > { %1103 = vst.msk [vmem:[#allocation2 + $0x40] sm:$0xf] %vm1086_vm8, %v1011_v60  ;;  %v1009_v63 = vpop.permute.xlu0 %1008  ;;  %v1454_v60 = vld [vmem:[%s4447_s28 + $0x14] sm:$0xf]  ;;  %v1299_v24 = vsel %vm4608_vm6, %v1297_v54, %v1298_v38  ;;  %v1554_v38 = vshll.u32 %v1457_v26, 16 }
 0x11e   : > { %1102 = vst.msk [vmem:[#allocation2 + $0x3c] sm:$0xf] %vm1086_vm8, %v1009_v63  ;;  %v1516_v63 = vrot.slane %v1514_v49, 6  ;;  %v1521_v6 = vshrl.u32 %v1454_v60, 16  ;;  %v1533_v12 = vrot.slane %v1531_v2, 5  ;;  %v1305_v39 = vsel %vm4608_vm6, %v1303_v23, %v1304_v25 }
 0x11f   : > { %v1556_v50 = vrot.slane %v1554_v38, 6  ;;  %v1461_v49 = vld [vmem:[%s4447_s28 + $0x30] sm:$0xf]  ;;  %v1465_v25 = vld [vmem:[%s4447_s28 + $0x40] sm:$0xf]  ;;  %vm3291_vm6 = vcmask 1044484  }
 0x120   : > { %v1523_v20 = vrot.slane %v1521_v6, 5  ;;  %v1591_v59 = vshrl.u32 %v1461_v49, 16  ;;  %vm5570_vm7 = vmor %vm3290_vm5, %vm3291_vm6 }
 0x121   : > { %1352 = vrot.lane.b32.xlu2 %v1269_v7, %s4367_s4  ;;  %v1524_v7 = vshll.u32 %v1454_v60, 16  ;;  %v1594_v60 = vshll.u32 %v1461_v49, 16 }
 0x122   : > { %1356 = vrot.lane.b32.xlu1 %v1275_v3, %s4367_s4  ;;  %v1534_v3 = vshll.u32 %v1455_v57, 16 }
 0x123   : > { %1354 = vrot.lane.b32.xlu0 %v1272_v4, %s4367_s4  ;;  %v1031_v16 = vpop.permute.xlu2 %1030  ;;  %v1498_v4 = vor.u32 %v1497_v56, %v1494_v55  ;;  %v1526_v21 = vrot.slane %v1524_v7, 6  ;;  %v1596_v5 = vrot.slane %v1594_v60, 6 }
 0x124   : > { %v1017_v10 = vpop.permute.xlu1 %1016  ;;  %1113 = vst.msk [vmem:[#allocation2 + $0x68] sm:$0xf] %vm1086_vm8, %v1031_v16  ;;  %v1458_v16 = vld [vmem:[%s4447_s28 + $0x24] sm:$0xf] }
 0x125   : > { %1106 = vst.msk [vmem:[#allocation2 + $0x4c] sm:$0xf] %vm1086_vm8, %v1017_v10  ;;  %v1015_v13 = vpop.permute.xlu0 %1014  ;;  %v5031_v10 = vor.u32 %v1516_v63, %v1513_v62  ;;  %v1561_v28 = vshrl.u32 %v1458_v16, 16  ;;  %v1564_v29 = vshll.u32 %v1458_v16, 16  ;;  %v1527_v36 = vor.u32 %v1526_v21, %v1523_v20  ;;  %v1462_v63 = vld [vmem:[%s4447_s28 + $0x34] sm:$0xf] }
 0x126   : > { %1105 = vst.msk [vmem:[#allocation2 + $0x48] sm:$0xf] %vm1086_vm8, %v1015_v13  ;;  %v1536_v13 = vrot.slane %v1534_v3, 6  ;;  %v1601_v6 = vshrl.u32 %v1462_v63, 16  ;;  %v1604_v7 = vshll.u32 %v1462_v63, 16 }
 0x127   : > { %v1518_v30 = vsel %vm5036_vm11, %v1509_v9, %v5031_v10  ;;  %v1566_v41 = vrot.slane %v1564_v29, 6  ;;  %v1529_v47 = vrot.slane %v1527_v36, 4  ;;  %v1519_v52 = vrot.slane %v5031_v10, 4 }
 0x128   : > { %v1606_v23 = vrot.slane %v1604_v7, 6  ;;  %v1614_v29 = vshll.u32 %v1463_v15, 16 }
 0x129   : > { %1358 = vrot.lane.b32.xlu2 %v1278_v22, %s4367_s4  ;;  %v1528_v2 = vsel %vm5036_vm11, %v1519_v52, %v1527_v36 }
 0x12a   : > { %1362 = vrot.lane.b32.xlu1 %v1284_v17, %s4367_s4 }
 0x12b   : > { %1360 = vrot.lane.b32.xlu0 %v1281_v19, %s4367_s4  ;;  %v1037_v34 = vpop.permute.xlu2 %1036  ;;  %v1499_v19 = vrot.slane %v1498_v4, 4  ;;  %v1593_v4 = vrot.slane %v1591_v59, 5 }
 0x12c   : > { %v1023_v27 = vpop.permute.xlu1 %1022  ;;  %1116 = vst.msk [vmem:[#allocation2 + $0x74] sm:$0xf] %vm1086_vm8, %v1037_v34  ;;  %v1459_v34 = vld [vmem:[%s4447_s28 + $0x28] sm:$0xf] }
 0x12d   : > { %1109 = vst.msk [vmem:[#allocation2 + $0x58] sm:$0xf] %vm1086_vm8, %v1023_v27  ;;  %v1021_v31 = vpop.permute.xlu0 %1020  ;;  %v1508_v35 = vsel %vm5036_vm11, %v1499_v19, %v1507_v61  ;;  %v1571_v42 = vshrl.u32 %v1459_v34, 16  ;;  %v1574_v43 = vshll.u32 %v1459_v34, 16  ;;  %v1597_v21 = vor.u32 %v1596_v5, %v1593_v4 }
 0x12e   : > { %1108 = vst.msk [vmem:[#allocation2 + $0x54] sm:$0xf] %vm1086_vm8, %v1021_v31  ;;  %v1537_v31 = vor.u32 %v1536_v13, %v1533_v12  ;;  %v1634_v34 = vshll.u32 %v1465_v25, 16 }
 0x12f   : > { %v1573_v55 = vrot.slane %v1571_v42, 5  ;;  %v1576_v56 = vrot.slane %v1574_v43, 6 }
 0x130   : > { %v1539_v44 = vrot.slane %v1537_v31, 4  ;;  %v1538_v61 = vsel %vm5036_vm11, %v1529_v47, %v1537_v31  ;;  %v1636_v47 = vrot.slane %v1634_v34, 6 }
 0x131   : > { %1364 = vrot.lane.b32.xlu2 %v1287_v45, %s4367_s4  ;;  %v1547_v45 = vor.u32 %v1546_v33, %v1543_v32  ;;  %v1631_v33 = vshrl.u32 %v1465_v25, 16 }
 0x132   : > { %1368 = vrot.lane.b32.xlu1 %v1293_v37, %s4367_s4  ;;  %v1551_v37 = vshrl.u32 %v1457_v26, 16 }
 0x133   : > { %1366 = vrot.lane.b32.xlu0 %v1290_v40, %s4367_s4  ;;  %v1043_v0 = vpop.permute.xlu2 %1042  ;;  %v1563_v40 = vrot.slane %v1561_v28, 5  ;;  %v1549_v14 = vrot.slane %v1547_v45, 4  ;;  %v1611_v28 = vshrl.u32 %v1463_v15, 16 }
 0x134   : > { %v1029_v53 = vpop.permute.xlu1 %1028  ;;  %1119 = vst.msk [vmem:[#allocation2 + $0x80] sm:$0xf] %vm1086_vm8, %v1043_v0  ;;  %v1553_v48 = vrot.slane %v1551_v37, 5 }
 0x135   : > { %1112 = vst.msk [vmem:[#allocation2 + $0x64] sm:$0xf] %vm1086_vm8, %v1029_v53  ;;  %v1027_v58 = vpop.permute.xlu0 %1026  ;;  %v1460_v53 = vld [vmem:[%s4447_s28 + $0x2c] sm:$0xf]  ;;  %v1567_v54 = vor.u32 %v1566_v41, %v1563_v40  ;;  %v1616_v40 = vrot.slane %v1614_v29, 6 }
 0x136   : > { %1111 = vst.msk [vmem:[#allocation2 + $0x60] sm:$0xf] %vm1086_vm8, %v1027_v58  ;;  %v1548_v58 = vsel %vm5036_vm11, %v1539_v44, %v1547_v45  ;;  %v1557_v62 = vor.u32 %v1556_v50, %v1553_v48  ;;  %v1581_v0 = vshrl.u32 %v1460_v53, 16  ;;  %v1467_v41 = vld [vmem:[%s4447_s28 + $0x48] sm:$0xf] }
 0x137   : > { %v1569_v3 = vrot.slane %v1567_v54, 4  ;;  %v1466_v44 = vld [vmem:[%s4447_s28 + $0x44] sm:$0xf]  ;;  %v1651_v49 = vshrl.u32 %v1467_v41, 16 }
 0x138   : > { %v1559_v10 = vrot.slane %v1557_v62, 4  ;;  %v1583_v11 = vrot.slane %v1581_v0, 5  ;;  %v1470_v0 = vld [vmem:[%s4447_s28 + $0x54] sm:$0xf] }
 0x139   : > { %1370 = vrot.lane.b32.xlu2 %v1296_v8, %s4367_s4  ;;  %v1464_v8 = vld [vmem:[%s4447_s28 + $0x3c] sm:$0xf]  ;;  %v1653_v60 = vrot.slane %v1651_v49, 5 }
 0x13a   : > { %1374 = vrot.lane.b32.xlu1 %v1302_v1, %s4367_s4  ;;  %v1584_v1 = vshll.u32 %v1460_v53, 16  ;;  %v1624_v19 = vshll.u32 %v1464_v8, 16  ;;  %v1568_v26 = vsel %vm5036_vm11, %v1559_v10, %v1567_v54  ;;  %v1468_v54 = vld [vmem:[%s4447_s28 + $0x4c] sm:$0xf] }
 0x13b   : > { %1372 = vrot.lane.b32.xlu0 %v1299_v24, %s4367_s4  ;;  %v1049_v27 = vpop.permute.xlu2 %1048  ;;  %v5070_v24 = vor.u32 %v1576_v56, %v1573_v55  ;;  %v1641_v55 = vshrl.u32 %v1466_v44, 16  ;;  %v1644_v56 = vshll.u32 %v1466_v44, 16  ;;  %v1664_v63 = vshll.u32 %v1468_v54, 16 }
 0x13c   : > { %v1035_v17 = vpop.permute.xlu1 %1034  ;;  %1122 = vst.msk [vmem:[#allocation2 + $0x8c] sm:$0xf] %vm1086_vm8, %v1049_v27  ;;  %v1586_v12 = vrot.slane %v1584_v1, 6  ;;  %v1626_v32 = vrot.slane %v1624_v19, 6 }
 0x13d   : > { %1115 = vst.msk [vmem:[#allocation2 + $0x70] sm:$0xf] %vm1086_vm8, %v1035_v17  ;;  %v1033_v22 = vpop.permute.xlu0 %1032  ;;  %v1621_v17 = vshrl.u32 %v1464_v8, 16  ;;  %v1578_v20 = vsel %vm5036_vm11, %v1569_v3, %v5070_v24  ;;  %v1579_v43 = vrot.slane %v5070_v24, 4  ;;  %v1643_v3 = vrot.slane %v1641_v55, 5 }
 0x13e   : > { %1114 = vst.msk [vmem:[#allocation2 + $0x6c] sm:$0xf] %vm1086_vm8, %v1033_v22  ;;  %v1603_v22 = vrot.slane %v1601_v6, 5  ;;  %v1587_v27 = vor.u32 %v1586_v12, %v1583_v11  ;;  %v1646_v24 = vrot.slane %v1644_v56, 6  ;;  %v1469_v6 = vld [vmem:[%s4447_s28 + $0x50] sm:$0xf] }
 0x13f   : > { %v1623_v31 = vrot.slane %v1621_v17, 5  ;;  %v1681_v8 = vshrl.u32 %v1470_v0, 16  ;;  %v1671_v17 = vshrl.u32 %v1469_v6, 16  ;;  %v1674_v19 = vshll.u32 %v1469_v6, 16  ;;  %v1476_v55 = vld [vmem:[%s4447_s28 + $0x6c] sm:$0xf] }
 0x140   : > { %v1607_v36 = vor.u32 %v1606_v23, %v1603_v22  ;;  %v1589_v38 = vrot.slane %v1587_v27, 4 }
 0x141   : > { %1376 = vrot.lane.b32.xlu2 %v1305_v39, %s4367_s4  ;;  %v1613_v39 = vrot.slane %v1611_v28, 5  ;;  %v1627_v45 = vor.u32 %v1626_v32, %v1623_v31  ;;  %v1676_v31 = vrot.slane %v1674_v19, 6  ;;  %v1473_v32 = vld [vmem:[%s4447_s28 + $0x60] sm:$0xf] }
 0x142   : > { %1861 = vrot.lane.b32.xlu1 %v1518_v30, %s4368_s5  ;;  %v1558_v30 = vsel %vm5036_vm11, %v1549_v14, %v1557_v62  ;;  %v1598_v52 = vsel %vm5036_vm11, %v1589_v38, %v1597_v21  ;;  %v1661_v62 = vshrl.u32 %v1468_v54, 16  ;;  %v1609_v5 = vrot.slane %v1607_v36, 4  ;;  %v1471_v14 = vld [vmem:[%s4447_s28 + $0x58] sm:$0xf] }
 0x143   : > { %1859 = vrot.lane.b32.xlu0 %v1508_v35, %s4368_s5  ;;  %v1311_v57 = vpop.permute.xlu2 %1310  ;;  %v1599_v35 = vrot.slane %v1597_v21, 4  ;;  %v1617_v53 = vor.u32 %v1616_v40, %v1613_v39  ;;  %v1683_v21 = vrot.slane %v1681_v8, 5  ;;  %v1691_v23 = vshrl.u32 %v1471_v14, 16 }
 0x144   : > { %v1041_v46 = vpop.permute.xlu1 %1040  ;;  %1417 = vst.msk [vmem:[#allocation2 + $0x8] sm:$0xf] %vm1414_vm12, %v1311_v57  ;;  %v1588_v57 = vsel %vm5036_vm11, %v1579_v43, %v1587_v27  ;;  %v1663_v12 = vrot.slane %v1661_v62, 5  ;;  %v1694_v25 = vshll.u32 %v1471_v14, 16  ;;  %v1475_v62 = vld [vmem:[%s4447_s28 + $0x68] sm:$0xf] }
 0x145   : > { %1118 = vst.msk [vmem:[#allocation2 + $0x7c] sm:$0xf] %vm1086_vm8, %v1041_v46  ;;  %v1039_v51 = vpop.permute.xlu0 %1038  ;;  %v1633_v46 = vrot.slane %v1631_v33, 5  ;;  %v1608_v50 = vsel %vm5036_vm11, %v1599_v35, %v1607_v36  ;;  %v1472_v35 = vld [vmem:[%s4447_s28 + $0x5c] sm:$0xf]  ;;  %v1731_v8 = vshrl.u32 %v1475_v62, 16 }
 0x146   : > { %1117 = vst.msk [vmem:[#allocation2 + $0x78] sm:$0xf] %vm1086_vm8, %v1039_v51  ;;  %v1654_v51 = vshll.u32 %v1467_v41, 16  ;;  %v1696_v38 = vrot.slane %v1694_v25, 6  ;;  %v1711_v41 = vshrl.u32 %v1473_v32, 16 }
 0x147   : > { %v5104_v59 = vor.u32 %v1636_v47, %v1633_v46  ;;  %v1701_v46 = vshrl.u32 %v1472_v35, 16  ;;  %v1704_v47 = vshll.u32 %v1472_v35, 16 }
 0x149   : > { %1863 = vrot.lane.b32.xlu2 %v1528_v2, %s4368_s5  ;;  %v1619_v2 = vrot.slane %v1617_v53, 4  ;;  %v1639_v34 = vrot.slane %v5104_v59, 4 }
 0x14a   : > { %1867 = vrot.lane.b32.xlu1 %v1548_v58, %s4368_s5  ;;  %v1629_v58 = vrot.slane %v1627_v45, 4 }
 0x14b   : > { %1865 = vrot.lane.b32.xlu0 %v1538_v61, %s4368_s5  ;;  %v1317_v16 = vpop.permute.xlu2 %1316  ;;  %v1656_v61 = vrot.slane %v1654_v51, 6  ;;  %v1628_v15 = vsel %vm5036_vm11, %v1619_v2, %v1627_v45  ;;  %v1474_v45 = vld [vmem:[%s4447_s28 + $0x64] sm:$0xf]  ;;  %v1713_v51 = vrot.slane %v1711_v41, 5 }
 0x14c   : > { %v1047_v9 = vpop.permute.xlu1 %1046  ;;  %1420 = vst.msk [vmem:[#allocation2 + $0x14] sm:$0xf] %vm1414_vm12, %v1317_v16  ;;  %v1638_v10 = vsel %vm5036_vm11, %v1629_v58, %v5104_v59  ;;  %v1647_v16 = vor.u32 %v1646_v24, %v1643_v3  ;;  %v1724_v54 = vshll.u32 %v1474_v45, 16  ;;  %v1703_v58 = vrot.slane %v1701_v46, 5  ;;  %v1482_v46 = vld [vmem:[%s4447_s28 + $0x84] sm:$0xf] }
 0x14d   : > { %1121 = vst.msk [vmem:[#allocation2 + $0x88] sm:$0xf] %vm1086_vm8, %v1047_v9  ;;  %v1045_v13 = vpop.permute.xlu0 %1044  ;;  %v1684_v9 = vshll.u32 %v1470_v0, 16  ;;  %v1657_v11 = vor.u32 %v1656_v61, %v1653_v60  ;;  %v1706_v59 = vrot.slane %v1704_v47, 6  ;;  %v1741_v0 = vshrl.u32 %v1476_v55, 16 }
 0x14e   : > { %1120 = vst.msk [vmem:[#allocation2 + $0x84] sm:$0xf] %vm1086_vm8, %v1045_v13  ;;  %v1666_v13 = vrot.slane %v1664_v63, 6  ;;  %v1649_v29 = vrot.slane %v1647_v16, 4  ;;  %vm2626_vm8 = vcmask 454016  }
 0x14f   : > { %v1686_v22 = vrot.slane %v1684_v9, 6  ;;  %v1734_v9 = vshll.u32 %v1475_v62, 16 }
 0x150   : > { %v1667_v27 = vor.u32 %v1666_v13, %v1663_v12  ;;  %v1658_v43 = vsel %vm5036_vm11, %v1649_v29, %v1657_v11 }
 0x151   : > { %1869 = vrot.lane.b32.xlu2 %v1558_v30, %s4368_s5  ;;  %v1673_v30 = vrot.slane %v1671_v17, 5  ;;  %v1687_v36 = vor.u32 %v1686_v22, %v1683_v21  ;;  %v1736_v21 = vrot.slane %v1734_v9, 6  ;;  %v1479_v22 = vld [vmem:[%s4447_s28 + $0x78] sm:$0xf] }
 0x152   : > { %1873 = vrot.lane.b32.xlu1 %v1578_v20, %s4368_s5  ;;  %v1618_v20 = vsel %vm5036_vm11, %v1609_v5, %v1617_v53  ;;  %v1721_v53 = vshrl.u32 %v1474_v45, 16  ;;  %v1669_v61 = vrot.slane %v1667_v27, 4  ;;  %v1477_v5 = vld [vmem:[%s4447_s28 + $0x70] sm:$0xf] }
 0x153   : > { %1871 = vrot.lane.b32.xlu0 %v1568_v26, %s4368_s5  ;;  %v1323_v48 = vpop.permute.xlu2 %1322  ;;  %v1659_v26 = vrot.slane %v1657_v11, 4  ;;  %v1677_v44 = vor.u32 %v1676_v31, %v1673_v30  ;;  %v1743_v11 = vrot.slane %v1741_v0, 5  ;;  %v1751_v13 = vshrl.u32 %v1477_v5, 16 }
 0x154   : > { %v1309_v37 = vpop.permute.xlu1 %1308  ;;  %1423 = vst.msk [vmem:[#allocation2 + $0x20] sm:$0xf] %vm1414_vm12, %v1323_v48  ;;  %v1648_v48 = vsel %vm5036_vm11, %v1639_v34, %v1647_v16  ;;  %v1723_v24 = vrot.slane %v1721_v53, 5  ;;  %v1754_v14 = vshll.u32 %v1477_v5, 16  ;;  %v1481_v53 = vld [vmem:[%s4447_s28 + $0x80] sm:$0xf] }
 0x155   : > { %1416 = vst.msk [vmem:[#allocation2 + $0x4] sm:$0xf] %vm1414_vm12, %v1309_v37  ;;  %v1307_v42 = vpop.permute.xlu0 %1306  ;;  %v1693_v37 = vrot.slane %v1691_v23, 5  ;;  %v1668_v40 = vsel %vm5036_vm11, %v1659_v26, %v1667_v27  ;;  %v1478_v26 = vld [vmem:[%s4447_s28 + $0x74] sm:$0xf]  ;;  %v1791_v0 = vshrl.u32 %v1481_v53, 16 }
 0x156   : > { %1415 = vst.msk [vmem:[#allocation2] sm:$0xf] %vm1414_vm12, %v1307_v42  ;;  %v1714_v42 = vshll.u32 %v1473_v32, 16  ;;  %v1756_v29 = vrot.slane %v1754_v14, 6  ;;  %v1771_v32 = vshrl.u32 %v1479_v22, 16 }
 0x157   : > { %v5138_v49 = vor.u32 %v1696_v38, %v1693_v37  ;;  %v1761_v37 = vshrl.u32 %v1478_v26, 16  ;;  %v1764_v38 = vshll.u32 %v1478_v26, 16 }
 0x159   : > { %1875 = vrot.lane.b32.xlu2 %v1588_v57, %s4368_s5  ;;  %v1679_v57 = vrot.slane %v1677_v44, 4  ;;  %v1699_v25 = vrot.slane %v5138_v49, 4 }
 0x15a   : > { %1879 = vrot.lane.b32.xlu1 %v1608_v50, %s4368_s5  ;;  %v1689_v50 = vrot.slane %v1687_v36, 4 }
 0x15b   : > { %1877 = vrot.lane.b32.xlu0 %v1598_v52, %s4368_s5  ;;  %v1329_v7 = vpop.permute.xlu2 %1328  ;;  %v1716_v52 = vrot.slane %v1714_v42, 6  ;;  %v1688_v6 = vsel %vm5036_vm11, %v1679_v57, %v1687_v36  ;;  %v1480_v36 = vld [vmem:[%s4447_s28 + $0x7c] sm:$0xf]  ;;  %v1773_v42 = vrot.slane %v1771_v32, 5 }
 0x15c   : > { %v1315_v1 = vpop.permute.xlu1 %1314  ;;  %1426 = vst.msk [vmem:[#allocation2 + $0x2c] sm:$0xf] %vm1414_vm12, %v1329_v7  ;;  %v1698_v2 = vsel %vm5036_vm11, %v1689_v50, %v5138_v49  ;;  %v1707_v7 = vor.u32 %v1706_v59, %v1703_v58  ;;  %v1784_v45 = vshll.u32 %v1480_v36, 16  ;;  %v1763_v50 = vrot.slane %v1761_v37, 5 }
 0x15d   : > { %1419 = vst.msk [vmem:[#allocation2 + $0x10] sm:$0xf] %vm1414_vm12, %v1315_v1  ;;  %v1313_v4 = vpop.permute.xlu0 %1312  ;;  %v1744_v1 = vshll.u32 %v1476_v55, 16  ;;  %v1717_v3 = vor.u32 %v1716_v52, %v1713_v51  ;;  %v1766_v49 = vrot.slane %v1764_v38, 6  ;;  %v1801_v55 = vshrl.u32 %v1482_v46, 16 }
 0x15e   : > { %1418 = vst.msk [vmem:[#allocation2 + $0xc] sm:$0xf] %vm1414_vm12, %v1313_v4  ;;  %v1726_v4 = vrot.slane %v1724_v54, 6  ;;  %v1709_v19 = vrot.slane %v1707_v7, 4 }
 0x15f   : > { %v1746_v12 = vrot.slane %v1744_v1, 6  ;;  %v1794_v1 = vshll.u32 %v1481_v53, 16 }
 0x160   : > { %v1727_v16 = vor.u32 %v1726_v4, %v1723_v24  ;;  %v1718_v34 = vsel %vm5036_vm11, %v1709_v19, %v1717_v3 }
 0x161   : > { %1881 = vrot.lane.b32.xlu2 %v1618_v20, %s4368_s5  ;;  %v1733_v20 = vrot.slane %v1731_v8, 5  ;;  %v1747_v27 = vor.u32 %v1746_v12, %v1743_v11  ;;  %v1796_v11 = vrot.slane %v1794_v1, 6  ;;  %v1485_v12 = vld [vmem:[%s4447_s28 + $0x90] sm:$0xf] }
 0x162   : > { %1885 = vrot.lane.b32.xlu1 %v1638_v10, %s4368_s5  ;;  %v1678_v10 = vsel %vm5036_vm11, %v1669_v61, %v1677_v44  ;;  %v1781_v44 = vshrl.u32 %v1480_v36, 16  ;;  %v1729_v52 = vrot.slane %v1727_v16, 4  ;;  %v1483_v61 = vld [vmem:[%s4447_s28 + $0x88] sm:$0xf]  ;;  %v2006_v1 = vld [vmem:[%s4447_s28 + $0x10] sm:$0xf] }
 0x163   : > { %1883 = vrot.lane.b32.xlu0 %v1628_v15, %s4368_s5  ;;  %v1335_v39 = vpop.permute.xlu2 %1334  ;;  %v1719_v15 = vrot.slane %v1717_v3, 4  ;;  %v1737_v35 = vor.u32 %v1736_v21, %v1733_v20  ;;  %v1803_v3 = vrot.slane %v1801_v55, 5  ;;  %v1811_v4 = vshrl.u32 %v1483_v61, 16 }
 0x164   : > { %v1321_v28 = vpop.permute.xlu1 %1320  ;;  %1429 = vst.msk [vmem:[#allocation2 + $0x38] sm:$0xf] %vm1414_vm12, %v1335_v39  ;;  %v1708_v39 = vsel %vm5036_vm11, %v1699_v25, %v1707_v7  ;;  %v1783_v59 = vrot.slane %v1781_v44, 5  ;;  %v1814_v5 = vshll.u32 %v1483_v61, 16 }
 0x165   : > { %1422 = vst.msk [vmem:[#allocation2 + $0x1c] sm:$0xf] %vm1414_vm12, %v1321_v28  ;;  %v1319_v33 = vpop.permute.xlu0 %1318  ;;  %v1753_v28 = vrot.slane %v1751_v13, 5  ;;  %v1728_v31 = vsel %vm5036_vm11, %v1719_v15, %v1727_v16  ;;  %v1484_v15 = vld [vmem:[%s4447_s28 + $0x8c] sm:$0xf] }
 0x166   : > { %1421 = vst.msk [vmem:[#allocation2 + $0x18] sm:$0xf] %vm1414_vm12, %v1319_v33  ;;  %v1774_v33 = vshll.u32 %v1479_v22, 16  ;;  %v1816_v19 = vrot.slane %v1814_v5, 6  ;;  %v1831_v22 = vshrl.u32 %v1485_v12, 16 }
 0x167   : > { %v5172_v41 = vor.u32 %v1756_v29, %v1753_v28  ;;  %v1821_v28 = vshrl.u32 %v1484_v15, 16  ;;  %v1824_v29 = vshll.u32 %v1484_v15, 16 }
 0x169   : > { %1887 = vrot.lane.b32.xlu2 %v1648_v48, %s4368_s5  ;;  %v1739_v48 = vrot.slane %v1737_v35, 4  ;;  %v1759_v14 = vrot.slane %v5172_v41, 4 }
 0x16a   : > { %1891 = vrot.lane.b32.xlu1 %v1668_v40, %s4368_s5  ;;  %v1749_v40 = vrot.slane %v1747_v27, 4 }
 0x16b   : > { %1889 = vrot.lane.b32.xlu0 %v1658_v43, %s4368_s5  ;;  %v1341_v63 = vpop.permute.xlu2 %1340  ;;  %v1776_v43 = vrot.slane %v1774_v33, 6  ;;  %v1748_v62 = vsel %vm5036_vm11, %v1739_v48, %v1747_v27  ;;  %v1486_v27 = vld [vmem:[%s4447_s28 + $0x94] sm:$0xf]  ;;  %v1833_v33 = vrot.slane %v1831_v22, 5 }
 0x16c   : > { %v1327_v56 = vpop.permute.xlu1 %1326  ;;  %1432 = vst.msk [vmem:[#allocation2 + $0x44] sm:$0xf] %vm1414_vm12, %v1341_v63  ;;  %v1758_v57 = vsel %vm5036_vm11, %v1749_v40, %v5172_v41  ;;  %v1767_v63 = vor.u32 %v1766_v49, %v1763_v50  ;;  %v1844_v36 = vshll.u32 %v1486_v27, 16  ;;  %v1826_v40 = vrot.slane %v1824_v29, 6 }
 0x16d   : > { %1425 = vst.msk [vmem:[#allocation2 + $0x28] sm:$0xf] %vm1414_vm12, %v1327_v56  ;;  %v1325_v60 = vpop.permute.xlu0 %1324  ;;  %v1804_v56 = vshll.u32 %v1482_v46, 16  ;;  %v1777_v58 = vor.u32 %v1776_v43, %v1773_v42 }
 0x16e   : > { %1424 = vst.msk [vmem:[#allocation2 + $0x24] sm:$0xf] %vm1414_vm12, %v1325_v60  ;;  %v1786_v60 = vrot.slane %v1784_v45, 6  ;;  %v1769_v9 = vrot.slane %v1767_v63, 4 }
 0x16f   : > { %v1806_v24 = vrot.slane %v1804_v56, 6  ;;  %v2005_v56 = vld [vmem:[%s4447_s28 + $0xc] sm:$0xf] }
 0x170   : > { %v1787_v7 = vor.u32 %v1786_v60, %v1783_v59  ;;  %v1778_v25 = vsel %vm5036_vm11, %v1769_v9, %v1777_v58 }
 0x171   : > { %1893 = vrot.lane.b32.xlu2 %v1678_v10, %s4368_s5  ;;  %v1793_v10 = vrot.slane %v1791_v0, 5  ;;  %v1807_v16 = vor.u32 %v1806_v24, %v1803_v3 }
 0x172   : > { %1897 = vrot.lane.b32.xlu1 %v1698_v2, %s4368_s5  ;;  %v1738_v2 = vsel %vm5036_vm11, %v1729_v52, %v1737_v35  ;;  %v1841_v35 = vshrl.u32 %v1486_v27, 16  ;;  %v1789_v42 = vrot.slane %v1787_v7, 4 }
 0x173   : > { %1895 = vrot.lane.b32.xlu0 %v1688_v6, %s4368_s5  ;;  %v1347_v30 = vpop.permute.xlu2 %1346  ;;  %v1779_v6 = vrot.slane %v1777_v58, 4  ;;  %v1797_v26 = vor.u32 %v1796_v11, %v1793_v10  ;;  %v2008_v10 = vld [vmem:[%s4447_s28 + $0x18] sm:$0xf] }
 0x174   : > { %v1333_v17 = vpop.permute.xlu1 %1332  ;;  %1435 = vst.msk [vmem:[#allocation2 + $0x50] sm:$0xf] %vm1414_vm12, %v1347_v30  ;;  %v1768_v30 = vsel %vm5036_vm11, %v1759_v14, %v1767_v63  ;;  %v1843_v46 = vrot.slane %v1841_v35, 5  ;;  %v2083_v63 = vrot.slane %v2005_v56, 6  ;;  %v2012_v35 = vld [vmem:[%s4447_s28 + $0x28] sm:$0xf] }
 0x175   : > { %1428 = vst.msk [vmem:[#allocation2 + $0x34] sm:$0xf] %vm1414_vm12, %v1333_v17  ;;  %v1331_v23 = vpop.permute.xlu0 %1330  ;;  %v1813_v17 = vrot.slane %v1811_v4, 5  ;;  %v1788_v21 = vsel %vm5036_vm11, %v1779_v6, %v1787_v7  ;;  %v1799_v38 = vrot.slane %v1797_v26, 4  ;;  %v1798_v49 = vsel %vm5036_vm11, %v1789_v42, %v1797_v26  ;;  %v2014_v42 = vld [vmem:[%s4447_s28 + $0x30] sm:$0xf] }
 0x176   : > { %1427 = vst.msk [vmem:[#allocation2 + $0x30] sm:$0xf] %vm1414_vm12, %v1331_v23  ;;  %v1834_v23 = vshll.u32 %v1485_v12, 16  ;;  %v2085_v5 = vrot.slane %v2083_v63, 4  ;;  %v2086_v6 = vrot.slane %v2006_v1, 6 }
 0x177   : > { %v1817_v32 = vor.u32 %v1816_v19, %v1813_v17  ;;  %v1808_v48 = vsel %vm5036_vm11, %v1799_v38, %v1807_v16  ;;  %v2007_v12 = vld [vmem:[%s4447_s28 + $0x14] sm:$0xf]  ;;  %v2092_v17 = vrot.slane %v2008_v10, 6  ;;  %v2018_v1 = vld [vmem:[%s4447_s28 + $0x40] sm:$0xf] }
 0x178   : > { %v2088_v18 = vrot.slane %v2086_v6, 4  ;;  %v2019_v10 = vld [vmem:[%s4447_s28 + $0x44] sm:$0xf] }
 0x179   : > { %1899 = vrot.lane.b32.xlu2 %v1708_v39, %s4368_s5  ;;  %v1823_v39 = vrot.slane %v1821_v28, 5  ;;  %v1819_v58 = vrot.slane %v1817_v32, 4  ;;  %v2011_v28 = vld [vmem:[%s4447_s28 + $0x24] sm:$0xf] }
 0x17a   : > { %1903 = vrot.lane.b32.xlu1 %v1728_v31, %s4368_s5  ;;  %v1809_v31 = vrot.slane %v1807_v16, 4  ;;  %v2087_v16 = vsel %vm5235_vm15, %v2085_v5, %v2086_v6 }
 0x17b   : > { %1901 = vrot.lane.b32.xlu0 %v1718_v34, %s4368_s5  ;;  %v1353_v54 = vpop.permute.xlu2 %1352  ;;  %v1836_v34 = vrot.slane %v1834_v23, 6  ;;  %v1827_v50 = vor.u32 %v1826_v40, %v1823_v39  ;;  %v2094_v23 = vrot.slane %v2092_v17, 4  ;;  %v2104_v39 = vrot.slane %v2012_v35, 6 }
 0x17c   : > { %v1339_v47 = vpop.permute.xlu1 %1338  ;;  %1438 = vst.msk [vmem:[#allocation2 + $0x5c] sm:$0xf] %vm1414_vm12, %v1353_v54  ;;  %v1818_v44 = vsel %vm5036_vm11, %v1809_v31, %v1817_v32 }
 0x17d   : > { %1431 = vst.msk [vmem:[#allocation2 + $0x40] sm:$0xf] %vm1414_vm12, %v1339_v47  ;;  %v1337_v51 = vpop.permute.xlu0 %1336  ;;  %v1837_v45 = vor.u32 %v1836_v34, %v1833_v33  ;;  %v1846_v47 = vrot.slane %v1844_v36, 6  ;;  %v1829_v55 = vrot.slane %v1827_v50, 4  ;;  %v1828_v3 = vsel %vm5036_vm11, %v1819_v58, %v1827_v50 }
 0x17e   : > { %1430 = vst.msk [vmem:[#allocation2 + $0x3c] sm:$0xf] %vm1414_vm12, %v1337_v51  ;;  %v1487_v51 = vld [vmem:[%s4447_s28 + $0x98] sm:$0x3]  ;;  %v2101_v33 = vrot.slane %v2011_v28, 6 }
 0x17f   : > { %v1839_v52 = vrot.slane %v1837_v45, 4  ;;  %v1847_v53 = vor.u32 %v1846_v47, %v1843_v46  ;;  %v1851_v59 = vshrl.u32 %v1487_v51, 16  ;;  %v1854_v60 = vshll.u32 %v1487_v51, 16 }
 0x180   : > { %v1838_v0 = vsel %vm5036_vm11, %v1829_v55, %v1837_v45  ;;  %v2103_v38 = vrot.slane %v2101_v33, 4 }
 0x181   : > { %1905 = vrot.lane.b32.xlu2 %v1738_v2, %s4368_s5  ;;  %v2004_v2 = vld [vmem:[%s4447_s28 + $0x8] sm:$0xc]  ;;  %v1853_v24 = vrot.slane %v1851_v59, 5  ;;  %v1856_v4 = vrot.slane %v1854_v60, 6  ;;  %v2016_v59 = vld [vmem:[%s4447_s28 + $0x38] sm:$0xf] }
 0x182   : > { %1909 = vrot.lane.b32.xlu1 %v1758_v57, %s4368_s5  ;;  %v4100_v9 = vrot.slane %v2004_v2, 10  ;;  %v2105_v47 = vsel %vm5235_vm15, %v2103_v38, %v2104_v39  ;;  %v2106_v60 = vrot.slane %v2104_v39, 4  ;;  %v2116_v2 = vrot.slane %v2016_v59, 6  ;;  %v2026_v39 = vld [vmem:[%s4447_s28 + $0x60] sm:$0xf] }
 0x183   : > { %1907 = vrot.lane.b32.xlu0 %v1748_v62, %s4368_s5  ;;  %v1359_v20 = vpop.permute.xlu2 %1358  ;;  %v1848_v62 = vsel %vm5036_vm11, %v1839_v52, %v1847_v53  ;;  %v1857_v14 = vor.u32 %v1856_v4, %v1853_v24  ;;  %v2122_v4 = vrot.slane %v2018_v1, 6 }
 0x184   : > { %v1345_v8 = vpop.permute.xlu1 %1344  ;;  %1441 = vst.msk [vmem:[#allocation2 + $0x68] sm:$0xf] %vm1414_vm12, %v1359_v20  ;;  %v2084_v19 = vsel %vm5235_vm15, %v4100_v9, %v2083_v63  ;;  %v2009_v20 = vld [vmem:[%s4447_s28 + $0x1c] sm:$0xf]  ;;  %v2118_v6 = vrot.slane %v2116_v2, 4 }
 0x185   : > { %1434 = vst.msk [vmem:[#allocation2 + $0x4c] sm:$0xf] %vm1414_vm12, %v1345_v8  ;;  %v1343_v13 = vpop.permute.xlu0 %1342  ;;  %v2124_v28 = vrot.slane %v2122_v4, 4 }
 0x186   : > { %1433 = vst.msk [vmem:[#allocation2 + $0x48] sm:$0xf] %vm1414_vm12, %v1343_v13  ;;  %v1849_v13 = vrot.slane %v1847_v53, 4 }
 0x188   : > { %v1858_v22 = vsel %vm5036_vm11, %v1849_v13, %v1857_v14  ;;  %vm3510_vm11 = vcmask 585216  }
 0x189   : > { %1911 = vrot.lane.b32.xlu2 %v1768_v30, %s4368_s5  ;;  %v2010_v30 = vld [vmem:[%s4447_s28 + $0x20] sm:$0xf] }
 0x18a   : > { %1915 = vrot.lane.b32.xlu1 %v1788_v21, %s4368_s5  ;;  %v2089_v21 = vrot.slane %v2007_v12, 6  ;;  %v2098_v36 = vrot.slane %v2010_v30, 6 }
 0x18b   : > { %1913 = vrot.lane.b32.xlu0 %v1778_v25, %s4368_s5  ;;  %v1365_v43 = vpop.permute.xlu2 %1364  ;;  %v2095_v25 = vrot.slane %v2009_v20, 6 }
 0x18c   : > { %v1351_v37 = vpop.permute.xlu1 %1350  ;;  %1444 = vst.msk [vmem:[#allocation2 + $0x74] sm:$0xf] %vm1414_vm12, %v1365_v43  ;;  %v2091_v27 = vrot.slane %v2089_v21, 4 }
 0x18d   : > { %1437 = vst.msk [vmem:[#allocation2 + $0x58] sm:$0xf] %vm1414_vm12, %v1351_v37  ;;  %v1349_v41 = vpop.permute.xlu0 %1348  ;;  %v2096_v32 = vsel %vm5235_vm15, %v2094_v23, %v2095_v25  ;;  %v2090_v37 = vsel %vm5235_vm15, %v2088_v18, %v2089_v21  ;;  %v2097_v45 = vrot.slane %v2095_v25, 4  ;;  %v2023_v25 = vld [vmem:[%s4447_s28 + $0x54] sm:$0xf] }
 0x18e   : > { %1436 = vst.msk [vmem:[#allocation2 + $0x54] sm:$0xf] %vm1414_vm12, %v1349_v41  ;;  %v2093_v34 = vsel %vm5235_vm15, %v2091_v27, %v2092_v17  ;;  %v2100_v41 = vrot.slane %v2098_v36, 4  ;;  %v2125_v17 = vrot.slane %v2019_v10, 6  ;;  %v2022_v27 = vld [vmem:[%s4447_s28 + $0x50] sm:$0xf] }
 0x18f   : > { %v2099_v52 = vsel %vm5235_vm15, %v2097_v45, %v2098_v36  ;;  %v2137_v18 = vrot.slane %v2023_v25, 6  ;;  %v2146_v45 = vrot.slane %v2026_v39, 6 }
 0x190   : > { %v2102_v50 = vsel %vm5235_vm15, %v2100_v41, %v2101_v33  ;;  %v2127_v23 = vrot.slane %v2125_v17, 4  ;;  %v2134_v33 = vrot.slane %v2022_v27, 6  ;;  %v2025_v41 = vld [vmem:[%s4447_s28 + $0x5c] sm:$0xf] }
 0x191   : > { %1917 = vrot.lane.b32.xlu2 %v1798_v49, %s4368_s5  ;;  %v2015_v49 = vld [vmem:[%s4447_s28 + $0x34] sm:$0xf]  ;;  %v2139_v35 = vrot.slane %v2137_v18, 4 }
 0x192   : > { %1921 = vrot.lane.b32.xlu1 %v1818_v44, %s4368_s5  ;;  %v2013_v44 = vld [vmem:[%s4447_s28 + $0x2c] sm:$0xf]  ;;  %v2136_v38 = vrot.slane %v2134_v33, 4 }
 0x193   : > { %1919 = vrot.lane.b32.xlu0 %v1808_v48, %s4368_s5  ;;  %v1371_v61 = vpop.permute.xlu2 %1370  ;;  %v2110_v48 = vrot.slane %v2014_v42, 6  ;;  %v2107_v51 = vrot.slane %v2013_v44, 6 }
 0x194   : > { %v1357_v54 = vpop.permute.xlu1 %1356  ;;  %1447 = vst.msk [vmem:[#allocation2 + $0x80] sm:$0xf] %vm1414_vm12, %v1371_v61 }
 0x195   : > { %1440 = vst.msk [vmem:[#allocation2 + $0x64] sm:$0xf] %vm1414_vm12, %v1357_v54  ;;  %v1355_v57 = vpop.permute.xlu0 %1354  ;;  %v2112_v53 = vrot.slane %v2110_v48, 4  ;;  %v2113_v54 = vrot.slane %v2015_v49, 6  ;;  %v2109_v56 = vrot.slane %v2107_v51, 4  ;;  %v2148_v49 = vrot.slane %v2146_v45, 4 }
 0x196   : > { %1439 = vst.msk [vmem:[#allocation2 + $0x60] sm:$0xf] %vm1414_vm12, %v1355_v57  ;;  %v2017_v57 = vld [vmem:[%s4447_s28 + $0x3c] sm:$0xf] }
 0x197   : > { %v2119_v63 = vrot.slane %v2017_v57, 6 }
 0x199   : > { %1923 = vrot.lane.b32.xlu2 %v1828_v3, %s4368_s5  ;;  %v2108_v3 = vsel %vm5235_vm15, %v2106_v60, %v2107_v51  ;;  %v2121_v24 = vrot.slane %v2119_v63, 4 }
 0x19a   : > { %1927 = vrot.lane.b32.xlu1 %v1848_v62, %s4368_s5  ;;  %v2114_v62 = vsel %vm5235_vm15, %v2112_v53, %v2113_v54 }
 0x19b   : > { %1925 = vrot.lane.b32.xlu0 %v1838_v0, %s4368_s5  ;;  %v1377_v15 = vpop.permute.xlu2 %1376  ;;  %v2111_v0 = vsel %vm5235_vm15, %v2109_v56, %v2110_v48  ;;  %v2123_v13 = vsel %vm5235_vm15, %v2121_v24, %v2122_v4  ;;  %v2143_v48 = vrot.slane %v2025_v41, 6  ;;  %v2028_v56 = vld [vmem:[%s4447_s28 + $0x68] sm:$0xf]  ;;  %v2032_v4 = vld [vmem:[%s4447_s28 + $0x78] sm:$0xf] }
 0x19c   : > { %v1363_v7 = vpop.permute.xlu1 %1362  ;;  %1450 = vst.msk [vmem:[#allocation2 + $0x8c] sm:$0xf] %vm1414_vm12, %v1377_v15  ;;  %v2120_v15 = vsel %vm5235_vm15, %v2118_v6, %v2119_v63  ;;  %v2152_v63 = vrot.slane %v2028_v56, 6  ;;  %v2031_v6 = vld [vmem:[%s4447_s28 + $0x74] sm:$0xf] }
 0x19d   : > { %1443 = vst.msk [vmem:[#allocation2 + $0x70] sm:$0xf] %vm1414_vm12, %v1363_v7  ;;  %v1361_v11 = vpop.permute.xlu0 %1360  ;;  %v2020_v7 = vld [vmem:[%s4447_s28 + $0x48] sm:$0xf]  ;;  %v2145_v53 = vrot.slane %v2143_v48, 4 }
 0x19e   : > { %1442 = vst.msk [vmem:[#allocation2 + $0x6c] sm:$0xf] %vm1414_vm12, %v1361_v11  ;;  %v2115_v11 = vrot.slane %v2113_v54, 4  ;;  %v2128_v14 = vrot.slane %v2020_v7, 6  ;;  %v2029_v54 = vld [vmem:[%s4447_s28 + $0x6c] sm:$0xf] }
 0x19f   : > { %v2155_v60 = vrot.slane %v2029_v54, 6  ;;  %v2154_v24 = vrot.slane %v2152_v63, 4 }
 0x1a0   : > { %v2130_v20 = vrot.slane %v2128_v14, 4 }
 0x1a1   : > { %1929 = vrot.lane.b32.xlu2 %v1858_v22, %s4368_s5  ;;  %v2157_v1 = vrot.slane %v2155_v60, 4 }
 0x1a2   : > { %2192 = vrot.lane.b32.xlu1 %v2087_v16, %s4369_s6  ;;  %v2021_v16 = vld [vmem:[%s4447_s28 + $0x4c] sm:$0xf] }
 0x1a3   : > { %2190 = vrot.lane.b32.xlu0 %v2084_v19, %s4369_s6  ;;  %v1864_v31 = vpop.permute.xlu2 %1863  ;;  %v2117_v19 = vsel %vm5235_vm15, %v2115_v11, %v2116_v2  ;;  %v2131_v21 = vrot.slane %v2021_v16, 6  ;;  %v2164_v11 = vrot.slane %v2032_v4, 6 }
 0x1a4   : > { %v1369_v26 = vpop.permute.xlu1 %1368  ;;  %1970 = vst.msk [vmem:[#allocation2 + $0x8] sm:$0xf] %vm1967_vm0, %v1864_v31  ;;  %v2129_v31 = vsel %vm5235_vm15, %v2127_v23, %v2128_v14  ;;  %v2161_v14 = vrot.slane %v2031_v6, 6  ;;  %v2034_v23 = vld [vmem:[%s4447_s28 + $0x80] sm:$0xf] }
 0x1a5   : > { %1446 = vst.msk [vmem:[#allocation2 + $0x7c] sm:$0xf] %vm1414_vm12, %v1369_v26  ;;  %v1367_v29 = vpop.permute.xlu0 %1366  ;;  %v2132_v30 = vsel %vm5235_vm15, %v2130_v20, %v2131_v21  ;;  %v2133_v42 = vrot.slane %v2131_v21, 4  ;;  %v2166_v16 = vrot.slane %v2164_v11, 4  ;;  %v2035_v21 = vld [vmem:[%s4447_s28 + $0x84] sm:$0xf] }
 0x1a6   : > { %1445 = vst.msk [vmem:[#allocation2 + $0x78] sm:$0xf] %vm1414_vm12, %v1367_v29  ;;  %v2163_v20 = vrot.slane %v2161_v14, 4 }
 0x1a9   : > { %2194 = vrot.lane.b32.xlu2 %v2090_v37, %s4369_s6 }
 0x1aa   : > { %2198 = vrot.lane.b32.xlu1 %v2096_v32, %s4369_s6  ;;  %v2024_v32 = vld [vmem:[%s4447_s28 + $0x58] sm:$0xf] }
 0x1ab   : > { %2196 = vrot.lane.b32.xlu0 %v2093_v34, %s4369_s6  ;;  %v1870_v46 = vpop.permute.xlu2 %1869  ;;  %v2126_v34 = vsel %vm5235_vm15, %v2124_v28, %v2125_v17  ;;  %v2140_v36 = vrot.slane %v2024_v32, 6  ;;  %v2173_v28 = vrot.slane %v2035_v21, 6  ;;  %v2341_v21 = vld [vmem:[%s4447_s28 + $0x28] sm:$0xf] }
 0x1ac   : > { %v1375_v40 = vpop.permute.xlu1 %1374  ;;  %1973 = vst.msk [vmem:[#allocation2 + $0x14] sm:$0xf] %vm1967_vm0, %v1870_v46  ;;  %v2138_v46 = vsel %vm5235_vm15, %v2136_v38, %v2137_v18  ;;  %v2170_v18 = vrot.slane %v2034_v23, 6  ;;  %v2037_v38 = vld [vmem:[%s4447_s28 + $0x8c] sm:$0xf] }
 0x1ad   : > { %1449 = vst.msk [vmem:[#allocation2 + $0x88] sm:$0xf] %vm1414_vm12, %v1375_v40  ;;  %v1373_v43 = vpop.permute.xlu0 %1372  ;;  %v2141_v44 = vsel %vm5235_vm15, %v2139_v35, %v2140_v36  ;;  %v2142_v57 = vrot.slane %v2140_v36, 4  ;;  %v2175_v32 = vrot.slane %v2173_v28, 4  ;;  %v2038_v36 = vld [vmem:[%s4447_s28 + $0x90] sm:$0xf] }
 0x1ae   : > { %1448 = vst.msk [vmem:[#allocation2 + $0x84] sm:$0xf] %vm1414_vm12, %v1373_v43  ;;  %v2172_v35 = vrot.slane %v2170_v18, 4  ;;  %vm3713_vm12 = vcmask 588800  }
 0x1b1   : > { %2200 = vrot.lane.b32.xlu2 %v2099_v52, %s4369_s6 }
 0x1b2   : > { %2204 = vrot.lane.b32.xlu1 %v2105_v47, %s4369_s6  ;;  %v2027_v47 = vld [vmem:[%s4447_s28 + $0x64] sm:$0xf] }
 0x1b3   : > { %2202 = vrot.lane.b32.xlu0 %v2102_v50, %s4369_s6  ;;  %v1876_v61 = vpop.permute.xlu2 %1875  ;;  %v2135_v50 = vsel %vm5235_vm15, %v2133_v42, %v2134_v33  ;;  %v2149_v51 = vrot.slane %v2027_v47, 6  ;;  %v2182_v42 = vrot.slane %v2038_v36, 6  ;;  %v2344_v36 = vld [vmem:[%s4447_s28 + $0x34] sm:$0xf] }
 0x1b4   : > { %v1862_v55 = vpop.permute.xlu1 %1861  ;;  %1976 = vst.msk [vmem:[#allocation2 + $0x20] sm:$0xf] %vm1967_vm0, %v1876_v61  ;;  %v2147_v61 = vsel %vm5235_vm15, %v2145_v53, %v2146_v45  ;;  %v2179_v45 = vrot.slane %v2037_v38, 6 }
 0x1b5   : > { %1969 = vst.msk [vmem:[#allocation2 + $0x4] sm:$0xf] %vm1967_vm0, %v1862_v55  ;;  %v1860_v58 = vpop.permute.xlu0 %1859  ;;  %v2150_v59 = vsel %vm5235_vm15, %v2148_v49, %v2149_v51  ;;  %v2151_v7 = vrot.slane %v2149_v51, 4  ;;  %v2184_v47 = vrot.slane %v2182_v42, 4  ;;  %v2336_v51 = vld [vmem:[%s4447_s28 + $0x14] sm:$0xf] }
 0x1b6   : > { %1968 = vst.msk [vmem:[#allocation2] sm:$0xf] %vm1967_vm0, %v1860_v58  ;;  %v2181_v49 = vrot.slane %v2179_v45, 4  ;;  %v2411_v56 = vrot.slane %v2336_v51, 6  ;;  %v2347_v51 = vld [vmem:[%s4447_s28 + $0x40] sm:$0xf] }
 0x1b9   : > { %2206 = vrot.lane.b32.xlu2 %v2108_v3, %s4369_s6 }
 0x1ba   : > { %2210 = vrot.lane.b32.xlu1 %v2114_v62, %s4369_s6  ;;  %v2030_v62 = vld [vmem:[%s4447_s28 + $0x70] sm:$0xf] }
 0x1bb   : > { %2208 = vrot.lane.b32.xlu0 %v2111_v0, %s4369_s6  ;;  %v1882_v12 = vpop.permute.xlu2 %1881  ;;  %v2144_v0 = vsel %vm5235_vm15, %v2142_v57, %v2143_v48  ;;  %v2158_v2 = vrot.slane %v2030_v62, 6  ;;  %v2183_v57 = vsel %vm5235_vm15, %v2181_v49, %v2182_v42  ;;  %v2413_v62 = vrot.slane %v2411_v56, 4  ;;  %v2346_v42 = vld [vmem:[%s4447_s28 + $0x3c] sm:$0xf] }
 0x1bc   : > { %v1868_v5 = vpop.permute.xlu1 %1867  ;;  %1979 = vst.msk [vmem:[#allocation2 + $0x2c] sm:$0xf] %vm1967_vm0, %v1882_v12  ;;  %v2156_v12 = vsel %vm5235_vm15, %v2154_v24, %v2155_v60  ;;  %v2338_v24 = vld [vmem:[%s4447_s28 + $0x1c] sm:$0xf] }
 0x1bd   : > { %1972 = vst.msk [vmem:[#allocation2 + $0x10] sm:$0xf] %vm1967_vm0, %v1868_v5  ;;  %v1866_v9 = vpop.permute.xlu0 %1865  ;;  %v2159_v10 = vsel %vm5235_vm15, %v2157_v1, %v2158_v2  ;;  %v2160_v25 = vrot.slane %v2158_v2, 4  ;;  %v2339_v2 = vld [vmem:[%s4447_s28 + $0x20] sm:$0xf] }
 0x1be   : > { %1971 = vst.msk [vmem:[#allocation2 + $0xc] sm:$0xf] %vm1967_vm0, %v1866_v9 }
 0x1c1   : > { %2212 = vrot.lane.b32.xlu2 %v2117_v19, %s4369_s6 }
 0x1c2   : > { %2216 = vrot.lane.b32.xlu1 %v2123_v13, %s4369_s6  ;;  %v2033_v13 = vld [vmem:[%s4447_s28 + $0x7c] sm:$0xf] }
 0x1c3   : > { %2214 = vrot.lane.b32.xlu0 %v2120_v15, %s4369_s6  ;;  %v1888_v29 = vpop.permute.xlu2 %1887  ;;  %v2153_v15 = vsel %vm5235_vm15, %v2151_v7, %v2152_v63  ;;  %v2167_v17 = vrot.slane %v2033_v13, 6 }
 0x1c4   : > { %v1874_v22 = vpop.permute.xlu1 %1873  ;;  %1982 = vst.msk [vmem:[#allocation2 + $0x38] sm:$0xf] %vm1967_vm0, %v1888_v29  ;;  %v2165_v29 = vsel %vm5235_vm15, %v2163_v20, %v2164_v11  ;;  %v2340_v11 = vld [vmem:[%s4447_s28 + $0x24] sm:$0xf] }
 0x1c5   : > { %1975 = vst.msk [vmem:[#allocation2 + $0x1c] sm:$0xf] %vm1967_vm0, %v1874_v22  ;;  %v1872_v26 = vpop.permute.xlu0 %1871  ;;  %v2168_v27 = vsel %vm5235_vm15, %v2166_v16, %v2167_v17  ;;  %v2169_v39 = vrot.slane %v2167_v17, 4 }
 0x1c6   : > { %1974 = vst.msk [vmem:[#allocation2 + $0x18] sm:$0xf] %vm1967_vm0, %v1872_v26 }
 0x1c9   : > { %2218 = vrot.lane.b32.xlu2 %v2126_v34, %s4369_s6 }
 0x1ca   : > { %2222 = vrot.lane.b32.xlu1 %v2132_v30, %s4369_s6  ;;  %v2036_v30 = vld [vmem:[%s4447_s28 + $0x88] sm:$0xf] }
 0x1cb   : > { %2220 = vrot.lane.b32.xlu0 %v2129_v31, %s4369_s6  ;;  %v1894_v43 = vpop.permute.xlu2 %1893  ;;  %v2162_v31 = vsel %vm5235_vm15, %v2160_v25, %v2161_v14  ;;  %v2176_v33 = vrot.slane %v2036_v30, 6 }
 0x1cc   : > { %v1880_v37 = vpop.permute.xlu1 %1879  ;;  %1985 = vst.msk [vmem:[#allocation2 + $0x44] sm:$0xf] %vm1967_vm0, %v1894_v43  ;;  %v2174_v43 = vsel %vm5235_vm15, %v2172_v35, %v2173_v28  ;;  %v2343_v28 = vld [vmem:[%s4447_s28 + $0x30] sm:$0xf] }
 0x1cd   : > { %1978 = vst.msk [vmem:[#allocation2 + $0x28] sm:$0xf] %vm1967_vm0, %v1880_v37  ;;  %v1878_v40 = vpop.permute.xlu0 %1877  ;;  %v2177_v41 = vsel %vm5235_vm15, %v2175_v32, %v2176_v33  ;;  %v2178_v53 = vrot.slane %v2176_v33, 4 }
 0x1ce   : > { %1977 = vst.msk [vmem:[#allocation2 + $0x24] sm:$0xf] %vm1967_vm0, %v1878_v40 }
 0x1cf   : > { %v2180_v60 = vsel %vm5235_vm15, %v2178_v53, %v2179_v45 }
 0x1d1   : > { %2224 = vrot.lane.b32.xlu2 %v2135_v50, %s4369_s6 }
 0x1d2   : > { %2228 = vrot.lane.b32.xlu1 %v2141_v44, %s4369_s6  ;;  %v2039_v44 = vld [vmem:[%s4447_s28 + $0x94] sm:$0xf] }
 0x1d3   : > { %2226 = vrot.lane.b32.xlu0 %v2138_v46, %s4369_s6  ;;  %v1900_v58 = vpop.permute.xlu2 %1899  ;;  %v2171_v46 = vsel %vm5235_vm15, %v2169_v39, %v2170_v18  ;;  %v2185_v48 = vrot.slane %v2039_v44, 6 }
 0x1d4   : > { %v1886_v52 = vpop.permute.xlu1 %1885  ;;  %1988 = vst.msk [vmem:[#allocation2 + $0x50] sm:$0xf] %vm1967_vm0, %v1900_v58  ;;  %v2337_v58 = vld [vmem:[%s4447_s28 + $0x18] sm:$0xf] }
 0x1d5   : > { %1981 = vst.msk [vmem:[#allocation2 + $0x34] sm:$0xf] %vm1967_vm0, %v1886_v52  ;;  %v1884_v55 = vpop.permute.xlu0 %1883  ;;  %v2414_v63 = vrot.slane %v2337_v58, 6  ;;  %v2187_v4 = vrot.slane %v2185_v48, 4  ;;  %v2444_v58 = vrot.slane %v2347_v51, 6 }
 0x1d6   : > { %1980 = vst.msk [vmem:[#allocation2 + $0x30] sm:$0xf] %vm1967_vm0, %v1884_v55  ;;  %v2186_v55 = vsel %vm5235_vm15, %v2184_v47, %v2185_v48 }
 0x1d7   : > { %v2415_v7 = vsel %vm5235_vm15, %v2413_v62, %v2414_v63 }
 0x1d9   : > { %2230 = vrot.lane.b32.xlu2 %v2144_v0, %s4369_s6 }
 0x1da   : > { %2234 = vrot.lane.b32.xlu1 %v2150_v59, %s4369_s6  ;;  %v2335_v59 = vld [vmem:[%s4447_s28 + $0x10] sm:$0xc] }
 0x1db   : > { %2232 = vrot.lane.b32.xlu0 %v2147_v61, %s4369_s6  ;;  %v1906_v9 = vpop.permute.xlu2 %1905  ;;  %v2040_v61 = vld [vmem:[%s4447_s28 + $0x98] sm:$0x3]  ;;  %v4101_v1 = vrot.slane %v2335_v59, 10 }
 0x1dc   : > { %v1892_v3 = vpop.permute.xlu1 %1891  ;;  %1991 = vst.msk [vmem:[#allocation2 + $0x5c] sm:$0xf] %vm1967_vm0, %v1906_v9  ;;  %v2420_v9 = vrot.slane %v2339_v2, 6  ;;  %v2350_v2 = vld [vmem:[%s4447_s28 + $0x4c] sm:$0xf] }
 0x1dd   : > { %1984 = vst.msk [vmem:[#allocation2 + $0x40] sm:$0xf] %vm1967_vm0, %v1892_v3  ;;  %v1890_v5 = vpop.permute.xlu0 %1889 }
 0x1de   : > { %1983 = vst.msk [vmem:[#allocation2 + $0x3c] sm:$0xf] %vm1967_vm0, %v1890_v5  ;;  %v2188_v5 = vrot.slane %v2040_v61, 6  ;;  %v2422_v14 = vrot.slane %v2420_v9, 4 }
 0x1e0   : > { %v2189_v13 = vsel %vm5235_vm15, %v2187_v4, %v2188_v5 }
 0x1e1   : > { %2236 = vrot.lane.b32.xlu2 %v2153_v15, %s4369_s6  ;;  %v2423_v15 = vrot.slane %v2340_v11, 6 }
 0x1e2   : > { %2240 = vrot.lane.b32.xlu1 %v2159_v10, %s4369_s6  ;;  %v2412_v10 = vsel %vm5235_vm15, %v4101_v1, %v2411_v56 }
 0x1e3   : > { %2238 = vrot.lane.b32.xlu0 %v2156_v12, %s4369_s6  ;;  %v1912_v26 = vpop.permute.xlu2 %1911  ;;  %v2417_v12 = vrot.slane %v2338_v24, 6  ;;  %v2424_v25 = vsel %vm5235_vm15, %v2422_v14, %v2423_v15 }
 0x1e4   : > { %v1898_v19 = vpop.permute.xlu1 %1897  ;;  %1994 = vst.msk [vmem:[#allocation2 + $0x68] sm:$0xf] %vm1967_vm0, %v1912_v26 }
 0x1e5   : > { %1987 = vst.msk [vmem:[#allocation2 + $0x4c] sm:$0xf] %vm1967_vm0, %v1898_v19  ;;  %v1896_v22 = vpop.permute.xlu0 %1895  ;;  %v2419_v17 = vrot.slane %v2417_v12, 4  ;;  %v2342_v19 = vld [vmem:[%s4447_s28 + $0x2c] sm:$0xf] }
 0x1e6   : > { %1986 = vst.msk [vmem:[#allocation2 + $0x48] sm:$0xf] %vm1967_vm0, %v1896_v22  ;;  %v2416_v22 = vrot.slane %v2414_v63, 4  ;;  %v2429_v26 = vrot.slane %v2342_v19, 6  ;;  %v2446_v63 = vrot.slane %v2444_v58, 4 }
 0x1e7   : > { %v2353_v19 = vld [vmem:[%s4447_s28 + $0x58] sm:$0xf] }
 0x1e8   : > { %v2418_v30 = vsel %vm5235_vm15, %v2416_v22, %v2417_v12  ;;  %v2431_v18 = vrot.slane %v2429_v26, 4 }
 0x1e9   : > { %2242 = vrot.lane.b32.xlu2 %v2162_v31, %s4369_s6  ;;  %v2432_v31 = vrot.slane %v2343_v28, 6 }
 0x1ea   : > { %2246 = vrot.lane.b32.xlu1 %v2168_v27, %s4369_s6  ;;  %v2421_v27 = vsel %vm5235_vm15, %v2419_v17, %v2420_v9  ;;  %v2453_v9 = vrot.slane %v2350_v2, 6 }
 0x1eb   : > { %2244 = vrot.lane.b32.xlu0 %v2165_v29, %s4369_s6  ;;  %v1918_v40 = vpop.permute.xlu2 %1917  ;;  %v2426_v29 = vrot.slane %v2341_v21, 6  ;;  %v2433_v39 = vsel %vm5235_vm15, %v2431_v18, %v2432_v31 }
 0x1ec   : > { %v1904_v34 = vpop.permute.xlu1 %1903  ;;  %1997 = vst.msk [vmem:[#allocation2 + $0x74] sm:$0xf] %vm1967_vm0, %v1918_v40 }
 0x1ed   : > { %1990 = vst.msk [vmem:[#allocation2 + $0x58] sm:$0xf] %vm1967_vm0, %v1904_v34  ;;  %v1902_v37 = vpop.permute.xlu0 %1901  ;;  %v2428_v33 = vrot.slane %v2426_v29, 4  ;;  %v2345_v34 = vld [vmem:[%s4447_s28 + $0x38] sm:$0xf] }
 0x1ee   : > { %1989 = vst.msk [vmem:[#allocation2 + $0x54] sm:$0xf] %vm1967_vm0, %v1902_v37  ;;  %v2425_v37 = vrot.slane %v2423_v15, 4  ;;  %v2438_v40 = vrot.slane %v2345_v34, 6  ;;  %v2455_v15 = vrot.slane %v2453_v9, 4 }
 0x1f0   : > { %v2427_v44 = vsel %vm5235_vm15, %v2425_v37, %v2426_v29  ;;  %v2440_v45 = vrot.slane %v2438_v40, 4  ;;  %v2355_v29 = vld [vmem:[%s4447_s28 + $0x60] sm:$0xf] }
 0x1f1   : > { %2248 = vrot.lane.b32.xlu2 %v2171_v46, %s4369_s6  ;;  %v2441_v46 = vrot.slane %v2346_v42, 6 }
 0x1f2   : > { %2252 = vrot.lane.b32.xlu1 %v2177_v41, %s4369_s6  ;;  %v2430_v41 = vsel %vm5235_vm15, %v2428_v33, %v2429_v26 }
 0x1f3   : > { %2250 = vrot.lane.b32.xlu0 %v2174_v43, %s4369_s6  ;;  %v1924_v54 = vpop.permute.xlu2 %1923  ;;  %v2435_v43 = vrot.slane %v2344_v36, 6  ;;  %v2468_v36 = vrot.slane %v2355_v29, 6 }
 0x1f4   : > { %v1910_v50 = vpop.permute.xlu1 %1909  ;;  %2000 = vst.msk [vmem:[#allocation2 + $0x80] sm:$0xf] %vm1967_vm0, %v1924_v54  ;;  %v2442_v54 = vsel %vm5235_vm15, %v2440_v45, %v2441_v46 }
 0x1f5   : > { %1993 = vst.msk [vmem:[#allocation2 + $0x64] sm:$0xf] %vm1967_vm0, %v1910_v50  ;;  %v1908_v52 = vpop.permute.xlu0 %1907  ;;  %v2437_v48 = vrot.slane %v2435_v43, 4  ;;  %v2348_v50 = vld [vmem:[%s4447_s28 + $0x44] sm:$0xf] }
 0x1f6   : > { %1992 = vst.msk [vmem:[#allocation2 + $0x60] sm:$0xf] %vm1967_vm0, %v1908_v52  ;;  %v2434_v52 = vrot.slane %v2432_v31, 4 }
 0x1f7   : > { %v2439_v56 = vsel %vm5235_vm15, %v2437_v48, %v2438_v40 }
 0x1f8   : > { %v2436_v59 = vsel %vm5235_vm15, %v2434_v52, %v2435_v43 }
 0x1f9   : > { %2254 = vrot.lane.b32.xlu2 %v2180_v60, %s4369_s6 }
 0x1fa   : > { %2258 = vrot.lane.b32.xlu1 %v2186_v55, %s4369_s6  ;;  %v2447_v55 = vrot.slane %v2348_v50, 6  ;;  %v5524_v50 = vld [vmem:[%s4447_s28 + $0x68] sm:$0xf] }
 0x1fb   : > { %2256 = vrot.lane.b32.xlu0 %v2183_v57, %s4369_s6  ;;  %v1930_v6 = vpop.permute.xlu2 %1929  ;;  %v2349_v57 = vld [vmem:[%s4447_s28 + $0x48] sm:$0xf] }
 0x1fc   : > { %v1916_v0 = vpop.permute.xlu1 %1915  ;;  %2003 = vst.msk [vmem:[#allocation2 + $0x8c] sm:$0xf] %vm1967_vm0, %v1930_v6  ;;  %v2449_v60 = vrot.slane %v2447_v55, 4  ;;  %v2450_v61 = vrot.slane %v2349_v57, 6  ;;  %v2448_v6 = vsel %vm5235_vm15, %v2446_v63, %v2447_v55 }
 0x1fd   : > { %1996 = vst.msk [vmem:[#allocation2 + $0x70] sm:$0xf] %vm1967_vm0, %v1916_v0  ;;  %v1914_v3 = vpop.permute.xlu0 %1913  ;;  %v2351_v0 = vld [vmem:[%s4447_s28 + $0x50] sm:$0xf] }
 0x1fe   : > { %1995 = vst.msk [vmem:[#allocation2 + $0x6c] sm:$0xf] %vm1967_vm0, %v1914_v3  ;;  %v2443_v3 = vrot.slane %v2441_v46, 4  ;;  %v2451_v4 = vsel %vm5235_vm15, %v2449_v60, %v2450_v61  ;;  %v2456_v5 = vrot.slane %v2351_v0, 6  ;;  %v2470_v60 = vrot.slane %v2468_v36, 4 }
 0x200   : > { %v2458_v11 = vrot.slane %v2456_v5, 4  ;;  %v2457_v28 = vsel %vm5235_vm15, %v2455_v15, %v2456_v5 }
 0x201   : > { %2260 = vrot.lane.b32.xlu2 %v2189_v13, %s4369_s6  ;;  %v2681_v13 = vld [vmem:[%s4447_s28 + $0x58] sm:$0xf] }
 0x202   : > { %2520 = vrot.lane.b32.xlu1 %v2415_v7, %s4370_s7  ;;  %v2352_v7 = vld [vmem:[%s4447_s28 + $0x54] sm:$0xf]  ;;  %v2883_v22 = vshrl.u32 %v2681_v13, 16 }
 0x203   : > { %2518 = vrot.lane.b32.xlu0 %v2412_v10, %s4370_s7  ;;  %v2195_v23 = vpop.permute.xlu2 %2194  ;;  %v2445_v10 = vsel %vm5235_vm15, %v2443_v3, %v2444_v58  ;;  %v2459_v12 = vrot.slane %v2352_v7, 6  ;;  %v3235_v58 = vld [vmem:[%s4447_s28 + $0x5c] sm:$0xf]  ;;  %v2671_v3 = vld [vmem:[%s4447_s28 + $0x30] sm:$0xf] }
 0x204   : > { %v1922_v16 = vpop.permute.xlu1 %1921  ;;  %2301 = vst.msk [vmem:[#allocation2 + $0x8] sm:$0xf] %vm2298_vm1, %v2195_v23  ;;  %v2886_v23 = vshll.u32 %v2681_v13, 16  ;;  %v2885_v31 = vrot.slane %v2883_v22, 6  ;;  %v2786_v15 = vshll.u32 %v2671_v3, 16 }
 0x205   : > { %1999 = vst.msk [vmem:[#allocation2 + $0x7c] sm:$0xf] %vm1967_vm0, %v1922_v16  ;;  %v1920_v20 = vpop.permute.xlu0 %1919  ;;  %v2354_v16 = vld [vmem:[%s4447_s28 + $0x5c] sm:$0xf]  ;;  %v5576_v22 = vld [vmem:[%s4447_s28 + $0x30] sm:$0xf] }
 0x206   : > { %1998 = vst.msk [vmem:[#allocation2 + $0x78] sm:$0xf] %vm1967_vm0, %v1920_v20  ;;  %v2452_v20 = vrot.slane %v2450_v61, 4  ;;  %v2465_v26 = vrot.slane %v2354_v16, 6 }
 0x208   : > { %v2454_v18 = vsel %vm5235_vm15, %v2452_v20, %v2453_v9 }
 0x209   : > { %2522 = vrot.lane.b32.xlu2 %v2418_v30, %s4370_s7  ;;  %v2462_v30 = vrot.slane %v2353_v19, 6 }
 0x20a   : > { %2526 = vrot.lane.b32.xlu1 %v2424_v25, %s4370_s7  ;;  %v2460_v25 = vsel %vm5235_vm15, %v2458_v11, %v2459_v12  ;;  %v2673_v11 = vld [vmem:[%s4447_s28 + $0x38] sm:$0xf] }
 0x20b   : > { %2524 = vrot.lane.b32.xlu0 %v2421_v27, %s4370_s7  ;;  %v2201_v38 = vpop.permute.xlu2 %2200  ;;  %v2682_v27 = vld [vmem:[%s4447_s28 + $0x5c] sm:$0xf] }
 0x20c   : > { %v1928_v32 = vpop.permute.xlu1 %1927  ;;  %2304 = vst.msk [vmem:[#allocation2 + $0x14] sm:$0xf] %vm2298_vm1, %v2201_v38  ;;  %v2893_v33 = vshrl.u32 %v2682_v27, 16  ;;  %v2896_v34 = vshll.u32 %v2682_v27, 16  ;;  %v2464_v38 = vrot.slane %v2462_v30, 4  ;;  %v2806_v27 = vshll.u32 %v2673_v11, 16 }
 0x20d   : > { %2002 = vst.msk [vmem:[#allocation2 + $0x88] sm:$0xf] %vm1967_vm0, %v1928_v32  ;;  %v1926_v35 = vpop.permute.xlu0 %1925  ;;  %v2888_v32 = vrot.slane %v2886_v23, 7 }
 0x20e   : > { %2001 = vst.msk [vmem:[#allocation2 + $0x84] sm:$0xf] %vm1967_vm0, %v1926_v35  ;;  %v2467_v35 = vrot.slane %v2465_v26, 4  ;;  %v2895_v43 = vrot.slane %v2893_v33, 6  ;;  %v2466_v48 = vsel %vm5235_vm15, %v2464_v38, %v2465_v26  ;;  %v2803_v26 = vshrl.u32 %v2673_v11, 16 }
 0x20f   : > { %v5516_v42 = vor.u32 %v2888_v32, %v2885_v31  ;;  %v2788_v31 = vrot.slane %v2786_v15, 7 }
 0x210   : > { %v2469_v46 = vsel %vm5235_vm15, %v2467_v35, %v2468_v36  ;;  %v3225_v36 = vld [vmem:[%s4447_s28 + $0x34] sm:$0xf]  ;;  %v2805_v38 = vrot.slane %v2803_v26, 6 }
 0x211   : > { %2528 = vrot.lane.b32.xlu2 %v2427_v44, %s4370_s7  ;;  %v2898_v44 = vrot.slane %v2896_v34, 7  ;;  %v2891_v51 = vrot.slane %v5516_v42, 4  ;;  %v3316_v34 = vrot.slane %v5576_v22, 7 }
 0x212   : > { %2532 = vrot.lane.b32.xlu1 %v2433_v39, %s4370_s7  ;;  %v2356_v39 = vld [vmem:[%s4447_s28 + $0x64] sm:$0xf] }
 0x213   : > { %2530 = vrot.lane.b32.xlu0 %v2430_v41, %s4370_s7  ;;  %v2207_v53 = vpop.permute.xlu2 %2206  ;;  %v2461_v41 = vrot.slane %v2459_v12, 4  ;;  %v5530_v52 = vor.u32 %v2898_v44, %v2895_v43  ;;  %v3318_v43 = vrot.slane %v3316_v34, 4  ;;  %v3319_v44 = vrot.slane %v3225_v36, 7 }
 0x214   : > { %v2193_v47 = vpop.permute.xlu1 %2192  ;;  %2307 = vst.msk [vmem:[#allocation2 + $0x20] sm:$0xf] %vm2298_vm1, %v2207_v53  ;;  %v2683_v53 = vld [vmem:[%s4447_s28 + $0x60] sm:$0xf] }
 0x215   : > { %2300 = vst.msk [vmem:[#allocation2 + $0x4] sm:$0xf] %vm2298_vm1, %v2193_v47  ;;  %v2191_v49 = vpop.permute.xlu0 %2190  ;;  %v2471_v47 = vrot.slane %v2356_v39, 6  ;;  %v2903_v63 = vshrl.u32 %v2683_v53, 16  ;;  %v2906_v0 = vshll.u32 %v2683_v53, 16  ;;  %v2901_v29 = vrot.slane %v5530_v52, 4 }
 0x216   : > { %2299 = vst.msk [vmem:[#allocation2] sm:$0xf] %vm2298_vm1, %v2191_v49  ;;  %v2463_v49 = vsel %vm5235_vm15, %v2461_v41, %v2462_v30  ;;  %v2808_v39 = vrot.slane %v2806_v27, 7 }
 0x217   : > { %v2473_v55 = vrot.slane %v2471_v47, 4  ;;  %v2472_v7 = vsel %vm5235_vm15, %v2470_v60, %v2471_v47  ;;  %v2905_v12 = vrot.slane %v2903_v63, 6  ;;  %v2908_v13 = vrot.slane %v2906_v0, 7 }
 0x219   : > { %2534 = vrot.lane.b32.xlu2 %v2436_v59, %s4370_s7  ;;  %v5542_v59 = vld [vmem:[%s4447_s28 + $0x58] sm:$0xf]  ;;  %v5580_v30 = vor.u32 %v2908_v13, %v2905_v12 }
 0x21a   : > { %2538 = vrot.lane.b32.xlu1 %v2442_v54, %s4370_s7  ;;  %v3346_v5 = vrot.slane %v5542_v59, 7  ;;  %v5632_v12 = vld [vmem:[%s4447_s28 + $0x38] sm:$0xf] }
 0x21b   : > { %2536 = vrot.lane.b32.xlu0 %v2439_v56, %s4370_s7  ;;  %v2213_v24 = vpop.permute.xlu2 %2212  ;;  %v2474_v56 = vrot.slane %v5524_v50, 6 }
 0x21c   : > { %v2199_v62 = vpop.permute.xlu1 %2198  ;;  %2310 = vst.msk [vmem:[#allocation2 + $0x2c] sm:$0xf] %vm2298_vm1, %v2213_v24  ;;  %v3348_v19 = vrot.slane %v3346_v5, 4 }
 0x21d   : > { %2303 = vst.msk [vmem:[#allocation2 + $0x10] sm:$0xf] %vm2298_vm1, %v2199_v62  ;;  %v2197_v1 = vpop.permute.xlu0 %2196  ;;  %v2672_v62 = vld [vmem:[%s4447_s28 + $0x34] sm:$0xf]  ;;  %v2475_v24 = vsel %vm5235_vm15, %v2473_v55, %v2474_v56  ;;  %v2684_v55 = vld [vmem:[%s4447_s28 + $0x64] sm:$0xf] }
 0x21e   : > { %2302 = vst.msk [vmem:[#allocation2 + $0xc] sm:$0xf] %vm2298_vm1, %v2197_v1  ;;  %v2900_v1 = vsel %vm5534_vm4, %v2891_v51, %v5530_v52  ;;  %v2793_v9 = vshrl.u32 %v2672_v62, 16  ;;  %v2691_v51 = vld [vmem:[%s4447_s28 + $0x80] sm:$0xf] }
 0x21f   : > { %v2983_v63 = vshrl.u32 %v2691_v51, 16  ;;  %v2986_v0 = vshll.u32 %v2691_v51, 16 }
 0x220   : > { %v2795_v23 = vrot.slane %v2793_v9, 6 }
 0x221   : > { %2540 = vrot.lane.b32.xlu2 %v2445_v10, %s4370_s7  ;;  %v2796_v10 = vshll.u32 %v2672_v62, 16  ;;  %v5617_v62 = vld [vmem:[%s4447_s28 + $0x88] sm:$0xf]  ;;  %v2985_v13 = vrot.slane %v2983_v63, 6 }
 0x222   : > { %2544 = vrot.lane.b32.xlu1 %v2451_v4, %s4370_s7  ;;  %v3349_v4 = vrot.slane %v3235_v58, 7 }
 0x223   : > { %2542 = vrot.lane.b32.xlu0 %v2448_v6, %s4370_s7  ;;  %v2219_v21 = vpop.permute.xlu2 %2218  ;;  %v5558_v6 = vld [vmem:[%s4447_s28 + $0x60] sm:$0xf] }
 0x224   : > { %v2205_v14 = vpop.permute.xlu1 %2204  ;;  %2313 = vst.msk [vmem:[#allocation2 + $0x38] sm:$0xf] %vm2298_vm1, %v2219_v21  ;;  %v3351_v16 = vrot.slane %v3349_v4, 4  ;;  %v3350_v35 = vsel %vm5570_vm7, %v3348_v19, %v3349_v4 }
 0x225   : > { %2306 = vst.msk [vmem:[#allocation2 + $0x1c] sm:$0xf] %vm2298_vm1, %v2205_v14  ;;  %v2203_v17 = vpop.permute.xlu0 %2202  ;;  %v2783_v14 = vshrl.u32 %v2671_v3, 16  ;;  %v2913_v3 = vshrl.u32 %v2684_v55, 16 }
 0x226   : > { %2305 = vst.msk [vmem:[#allocation2 + $0x18] sm:$0xf] %vm2298_vm1, %v2203_v17  ;;  %v3352_v17 = vrot.slane %v5558_v6, 7 }
 0x228   : > { %v3353_v33 = vsel %vm5570_vm7, %v3351_v16, %v3352_v17 }
 0x229   : > { %2546 = vrot.lane.b32.xlu2 %v2454_v18, %s4370_s7  ;;  %v2785_v18 = vrot.slane %v2783_v14, 6  ;;  %v2988_v14 = vrot.slane %v2986_v0, 7 }
 0x22a   : > { %2550 = vrot.lane.b32.xlu1 %v2460_v25, %s4370_s7  ;;  %v2798_v25 = vrot.slane %v2796_v10, 7  ;;  %v2498_v10 = vrot.slane %v5617_v62, 6 }
 0x22b   : > { %2548 = vrot.lane.b32.xlu0 %v2457_v28, %s4370_s7  ;;  %v2225_v45 = vpop.permute.xlu2 %2224  ;;  %v5595_v41 = vor.u32 %v2788_v31, %v2785_v18 }
 0x22c   : > { %v2211_v37 = vpop.permute.xlu1 %2210  ;;  %2316 = vst.msk [vmem:[#allocation2 + $0x44] sm:$0xf] %vm2298_vm1, %v2225_v45  ;;  %v2364_v45 = vld [vmem:[%s4447_s28 + $0x84] sm:$0xf] }
 0x22d   : > { %2309 = vst.msk [vmem:[#allocation2 + $0x28] sm:$0xf] %vm2298_vm1, %v2211_v37  ;;  %v2209_v40 = vpop.permute.xlu0 %2208  ;;  %v2799_v37 = vor.u32 %v2798_v25, %v2795_v23  ;;  %v2791_v53 = vrot.slane %v5595_v41, 4 }
 0x22e   : > { %2308 = vst.msk [vmem:[#allocation2 + $0x24] sm:$0xf] %vm2298_vm1, %v2209_v40  ;;  %v2910_v40 = vsel %vm5534_vm4, %v2901_v29, %v5580_v30  ;;  %v3322_v29 = vrot.slane %v5632_v12, 7 }
 0x22f   : > { %v2800_v4 = vsel %vm5534_vm4, %v2791_v53, %v2799_v37  ;;  %v3237_v53 = vld [vmem:[%s4447_s28 + $0x64] sm:$0xf] }
 0x231   : > { %2552 = vrot.lane.b32.xlu2 %v2463_v49, %s4370_s7  ;;  %v5605_v49 = vor.u32 %v2808_v39, %v2805_v38 }
 0x232   : > { %2556 = vrot.lane.b32.xlu1 %v2469_v46, %s4370_s7  ;;  %v5603_v46 = vld [vmem:[%s4447_s28 + $0x80] sm:$0xf] }
 0x233   : > { %2554 = vrot.lane.b32.xlu0 %v2466_v48, %s4370_s7  ;;  %v2231_v2 = vpop.permute.xlu2 %2230  ;;  %v2801_v48 = vrot.slane %v2799_v37, 4  ;;  %v2492_v58 = vrot.slane %v5603_v46, 6 }
 0x234   : > { %v2217_v57 = vpop.permute.xlu1 %2216  ;;  %2319 = vst.msk [vmem:[#allocation2 + $0x50] sm:$0xf] %vm2298_vm1, %v2231_v2  ;;  %v2692_v2 = vld [vmem:[%s4447_s28 + $0x84] sm:$0xf] }
 0x235   : > { %2312 = vst.msk [vmem:[#allocation2 + $0x34] sm:$0xf] %vm2298_vm1, %v2217_v57  ;;  %v2215_v61 = vpop.permute.xlu0 %2214  ;;  %v2495_v57 = vrot.slane %v2364_v45, 6  ;;  %v2494_v11 = vrot.slane %v2492_v58, 4  ;;  %v2993_v15 = vshrl.u32 %v2692_v2, 16  ;;  %v2996_v16 = vshll.u32 %v2692_v2, 16 }
 0x236   : > { %2311 = vst.msk [vmem:[#allocation2 + $0x30] sm:$0xf] %vm2298_vm1, %v2215_v61  ;;  %v3320_v61 = vsel %vm5570_vm7, %v3318_v43, %v3319_v44  ;;  %v2693_v43 = vld [vmem:[%s4447_s28 + $0x88] sm:$0xf] }
 0x237   : > { %v2497_v9 = vrot.slane %v2495_v57, 4  ;;  %v2496_v36 = vsel %vm5235_vm15, %v2494_v11, %v2495_v57  ;;  %v2911_v57 = vrot.slane %v5580_v30, 4  ;;  %v5672_v30 = vld [vmem:[%s4447_s28 + $0x68] sm:$0xf] }
 0x239   : > { %2558 = vrot.lane.b32.xlu2 %v2472_v7, %s4370_s7  ;;  %v2685_v7 = vld [vmem:[%s4447_s28 + $0x68] sm:$0xf]  ;;  %v2499_v31 = vsel %vm5235_vm15, %v2497_v9, %v2498_v10 }
 0x23a   : > { %3107 = vrot.lane.b32.xlu1 %v2900_v1, %s4371_s8  ;;  %v2810_v1 = vsel %vm5534_vm4, %v2801_v48, %v5605_v49  ;;  %v2923_v25 = vshrl.u32 %v2685_v7, 16  ;;  %v2926_v26 = vshll.u32 %v2685_v7, 16 }
 0x23b   : > { %2560 = vrot.lane.b32.xlu0 %v2475_v24, %s4370_s7  ;;  %v2237_v32 = vpop.permute.xlu2 %2236  ;;  %v2916_v24 = vshll.u32 %v2684_v55, 16 }
 0x23c   : > { %v2223_v20 = vpop.permute.xlu1 %2222  ;;  %2322 = vst.msk [vmem:[#allocation2 + $0x5c] sm:$0xf] %vm2298_vm1, %v2237_v32  ;;  %v5643_v32 = vor.u32 %v2988_v14, %v2985_v13  ;;  %v2925_v38 = vrot.slane %v2923_v25, 6  ;;  %v2928_v39 = vrot.slane %v2926_v26, 7  ;;  %v3354_v25 = vrot.slane %v3352_v17, 4 }
 0x23d   : > { %2315 = vst.msk [vmem:[#allocation2 + $0x40] sm:$0xf] %vm2298_vm1, %v2223_v20  ;;  %v2221_v28 = vpop.permute.xlu0 %2220  ;;  %v2915_v20 = vrot.slane %v2913_v3, 6  ;;  %v2918_v23 = vrot.slane %v2916_v24, 7  ;;  %v3355_v3 = vrot.slane %v3237_v53, 7 }
 0x23e   : > { %2314 = vst.msk [vmem:[#allocation2 + $0x3c] sm:$0xf] %vm2298_vm1, %v2221_v28  ;;  %v3321_v28 = vrot.slane %v3319_v44, 4  ;;  %v2991_v44 = vrot.slane %v5643_v32, 4  ;;  %v2664_v24 = vld [vmem:[%s4447_s28 + $0x14] sm:$0xf] }
 0x23f   : > { %v2919_v37 = vor.u32 %v2918_v23, %v2915_v20  ;;  %v3358_v20 = vrot.slane %v5672_v30, 7  ;;  %v2674_v26 = vld [vmem:[%s4447_s28 + $0x3c] sm:$0xf]  ;;  %v5689_v17 = vld [vmem:[%s4447_s28 + $0x80] sm:$0xf] }
 0x241   : > { %3109 = vrot.lane.b32.xlu2 %v2910_v40, %s4371_s8  ;;  %v3323_v40 = vsel %vm5570_vm7, %v3321_v28, %v3322_v29  ;;  %v2921_v51 = vrot.slane %v2919_v37, 4  ;;  %v2920_v7 = vsel %vm5534_vm4, %v2911_v57, %v2919_v37  ;;  %v3245_v28 = vld [vmem:[%s4447_s28 + $0x84] sm:$0xf] }
 0x242   : > { %3440 = vrot.lane.b32.xlu1 %v3353_v33, %s4372_s9  ;;  %v2995_v33 = vrot.slane %v2993_v15, 6  ;;  %v2713_v15 = vshrl.u32 %v2664_v24, 16 }
 0x243   : > { %3438 = vrot.lane.b32.xlu0 %v3350_v35, %s4372_s9  ;;  %v2243_v60 = vpop.permute.xlu2 %2242  ;;  %v2998_v35 = vrot.slane %v2996_v16, 7  ;;  %v2716_v16 = vshll.u32 %v2664_v24, 16 }
 0x244   : > { %v2229_v47 = vpop.permute.xlu1 %2228  ;;  %2325 = vst.msk [vmem:[#allocation2 + $0x68] sm:$0xf] %vm2298_vm1, %v2243_v60  ;;  %v3003_v60 = vshrl.u32 %v2693_v43, 16 }
 0x245   : > { %2318 = vst.msk [vmem:[#allocation2 + $0x4c] sm:$0xf] %vm2298_vm1, %v2229_v47  ;;  %v2227_v52 = vpop.permute.xlu0 %2226  ;;  %v2999_v45 = vor.u32 %v2998_v35, %v2995_v33  ;;  %v2663_v47 = vld [vmem:[%s4447_s28 + $0x10] sm:$0xc]  ;;  %v2715_v35 = vrot.slane %v2713_v15, 6 }
 0x246   : > { %2317 = vst.msk [vmem:[#allocation2 + $0x48] sm:$0xf] %vm2298_vm1, %v2227_v52  ;;  %v5657_v52 = vor.u32 %v2928_v39, %v2925_v38  ;;  %v2704_v0 = vshrl.u32 %v2663_v47, 16  ;;  %v3005_v9 = vrot.slane %v3003_v60, 6  ;;  %v2813_v38 = vshrl.u32 %v2674_v26, 16 }
 0x247   : > { %v3000_v2 = vsel %vm5534_vm4, %v2991_v44, %v2999_v45  ;;  %v2816_v39 = vshll.u32 %v2674_v26, 16  ;;  %v2675_v44 = vld [vmem:[%s4447_s28 + $0x40] sm:$0xf] }
 0x248   : > { %v2706_v13 = vrot.slane %v2704_v0, 6  ;;  %v2815_v57 = vrot.slane %v2813_v38, 6 }
 0x249   : > { %3087 = vrot.lane.b32.xlu2 %v2800_v4, %s4371_s8  ;;  %v2930_v4 = vsel %vm5534_vm4, %v2921_v51, %v5657_v52  ;;  %v2818_v60 = vrot.slane %v2816_v39, 7  ;;  %v3227_v39 = vld [vmem:[%s4447_s28 + $0x3c] sm:$0xf] }
 0x24a   : > { %3418 = vrot.lane.b32.xlu1 %v3320_v61, %s4372_s9  ;;  %v3006_v61 = vshll.u32 %v2693_v43, 16  ;;  %v3379_v43 = vrot.slane %v3245_v28, 7 }
 0x24b   : > { %3089 = vrot.lane.b32.xlu0 %v2810_v1, %s4371_s8  ;;  %v2249_v18 = vpop.permute.xlu2 %2248  ;;  %v2707_v1 = vshll.u32 %v2663_v47, 16 }
 0x24c   : > { %v2235_v19 = vpop.permute.xlu1 %2234  ;;  %2328 = vst.msk [vmem:[#allocation2 + $0x74] sm:$0xf] %vm2298_vm1, %v2249_v18  ;;  %v3008_v11 = vrot.slane %v3006_v61, 7  ;;  %v3001_v18 = vrot.slane %v2999_v45, 4  ;;  %v5700_v45 = vld [vmem:[%s4447_s28 + $0x88] sm:$0xf] }
 0x24d   : > { %2321 = vst.msk [vmem:[#allocation2 + $0x58] sm:$0xf] %vm2298_vm1, %v2235_v19  ;;  %v2233_v27 = vpop.permute.xlu0 %2232  ;;  %v2709_v14 = vrot.slane %v2707_v1, 7  ;;  %v3357_v19 = vrot.slane %v3355_v3, 4  ;;  %v2823_v61 = vshrl.u32 %v2675_v44, 16  ;;  %v3381_v1 = vrot.slane %v3379_v43, 4 }
 0x24e   : > { %2320 = vst.msk [vmem:[#allocation2 + $0x54] sm:$0xf] %vm2298_vm1, %v2233_v27 }
 0x24f   : > { %v2710_v33 = vor.u32 %v2709_v14, %v2706_v13  ;;  %v3359_v37 = vsel %vm5570_vm7, %v3357_v19, %v3358_v20  ;;  %v2819_v13 = vor.u32 %v2818_v60, %v2815_v57  ;;  %v2825_v14 = vrot.slane %v2823_v61, 6  ;;  %v2358_v61 = vld [vmem:[%s4447_s28 + $0x6c] sm:$0xf] }
 0x251   : > { %3420 = vrot.lane.b32.xlu2 %v3323_v40, %s4372_s9  ;;  %v3356_v40 = vsel %vm5570_vm7, %v3354_v25, %v3355_v3  ;;  %v2711_v51 = vrot.slane %v2710_v33, 4  ;;  %v2821_v26 = vrot.slane %v2819_v13, 4 }
 0x252   : > { %2576 = vrot.lane.b32.xlu1 %v2499_v31, %s4370_s7  ;;  %v5685_v31 = vor.u32 %v3008_v11, %v3005_v9 }
 0x253   : > { %2574 = vrot.lane.b32.xlu0 %v2496_v36, %s4370_s7  ;;  %v2255_v63 = vpop.permute.xlu2 %2254  ;;  %v2718_v36 = vrot.slane %v2716_v16, 7 }
 0x254   : > { %v2241_v48 = vpop.permute.xlu1 %2240  ;;  %2331 = vst.msk [vmem:[#allocation2 + $0x80] sm:$0xf] %vm2298_vm1, %v2255_v63  ;;  %v3010_v47 = vsel %vm5534_vm4, %v3001_v18, %v5685_v31  ;;  %v2826_v63 = vshll.u32 %v2675_v44, 16  ;;  %v2811_v18 = vrot.slane %v5605_v49, 4 }
 0x255   : > { %2324 = vst.msk [vmem:[#allocation2 + $0x64] sm:$0xf] %vm2298_vm1, %v2241_v48  ;;  %v2239_v55 = vpop.permute.xlu0 %2238  ;;  %v3376_v48 = vrot.slane %v5689_v17, 7  ;;  %v2719_v53 = vor.u32 %v2718_v36, %v2715_v35  ;;  %v3217_v35 = vld [vmem:[%s4447_s28 + $0x14] sm:$0xf] }
 0x256   : > { %2323 = vst.msk [vmem:[#allocation2 + $0x60] sm:$0xf] %vm2298_vm1, %v2239_v55  ;;  %v2665_v55 = vld [vmem:[%s4447_s28 + $0x18] sm:$0xf]  ;;  %v2828_v15 = vrot.slane %v2826_v63, 7  ;;  %v2820_v49 = vsel %vm5534_vm4, %v2811_v18, %v2819_v13 }
 0x257   : > { %v3378_v24 = vrot.slane %v3376_v48, 4  ;;  %v2720_v11 = vsel %vm5534_vm4, %v2711_v51, %v2719_v53  ;;  %v2721_v36 = vrot.slane %v2719_v53, 4  ;;  %v3324_v51 = vrot.slane %v3322_v29, 4  ;;  %v5773_v13 = vld [vmem:[%s4447_s28 + $0x40] sm:$0xf] }
 0x258   : > { %v3325_v53 = vrot.slane %v3227_v39, 7  ;;  %v2477_v29 = vrot.slane %v2358_v61, 6  ;;  %v3328_v18 = vrot.slane %v5773_v13, 7  ;;  %v2695_v39 = vld [vmem:[%s4447_s28 + $0x90] sm:$0xf] }
 0x259   : > { %3111 = vrot.lane.b32.xlu2 %v2920_v7, %s4371_s8  ;;  %v2726_v7 = vshll.u32 %v2665_v55, 16  ;;  %v3380_v19 = vsel %vm5570_vm7, %v3378_v24, %v3379_v43  ;;  %v5743_v43 = vld [vmem:[%s4447_s28 + $0x18] sm:$0xf]  ;;  %v3023_v61 = vshrl.u32 %v2695_v39, 16 }
 0x25a   : > { %3127 = vrot.lane.b32.xlu1 %v3000_v2, %s4371_s8  ;;  %v3382_v2 = vrot.slane %v5700_v45, 7  ;;  %v3298_v60 = vrot.slane %v5743_v43, 7  ;;  %v3326_v12 = vsel %vm5570_vm7, %v3324_v51, %v3325_v53 }
 0x25b   : > { %3113 = vrot.lane.b32.xlu0 %v2930_v4, %s4371_s8  ;;  %v2261_v6 = vpop.permute.xlu2 %2260  ;;  %v2723_v4 = vshrl.u32 %v2665_v55, 16  ;;  %v2728_v25 = vrot.slane %v2726_v7, 7 }
 0x25c   : > { %v2247_v23 = vpop.permute.xlu1 %2246  ;;  %2334 = vst.msk [vmem:[#allocation2 + $0x8c] sm:$0xf] %vm2298_vm1, %v2261_v6  ;;  %v3383_v16 = vsel %vm5570_vm7, %v3381_v1, %v3382_v2 }
 0x25d   : > { %2327 = vst.msk [vmem:[#allocation2 + $0x70] sm:$0xf] %vm2298_vm1, %v2247_v23  ;;  %v2245_v27 = vpop.permute.xlu0 %2244  ;;  %v2725_v23 = vrot.slane %v2723_v4, 6  ;;  %v5767_v4 = vld [vmem:[%s4447_s28 + $0x70] sm:$0xf] }
 0x25e   : > { %2326 = vst.msk [vmem:[#allocation2 + $0x6c] sm:$0xf] %vm2298_vm1, %v2245_v27  ;;  %v5726_v27 = vor.u32 %v2828_v15, %v2825_v14  ;;  %v2479_v14 = vrot.slane %v2477_v29, 4  ;;  %v2480_v15 = vrot.slane %v5767_v4, 6 }
 0x25f   : > { %v5732_v6 = vor.u32 %v2728_v25, %v2725_v23  ;;  %v2694_v23 = vld [vmem:[%s4447_s28 + $0x8c] sm:$0xf] }
 0x260   : > { %v2830_v38 = vsel %vm5534_vm4, %v2821_v26, %v5726_v27  ;;  %v2366_v26 = vld [vmem:[%s4447_s28 + $0x8c] sm:$0xf]  ;;  %v2481_v50 = vsel %vm5235_vm15, %v2479_v14, %v2480_v15  ;;  %v3025_v14 = vrot.slane %v3023_v61, 6 }
 0x261   : > { %3129 = vrot.lane.b32.xlu2 %v3010_v47, %s4371_s8  ;;  %v2730_v44 = vsel %vm5534_vm4, %v2721_v36, %v5732_v6  ;;  %v3216_v47 = vld [vmem:[%s4447_s28 + $0x10] sm:$0x8] }
 0x262   : > { %3444 = vrot.lane.b32.xlu1 %v3359_v37, %s4372_s9 }
 0x263   : > { %3442 = vrot.lane.b32.xlu0 %v3356_v40, %s4372_s9  ;;  %v2523_v9 = vpop.permute.xlu2 %2522  ;;  %v3295_v40 = vrot.slane %v3217_v35, 7 }
 0x264   : > { %v2253_v0 = vpop.permute.xlu1 %2252  ;;  %2629 = vst.msk [vmem:[#allocation2 + $0x8] sm:$0xf] %vm2626_vm8, %v2523_v9 }
 0x265   : > { %2330 = vst.msk [vmem:[#allocation2 + $0x7c] sm:$0xf] %vm2298_vm1, %v2253_v0  ;;  %v2251_v3 = vpop.permute.xlu0 %2250  ;;  %v3297_v57 = vrot.slane %v3295_v40, 4  ;;  %v4102_v0 = vrot.slane %v3216_v47, 11  ;;  %v2931_v47 = vrot.slane %v5657_v52, 4  ;;  %v2500_v52 = vrot.slane %v2498_v10, 4 }
 0x266   : > { %2329 = vst.msk [vmem:[#allocation2 + $0x78] sm:$0xf] %vm2298_vm1, %v2251_v3  ;;  %v2686_v3 = vld [vmem:[%s4447_s28 + $0x6c] sm:$0xf]  ;;  %v3591_v10 = vld [vmem:[%s6415_s1 + $0x20] sm:$0xf] }
 0x267   : > { %v3299_v24 = vsel %vm5570_vm7, %v3297_v57, %v3298_v60  ;;  %v3296_v7 = vsel %vm5570_vm7, %v4102_v0, %v3295_v40  ;;  %v2933_v9 = vshrl.u32 %v2686_v3, 16  ;;  %v5794_v40 = vld [vmem:[%s4447_s28 + $0x90] sm:$0xf] }
 0x269   : > { %3458 = vrot.lane.b32.xlu2 %v3380_v19, %s4372_s9  ;;  %v2476_v19 = vrot.slane %v2474_v56, 4  ;;  %v3013_v56 = vshrl.u32 %v2694_v23, 16 }
 0x26a   : > { %3071 = vrot.lane.b32.xlu1 %v2720_v11, %s4371_s8  ;;  %v2936_v11 = vshll.u32 %v2686_v3, 16 }
 0x26b   : > { %3460 = vrot.lane.b32.xlu0 %v3383_v16, %s4372_s9  ;;  %v2529_v37 = vpop.permute.xlu2 %2528 }
 0x26c   : > { %v2259_v28 = vpop.permute.xlu1 %2258  ;;  %2632 = vst.msk [vmem:[#allocation2 + $0x14] sm:$0xf] %vm2626_vm8, %v2529_v37  ;;  %v2938_v35 = vrot.slane %v2936_v11, 7  ;;  %v3016_v37 = vshll.u32 %v2694_v23, 16 }
 0x26d   : > { %2333 = vst.msk [vmem:[#allocation2 + $0x88] sm:$0xf] %vm2298_vm1, %v2259_v28  ;;  %v2257_v33 = vpop.permute.xlu0 %2256  ;;  %v3327_v28 = vrot.slane %v3325_v53, 4  ;;  %v2687_v53 = vld [vmem:[%s4447_s28 + $0x70] sm:$0xf] }
 0x26e   : > { %2332 = vst.msk [vmem:[#allocation2 + $0x84] sm:$0xf] %vm2298_vm1, %v2257_v33  ;;  %v2935_v33 = vrot.slane %v2933_v9, 6  ;;  %v3018_v57 = vrot.slane %v3016_v37, 7  ;;  %v2943_v3 = vshrl.u32 %v2687_v53, 16 }
 0x270   : > { %v5802_v51 = vor.u32 %v2938_v35, %v2935_v33  ;;  %v2945_v23 = vrot.slane %v2943_v3, 6 }
 0x271   : > { %3073 = vrot.lane.b32.xlu2 %v2730_v44, %s4371_s8  ;;  %v3329_v44 = vsel %vm5570_vm7, %v3327_v28, %v3328_v18 }
 0x272   : > { %3093 = vrot.lane.b32.xlu1 %v2830_v38, %s4371_s8  ;;  %v2478_v38 = vsel %vm5235_vm15, %v2476_v19, %v2477_v29  ;;  %v2940_v9 = vsel %vm5534_vm4, %v2931_v47, %v5802_v51 }
 0x273   : > { %3091 = vrot.lane.b32.xlu0 %v2820_v49, %s4371_s8  ;;  %v2535_v1 = vpop.permute.xlu2 %2534  ;;  %v2501_v49 = vrot.slane %v2366_v26, 6  ;;  %v3703_v26 = vunpack.c.l.b16 %v3591_v10  ;;  %v3360_v10 = vrot.slane %v3358_v20, 4 }
 0x274   : > { %v2521_v55 = vpop.permute.xlu1 %2520  ;;  %2635 = vst.msk [vmem:[#allocation2 + $0x20] sm:$0xf] %vm2626_vm8, %v2535_v1 }
 0x275   : > { %2628 = vst.msk [vmem:[#allocation2 + $0x4] sm:$0xf] %vm2626_vm8, %v2521_v55  ;;  %v2519_v63 = vpop.permute.xlu0 %2518  ;;  %v3015_v55 = vrot.slane %v3013_v56, 6  ;;  %v2503_v1 = vrot.slane %v2501_v49, 4  ;;  %v2502_v19 = vsel %vm5235_vm15, %v2500_v52, %v2501_v49  ;;  %v3708_v35 = vpack.c.b16 %v3703_v26, %v3703_v26  ;;  %v2666_v56 = vld [vmem:[%s4447_s28 + $0x1c] sm:$0xf] }
 0x276   : > { %2627 = vst.msk [vmem:[#allocation2] sm:$0xf] %vm2626_vm8, %v2519_v63  ;;  %v3026_v63 = vshll.u32 %v2695_v39, 16  ;;  %v2941_v49 = vrot.slane %v5802_v51, 4  ;;  %v2733_v51 = vshrl.u32 %v2666_v56, 16  ;;  %v3384_v52 = vrot.slane %v3382_v2, 4 }
 0x277   : > { %v3019_v11 = vor.u32 %v3018_v57, %v3015_v55  ;;  %v5845_v55 = vld [vmem:[%s4447_s28 + $0x8c] sm:$0xf]  ;;  %v2736_v57 = vshll.u32 %v2666_v56, 16 }
 0x278   : > { %v3385_v3 = vrot.slane %v5845_v55, 7 }
 0x279   : > { %3402 = vrot.lane.b32.xlu2 %v3296_v7, %s4372_s9  ;;  %v3021_v28 = vrot.slane %v3019_v11, 4 }
 0x27a   : > { %3422 = vrot.lane.b32.xlu1 %v3326_v12, %s4372_s9  ;;  %v2504_v12 = vrot.slane %v5794_v40, 6  ;;  %v3386_v26 = vsel %vm5570_vm7, %v3384_v52, %v3385_v3  ;;  %v2482_v40 = vrot.slane %v2480_v15, 4 }
 0x27b   : > { %3404 = vrot.lane.b32.xlu0 %v3299_v24, %s4372_s9  ;;  %v2541_v36 = vpop.permute.xlu2 %2540  ;;  %v2946_v24 = vshll.u32 %v2687_v53, 16 }
 0x27c   : > { %v2527_v16 = vpop.permute.xlu1 %2526  ;;  %2638 = vst.msk [vmem:[#allocation2 + $0x2c] sm:$0xf] %vm2626_vm8, %v2541_v36  ;;  %v2505_v62 = vsel %vm5235_vm15, %v2503_v1, %v2504_v12  ;;  %v5852_v1 = vld [vmem:[%s4447_s28 + $0x70] sm:$0xf] }
 0x27d   : > { %2631 = vst.msk [vmem:[#allocation2 + $0x10] sm:$0xf] %vm2626_vm8, %v2527_v16  ;;  %v2525_v25 = vpop.permute.xlu0 %2524  ;;  %v3028_v16 = vrot.slane %v3026_v63, 7  ;;  %v3364_v45 = vrot.slane %v5852_v1, 7 }
 0x27e   : > { %2630 = vst.msk [vmem:[#allocation2 + $0xc] sm:$0xf] %vm2626_vm8, %v2525_v25  ;;  %v2948_v25 = vrot.slane %v2946_v24, 7  ;;  %v4232_v24 = vld [vmem:[%s6415_s1 + $0x10] sm:$0xff] }
 0x27f   : > { %v5827_v33 = vor.u32 %v3028_v16, %v3025_v14 }
 0x280   : > { %v5835_v39 = vor.u32 %v2948_v25, %v2945_v23  ;;  %v4231_v25 = vld [vmem:[%s6415_s1 + $0x8] sm:$0xff] }
 0x281   : > { %3424 = vrot.lane.b32.xlu2 %v3329_v44, %s4372_s9  ;;  %v3770_v44 = vsel %vm3768_vm9, %v3708_v35, 0  ;;  %v3030_v53 = vsel %vm5534_vm4, %v3021_v28, %v5827_v33 }
 0x282   : > { %2564 = vrot.lane.b32.xlu1 %v2481_v50, %s4370_s7  ;;  %v3011_v50 = vrot.slane %v5685_v31, 4  ;;  %4235 = vmatpush.bf16.msra.mxu2 %v3770_v44  ;;  %v4233_v31 = vld [vmem:[%s6415_s1 + $0x18] sm:$0xff] }
 0x283   : > { %2562 = vrot.lane.b32.xlu0 %v2478_v38, %s4370_s7  ;;  %v2547_v7 = vpop.permute.xlu2 %2546  ;;  %v3239_v38 = vld [vmem:[%s4447_s28 + $0x6c] sm:$0xf]  ;;  %4234 = vmatpush.bf16.msra.mxu1 %v3770_v44 }
 0x284   : > { %v2533_v0 = vpop.permute.xlu1 %2532  ;;  %2641 = vst.msk [vmem:[#allocation2 + $0x38] sm:$0xf] %vm2626_vm8, %v2547_v7  ;;  %4236 = vmatpush.bf16.msra.mxu3 %v3770_v44  ;;  %3775 = vmatpush.bf16.msra.mxu0 %v3770_v44  ;;  %v3020_v61 = vsel %vm5534_vm4, %v3011_v50, %v3019_v11  ;;  %v3361_v63 = vrot.slane %v3239_v38, 7  ;;  %v2735_v7 = vrot.slane %v2733_v51, 6  ;;  %v5887_v38 = vld [vmem:[%s4447_s28 + $0x90] sm:$0xf] }
 0x285   : > { %2634 = vst.msk [vmem:[#allocation2 + $0x1c] sm:$0xf] %vm2626_vm8, %v2533_v0  ;;  %v2531_v29 = vpop.permute.xlu0 %2530  ;;  %v2667_v0 = vld [vmem:[%s4447_s28 + $0x20] sm:$0xf] }
 0x286   : > { %2633 = vst.msk [vmem:[#allocation2 + $0x18] sm:$0xf] %vm2626_vm8, %v2531_v29  ;;  %v2950_v29 = vsel %vm5534_vm4, %v2941_v49, %v5835_v39  ;;  %4238 = vmatpush.bf16.msra.mxu2 %v4233_v31  ;;  %v2743_v11 = vshrl.u32 %v2667_v0, 16  ;;  %v2746_v14 = vshll.u32 %v2667_v0, 16  ;;  %v3362_v56 = vsel %vm5570_vm7, %v3360_v10, %v3361_v63  ;;  %v4230_v49 = vld [vmem:[%s6415_s1] sm:$0xff] }
 0x287   : > { %4237 = vmatpush.bf16.msra.mxu1 %v4233_v31  ;;  %v3387_v0 = vrot.slane %v3385_v3, 4 }
 0x288   : > { %4239 = vmatpush.bf16.msra.mxu3 %v4233_v31  ;;  %3776 = vmatpush.bf16.msra.mxu0 %v4233_v31  ;;  %v2745_v35 = vrot.slane %v2743_v11, 6  ;;  %v2731_v31 = vrot.slane %v5732_v6, 4 }
 0x289   : > { %2578 = vrot.lane.b32.xlu2 %v2502_v19, %s4370_s7  ;;  %v2676_v19 = vld [vmem:[%s4447_s28 + $0x44] sm:$0xf] }
 0x28a   : > { %3115 = vrot.lane.b32.xlu1 %v2940_v9, %s4371_s8  ;;  %v2738_v9 = vrot.slane %v2736_v57, 7  ;;  %4241 = vmatpush.bf16.msra.mxu2 %v4232_v24  ;;  %v2833_v20 = vshrl.u32 %v2676_v19, 16  ;;  %v2836_v50 = vshll.u32 %v2676_v19, 16 }
 0x28b   : > { %2580 = vrot.lane.b32.xlu0 %v2505_v62, %s4370_s7  ;;  %v2553_v47 = vpop.permute.xlu2 %2552  ;;  %v3363_v62 = vrot.slane %v3361_v63, 4  ;;  %4240 = vmatpush.bf16.msra.mxu1 %v4232_v24 }
 0x28c   : > { %v2539_v36 = vpop.permute.xlu1 %2538  ;;  %2644 = vst.msk [vmem:[#allocation2 + $0x44] sm:$0xf] %vm2626_vm8, %v2553_v47  ;;  %v2739_v28 = vor.u32 %v2738_v9, %v2735_v7  ;;  %4242 = vmatpush.bf16.msra.mxu3 %v4232_v24  ;;  %3777 = vmatpush.bf16.msra.mxu0 %v4232_v24  ;;  %v2835_v55 = vrot.slane %v2833_v20, 6  ;;  %v2838_v51 = vrot.slane %v2836_v50, 7  ;;  %v3219_v7 = vld [vmem:[%s4447_s28 + $0x1c] sm:$0xf] }
 0x28d   : > { %2637 = vst.msk [vmem:[#allocation2 + $0x28] sm:$0xf] %vm2626_vm8, %v2539_v36  ;;  %v2537_v37 = vpop.permute.xlu0 %2536  ;;  %v2748_v36 = vrot.slane %v2746_v14, 7  ;;  %v3365_v30 = vsel %vm5570_vm7, %v3363_v62, %v3364_v45  ;;  %v3301_v62 = vrot.slane %v3219_v7, 7  ;;  %v2506_v7 = vrot.slane %v2504_v12, 4 }
 0x28e   : > { %2636 = vst.msk [vmem:[#allocation2 + $0x24] sm:$0xf] %vm2626_vm8, %v2537_v37  ;;  %v2677_v37 = vld [vmem:[%s4447_s28 + $0x48] sm:$0xf]  ;;  %4244 = vmatpush.bf16.msra.mxu2 %v4231_v25  ;;  %v2741_v44 = vrot.slane %v2739_v28, 4  ;;  %v2740_v24 = vsel %vm5534_vm4, %v2731_v31, %v2739_v28  ;;  %v2839_v9 = vor.u32 %v2838_v51, %v2835_v55 }
 0x28f   : > { %v5893_v47 = vor.u32 %v2748_v36, %v2745_v35  ;;  %4243 = vmatpush.bf16.msra.mxu1 %v4231_v25  ;;  %v2843_v57 = vshrl.u32 %v2677_v37, 16  ;;  %v5928_v36 = vld [vmem:[%s4447_s28 + $0x48] sm:$0xf]  ;;  %v2360_v31 = vld [vmem:[%s4447_s28 + $0x74] sm:$0xf] }
 0x290   : > { %4245 = vmatpush.bf16.msra.mxu3 %v4231_v25  ;;  %3778 = vmatpush.bf16.msra.mxu0 %v4231_v25  ;;  %v2841_v10 = vrot.slane %v2839_v9, 4  ;;  %v3334_v50 = vrot.slane %v5928_v36, 7  ;;  %v2696_v12 = vld [vmem:[%s4447_s28 + $0x94] sm:$0xf]  ;;  %v2698_v36 = vld [vmem:[%s4447_s28 + $0x9c] sm:$0xf] }
 0x291   : > { %3117 = vrot.lane.b32.xlu2 %v2950_v29, %s4371_s8  ;;  %v3388_v29 = vrot.slane %v5887_v38, 7  ;;  %v2750_v52 = vsel %vm5534_vm4, %v2741_v44, %v5893_v47  ;;  %v2845_v11 = vrot.slane %v2843_v57, 6  ;;  %v3033_v4 = vshrl.u32 %v2696_v12, 16 }
 0x292   : > { %3133 = vrot.lane.b32.xlu1 %v3030_v53, %s4371_s8  ;;  %4247 = vmatpush.bf16.msra.mxu2 %v4230_v49 }
 0x293   : > { %3131 = vrot.lane.b32.xlu0 %v3020_v61, %s4371_s8  ;;  %v2559_v23 = vpop.permute.xlu2 %2558  ;;  %v2846_v61 = vshll.u32 %v2677_v37, 16  ;;  %4246 = vmatpush.bf16.msra.mxu1 %v4230_v49  ;;  %v3389_v14 = vsel %vm5570_vm7, %v3387_v0, %v3388_v29  ;;  %v3330_v37 = vrot.slane %v3328_v18, 4  ;;  %v2368_v18 = vld [vmem:[%s4447_s28 + $0x94] sm:$0xf]  ;;  %v2483_v0 = vrot.slane %v2360_v31, 6 }
 0x294   : > { %v2545_v16 = vpop.permute.xlu1 %2544  ;;  %2647 = vst.msk [vmem:[#allocation2 + $0x50] sm:$0xf] %vm2626_vm8, %v2559_v23  ;;  %4248 = vmatpush.bf16.msra.mxu3 %v4230_v49  ;;  %3779 = vmatpush.bf16.msra.mxu0 %v4230_v49  ;;  %v3229_v23 = vld [vmem:[%s4447_s28 + $0x44] sm:$0xf]  ;;  %v2688_v49 = vld [vmem:[%s4447_s28 + $0x74] sm:$0xf] }
 0x295   : > { %2640 = vst.msk [vmem:[#allocation2 + $0x34] sm:$0xf] %vm2626_vm8, %v2545_v16  ;;  %v2543_v2 = vpop.permute.xlu0 %2542  ;;  %v2848_v3 = vrot.slane %v2846_v61, 7  ;;  %v3300_v16 = vrot.slane %v3298_v60, 4  ;;  %v3331_v28 = vrot.slane %v3229_v23, 7  ;;  %v2953_v57 = vshrl.u32 %v2688_v49, 16 }
 0x296   : > { %2639 = vst.msk [vmem:[#allocation2 + $0x30] sm:$0xf] %vm2626_vm8, %v2543_v2  ;;  %v2956_v61 = vshll.u32 %v2688_v49, 16  ;;  %v2484_v15 = vsel %vm5235_vm15, %v2482_v40, %v2483_v0 }
 0x297   : > { %v5914_v19 = vor.u32 %v2848_v3, %v2845_v11  ;;  %v3302_v60 = vsel %vm5570_vm7, %v3300_v16, %v3301_v62  ;;  %v3333_v20 = vrot.slane %v3331_v28, 4  ;;  %v2955_v11 = vrot.slane %v2953_v57, 6 }
 0x298   : > { %v2958_v3 = vrot.slane %v2956_v61, 7 }
 0x299   : > { %3446 = vrot.lane.b32.xlu2 %v3362_v56, %s4372_s9  ;;  %v2850_v35 = vsel %vm5534_vm4, %v2841_v10, %v5914_v19  ;;  %v3335_v13 = vsel %vm5570_vm7, %v3333_v20, %v3334_v50  ;;  %v2697_v20 = vld [vmem:[%s4447_s28 + $0x98] sm:$0xf] }
 0x29a   : > { %3462 = vrot.lane.b32.xlu1 %v3386_v26, %s4372_s9  ;;  %v2831_v26 = vrot.slane %v5726_v27, 4  ;;  %v3046_v57 = vshll.u32 %v2697_v20, 16 }
 0x29b   : > { %3448 = vrot.lane.b32.xlu0 %v3365_v30, %s4372_s9  ;;  %v3110_v6 = vpop.permute.xlu2 %3109  ;;  %v5935_v30 = vld [vmem:[%s4447_s28 + $0x20] sm:$0xf] }
 0x29c   : > { %v2551_v53 = vpop.permute.xlu1 %2550  ;;  %v2840_v27 = vsel %vm5534_vm4, %v2831_v26, %v2839_v9  ;;  %v3304_v55 = vrot.slane %v5935_v30, 7  ;;  %v2507_v9 = vrot.slane %v2368_v18, 6  ;;  %v3043_v18 = vshrl.u32 %v2697_v20, 16 }
 0x29d   : > { %2643 = vst.msk [vmem:[#allocation2 + $0x40] sm:$0xf] %vm2626_vm8, %v2551_v53  ;;  %v2549_v63 = vpop.permute.xlu0 %2548  ;;  %v3303_v53 = vrot.slane %v3301_v62, 4 }
 0x29e   : > { %2642 = vst.msk [vmem:[#allocation2 + $0x3c] sm:$0xf] %vm2626_vm8, %v2549_v63  ;;  %v3332_v63 = vsel %vm5570_vm7, %v3330_v37, %v3331_v28  ;;  %v2508_v26 = vsel %vm5235_vm15, %v2506_v7, %v2507_v9 }
 0x2a1   : > { %3464 = vrot.lane.b32.xlu2 %v3389_v14, %s4372_s9 }
 0x2a2   : > { %3077 = vrot.lane.b32.xlu1 %v2750_v52, %s4371_s8  ;;  %v5956_v52 = vld [vmem:[%s4447_s28 + $0x78] sm:$0xf] }
 0x2a3   : > { %3075 = vrot.lane.b32.xlu0 %v2740_v24, %s4371_s8  ;;  %v3088_v43 = vpop.permute.xlu2 %3087  ;;  %v3305_v24 = vsel %vm5570_vm7, %v3303_v53, %v3304_v55  ;;  %v2486_v10 = vrot.slane %v5956_v52, 6  ;;  %v3035_v53 = vrot.slane %v3033_v4, 6  ;;  %v6027_v4 = vld [vmem:[%s4447_s28 + $0x98] sm:$0xf] }
 0x2a4   : > { %v2557_v2 = vpop.permute.xlu1 %2556  ;;  %3188 = vst.msk [vmem:[#allocation2 + $0x20] sm:$0xf] %vm3179_vm10, %v3088_v43  ;;  %v2959_v43 = vor.u32 %v2958_v3, %v2955_v11  ;;  %v3241_v11 = vld [vmem:[%s4447_s28 + $0x74] sm:$0xf] }
 0x2a5   : > { %2646 = vst.msk [vmem:[#allocation2 + $0x4c] sm:$0xf] %vm2626_vm8, %v2557_v2  ;;  %v2555_v25 = vpop.permute.xlu0 %2554  ;;  %v2485_v2 = vrot.slane %v2483_v0, 4  ;;  %v2509_v0 = vrot.slane %v2507_v9, 4  ;;  %v3045_v9 = vrot.slane %v3043_v18, 6 }
 0x2a6   : > { %2645 = vst.msk [vmem:[#allocation2 + $0x48] sm:$0xf] %vm2626_vm8, %v2555_v25  ;;  %v2961_v37 = vrot.slane %v2959_v43, 4 }
 0x2a7   : > { %3199 = vst.msk [vmem:[#allocation2 + $0x4c] sm:$0xf] %vm3179_vm10, %v3110_v6  ;;  %v2689_v6 = vld [vmem:[%s4447_s28 + $0x78] sm:$0xf] }
 0x2a8   : > { %v2963_v14 = vshrl.u32 %v2689_v6, 16  ;;  %v2966_v16 = vshll.u32 %v2689_v6, 16 }
 0x2a9   : > { %3095 = vrot.lane.b32.xlu2 %v2840_v27, %s4371_s8  ;;  %v3036_v27 = vshll.u32 %v2696_v12, 16 }
 0x2aa   : > { %3406 = vrot.lane.b32.xlu1 %v3302_v60, %s4372_s9  ;;  %v2965_v60 = vrot.slane %v2963_v14, 6  ;;  %v2968_v28 = vrot.slane %v2966_v16, 7  ;;  %v3048_v14 = vrot.slane %v3046_v57, 7 }
 0x2ab   : > { %3097 = vrot.lane.b32.xlu0 %v2850_v35, %s4371_s8  ;;  %v3421_v51 = vpop.permute.xlu2 %3420  ;;  %v2487_v35 = vsel %vm5235_vm15, %v2485_v2, %v2486_v10  ;;  %v3249_v2 = vld [vmem:[%s4447_s28 + $0x94] sm:$0xf] }
 0x2ac   : > { %v3108_v56 = vpop.permute.xlu1 %3107  ;;  %v5988_v49 = vor.u32 %v2968_v28, %v2965_v60  ;;  %v6012_v12 = vor.u32 %v3048_v14, %v3045_v9 }
 0x2ad   : > { %3198 = vst.msk [vmem:[#allocation2 + $0x48] sm:$0xf] %vm3179_vm10, %v3108_v56  ;;  %v2561_v44 = vpop.permute.xlu0 %2560  ;;  %v5985_v56 = vld [vmem:[%s4447_s28 + $0x98] sm:$0xf] }
 0x2ae   : > { %2648 = vst.msk [vmem:[#allocation2 + $0x54] sm:$0xf] %vm2626_vm8, %v2561_v44  ;;  %v2951_v44 = vrot.slane %v5835_v39, 4  ;;  %v2510_v6 = vrot.slane %v5985_v56, 6  ;;  %v2970_v39 = vsel %vm5534_vm4, %v2961_v37, %v5988_v49  ;;  %v2669_v37 = vld [vmem:[%s4447_s28 + $0x28] sm:$0xf] }
 0x2b0   : > { %v2960_v7 = vsel %vm5534_vm4, %v2951_v44, %v2959_v43  ;;  %v2511_v16 = vsel %vm5235_vm15, %v2509_v0, %v2510_v6  ;;  %v2668_v43 = vld [vmem:[%s4447_s28 + $0x24] sm:$0xf] }
 0x2b1   : > { %3408 = vrot.lane.b32.xlu2 %v3305_v24, %s4372_s9 }
 0x2b2   : > { %3428 = vrot.lane.b32.xlu1 %v3335_v13, %s4372_s9  ;;  %v3038_v13 = vrot.slane %v3036_v27, 7  ;;  %v2753_v27 = vshrl.u32 %v2668_v43, 16 }
 0x2b3   : > { %3426 = vrot.lane.b32.xlu0 %v3332_v63, %s4372_s9  ;;  %v3112_v25 = vpop.permute.xlu2 %3111 }
 0x2b4   : > { %v3441_v62 = vpop.permute.xlu1 %3440  ;;  %3200 = vst.msk [vmem:[#allocation2 + $0x50] sm:$0xf] %vm3179_vm10, %v3112_v25  ;;  %v3039_v3 = vor.u32 %v3038_v13, %v3035_v53  ;;  %v3394_v53 = vrot.slane %v6027_v4, 7  ;;  %v3390_v13 = vrot.slane %v3388_v29, 4 }
 0x2b5   : > { %3530 = vst.msk [vmem:[#allocation2 + $0x4c] sm:$0xf] %vm3510_vm11, %v3441_v62  ;;  %v3439_v23 = vpop.permute.xlu0 %3438  ;;  %v3367_v62 = vrot.slane %v3241_v11, 7 }
 0x2b6   : > { %3529 = vst.msk [vmem:[#allocation2 + $0x48] sm:$0xf] %vm3510_vm11, %v3439_v23  ;;  %v3041_v40 = vrot.slane %v3039_v3, 4 }
 0x2b7   : > { %v3369_v11 = vrot.slane %v3367_v62, 4 }
 0x2b9   : > { %2566 = vrot.lane.b32.xlu2 %v2484_v15, %s4370_s7  ;;  %v2756_v15 = vshll.u32 %v2668_v43, 16 }
 0x2ba   : > { %2582 = vrot.lane.b32.xlu1 %v2508_v26, %s4370_s7  ;;  %v3031_v26 = vrot.slane %v5827_v33, 4  ;;  %v2678_v33 = vld [vmem:[%s4447_s28 + $0x4c] sm:$0xf] }
 0x2bb   : > { %2568 = vrot.lane.b32.xlu0 %v2487_v35, %s4370_s7  ;;  %v3130_v24 = vpop.permute.xlu2 %3129  ;;  %v3050_v35 = vsel %vm5534_vm4, %v3041_v40, %v6012_v12  ;;  %v2853_v18 = vshrl.u32 %v2678_v33, 16  ;;  %v2856_v57 = vshll.u32 %v2678_v33, 16  ;;  %v2758_v0 = vrot.slane %v2756_v15, 7  ;;  %v2679_v40 = vld [vmem:[%s4447_s28 + $0x50] sm:$0xf] }
 0x2bc   : > { %v3419_v31 = vpop.permute.xlu1 %3418  ;;  %v3040_v20 = vsel %vm5534_vm4, %v3031_v26, %v3039_v3  ;;  %v2863_v33 = vshrl.u32 %v2679_v40, 16 }
 0x2bd   : > { %3519 = vst.msk [vmem:[#allocation2 + $0x20] sm:$0xf] %vm3510_vm11, %v3419_v31  ;;  %v3090_v61 = vpop.permute.xlu0 %3089  ;;  %v4221_v63 = vld [vmem:[#allocation2 + $0x48] sm:$0xff]  ;;  %v6035_v31 = vld [vmem:[%s4447_s28 + $0x78] sm:$0xf]  ;;  %v2855_v9 = vrot.slane %v2853_v18, 6 }
 0x2be   : > { %3189 = vst.msk [vmem:[#allocation2 + $0x24] sm:$0xf] %vm3179_vm10, %v3090_v61  ;;  %4200 = vmatmul.msk.bf16.vlgmr.msra.gmra.mxu2 %vm3713_vm12, %v4221_v63  ;;  %v2755_v63 = vrot.slane %v2753_v27, 6  ;;  %v3370_v3 = vrot.slane %v6035_v31, 7  ;;  %v2858_v14 = vrot.slane %v2856_v57, 7  ;;  %v2866_v27 = vshll.u32 %v2679_v40, 16 }
 0x2bf   : > { %3520 = vst.msk [vmem:[#allocation2 + $0x24] sm:$0xf] %vm3510_vm11, %v3421_v51  ;;  %v3366_v51 = vrot.slane %v3364_v45, 4  ;;  %v3391_v45 = vrot.slane %v3249_v2, 7 }
 0x2c0   : > { %v2859_v26 = vor.u32 %v2858_v14, %v2855_v9  ;;  %v2868_v18 = vrot.slane %v2866_v27, 7  ;;  %v2362_v9 = vld [vmem:[%s4447_s28 + $0x7c] sm:$0xf] }
 0x2c1   : > { %2584 = vrot.lane.b32.xlu2 %v2511_v16, %s4370_s7  ;;  %v3368_v28 = vsel %vm5570_vm7, %v3366_v51, %v3367_v62  ;;  %v3393_v44 = vrot.slane %v3391_v45, 4  ;;  %v3392_v16 = vsel %vm5570_vm7, %v3390_v13, %v3391_v45  ;;  %v2759_v51 = vor.u32 %v2758_v0, %v2755_v63 }
 0x2c2   : > { %3121 = vrot.lane.b32.xlu1 %v2970_v39, %s4371_s8  ;;  %v2766_v39 = vshll.u32 %v2669_v37, 16  ;;  %v3306_v0 = vrot.slane %v3304_v55, 4 }
 0x2c3   : > { %3119 = vrot.lane.b32.xlu0 %v2960_v7, %s4371_s8  ;;  %v3459_v60 = vpop.permute.xlu2 %3458  ;;  %v3395_v29 = vsel %vm5570_vm7, %v3393_v44, %v3394_v53  ;;  %v6074_v44 = vld [vmem:[%s4447_s28 + $0x28] sm:$0xf] }
 0x2c4   : > { %v2577_v23 = vpop.permute.xlu1 %2576  ;;  %v2768_v2 = vrot.slane %v2766_v39, 7 }
 0x2c5   : > { %2656 = vst.msk [vmem:[#allocation2 + $0x74] sm:$0xf] %vm2626_vm8, %v2577_v23  ;;  %v2575_v25 = vpop.permute.xlu0 %2574  ;;  %v3371_v23 = vsel %vm5570_vm7, %v3369_v11, %v3370_v3  ;;  %v2861_v11 = vrot.slane %v2859_v26, 4 }
 0x2c6   : > { %2655 = vst.msk [vmem:[#allocation2 + $0x70] sm:$0xf] %vm2626_vm8, %v2575_v25  ;;  %v4216_v1 = vld [vmem:[#allocation2 + $0x20] sm:$0xff]  ;;  %v2851_v25 = vrot.slane %v5914_v19, 4 }
 0x2c7   : > { %3209 = vst.msk [vmem:[#allocation2 + $0x74] sm:$0xf] %vm3179_vm10, %v3130_v24  ;;  %4195 = vmatmul.msk.bf16.vlgmr.msra.gmra.mxu1 %vm3713_vm12, %v4216_v1  ;;  %v2763_v24 = vshrl.u32 %v2669_v37, 16  ;;  %v2761_v1 = vrot.slane %v2759_v51, 4 }
 0x2c8   : > { %v2860_v19 = vsel %vm5534_vm4, %v2851_v25, %v2859_v26  ;;  %v2370_v26 = vld [vmem:[%s4447_s28 + $0x9c] sm:$0xf] }
 0x2c9   : > { %3135 = vrot.lane.b32.xlu2 %v3040_v20, %s4371_s8  ;;  %v2765_v62 = vrot.slane %v2763_v24, 6 }
 0x2ca   : > { %3450 = vrot.lane.b32.xlu1 %v3368_v28, %s4372_s9 }
 0x2cb   : > { %3137 = vrot.lane.b32.xlu0 %v3050_v35, %s4371_s8  ;;  %v3074_v38 = vpop.permute.xlu2 %3073  ;;  %v6061_v45 = vor.u32 %v2768_v2, %v2765_v62  ;;  %v2751_v35 = vrot.slane %v5893_v47, 4  ;;  %v2865_v47 = vrot.slane %v2863_v33, 6  ;;  %v2488_v62 = vrot.slane %v2486_v10, 4 }
 0x2cc   : > { %v3128_v61 = vpop.permute.xlu1 %3127  ;;  %3181 = vst.msk [vmem:[#allocation2 + $0x4] sm:$0xf] %vm3179_vm10, %v3074_v38  ;;  %v2489_v2 = vrot.slane %v2362_v9, 6  ;;  %v2513_v33 = vrot.slane %v2370_v26, 6  ;;  %v2699_v9 = vld [vmem:[%s4447_s28 + $0xa0] sm:$0x7] }
 0x2cd   : > { %3208 = vst.msk [vmem:[#allocation2 + $0x70] sm:$0xf] %vm3179_vm10, %v3128_v61  ;;  %v3114_v7 = vpop.permute.xlu0 %3113  ;;  %v2770_v37 = vsel %vm5534_vm4, %v2761_v1, %v6061_v45  ;;  %v2760_v13 = vsel %vm5534_vm4, %v2751_v35, %v2759_v51  ;;  %v3310_v61 = vrot.slane %v6074_v44, 7  ;;  %v6086_v38 = vor.u32 %v2868_v18, %v2865_v47  ;;  %v2371_v35 = vld [vmem:[%s4447_s28 + $0xa0] sm:$0x3] }
 0x2ce   : > { %3201 = vst.msk [vmem:[#allocation2 + $0x54] sm:$0xf] %vm3179_vm10, %v3114_v7  ;;  %v3231_v7 = vld [vmem:[%s4447_s28 + $0x4c] sm:$0xf]  ;;  %v2490_v10 = vsel %vm5235_vm15, %v2488_v62, %v2489_v2  ;;  %v3056_v47 = vshll.u32 %v2698_v36, 16  ;;  %v3063_v26 = vshrl.u32 %v2699_v9, 16 }
 0x2cf   : > { %3539 = vst.msk [vmem:[#allocation2 + $0x70] sm:$0xf] %vm3510_vm11, %v3459_v60  ;;  %v3221_v60 = vld [vmem:[%s4447_s28 + $0x24] sm:$0xf]  ;;  %v3337_v14 = vrot.slane %v3231_v7, 7  ;;  %v2870_v51 = vsel %vm5534_vm4, %v2861_v11, %v6086_v38  ;;  %v2771_v17 = vrot.slane %v6061_v45, 4 }
 0x2d0   : > { %v3307_v20 = vrot.slane %v3221_v60, 7  ;;  %v3336_v60 = vrot.slane %v3334_v50, 4  ;;  %v3243_v62 = vld [vmem:[%s4447_s28 + $0x7c] sm:$0xf]  ;;  %v3312_v54 = vrot.slane %v3310_v61, 4 }
 0x2d1   : > { %3452 = vrot.lane.b32.xlu2 %v3371_v23, %s4372_s9  ;;  %v3339_v40 = vrot.slane %v3337_v14, 4 }
 0x2d2   : > { %3468 = vrot.lane.b32.xlu1 %v3395_v29, %s4372_s9  ;;  %v3309_v57 = vrot.slane %v3307_v20, 4  ;;  %v3308_v55 = vsel %vm5570_vm7, %v3306_v0, %v3307_v20  ;;  %v2515_v20 = vrot.slane %v2513_v33, 4 }
 0x2d3   : > { %3466 = vrot.lane.b32.xlu0 %v3392_v16, %s4372_s9  ;;  %v3403_v15 = vpop.permute.xlu2 %3402  ;;  %v6099_v16 = vld [vmem:[%s4447_s28 + $0x50] sm:$0xf] }
 0x2d4   : > { %v3445_v43 = vpop.permute.xlu1 %3444  ;;  %v3311_v30 = vsel %vm5570_vm7, %v3309_v57, %v3310_v61  ;;  %v3340_v25 = vrot.slane %v6099_v16, 7  ;;  %v2512_v57 = vrot.slane %v2510_v6, 4 }
 0x2d5   : > { %3532 = vst.msk [vmem:[#allocation2 + $0x54] sm:$0xf] %vm3510_vm11, %v3445_v43  ;;  %v3443_v28 = vpop.permute.xlu0 %3442 }
 0x2d6   : > { %3531 = vst.msk [vmem:[#allocation2 + $0x50] sm:$0xf] %vm3510_vm11, %v3443_v28  ;;  %v2690_v28 = vld [vmem:[%s4447_s28 + $0x7c] sm:$0xf]  ;;  %v3341_v27 = vsel %vm5570_vm7, %v3339_v40, %v3340_v25  ;;  %v2514_v56 = vsel %vm5235_vm15, %v2512_v57, %v2513_v33 }
 0x2d7   : > { %v2973_v50 = vshrl.u32 %v2690_v28, 16 }
 0x2d9   : > { %3079 = vrot.lane.b32.xlu2 %v2760_v13, %s4371_s8  ;;  %v3053_v13 = vshrl.u32 %v2698_v36, 16 }
 0x2da   : > { %3099 = vrot.lane.b32.xlu1 %v2860_v19, %s4371_s8  ;;  %v3338_v19 = vsel %vm5570_vm7, %v3336_v60, %v3337_v14  ;;  %v3051_v14 = vrot.slane %v6012_v12, 4  ;;  %v3373_v12 = vrot.slane %v3243_v62, 7 }
 0x2db   : > { %3081 = vrot.lane.b32.xlu0 %v2770_v37, %s4371_s8  ;;  %v3425_v29 = vpop.permute.xlu2 %3424  ;;  %v2516_v37 = vrot.slane %v2371_v35, 6 }
 0x2dc   : > { %v3072_v63 = vpop.permute.xlu1 %3071  ;;  %v3375_v33 = vrot.slane %v3373_v12, 4 }
 0x2dd   : > { %3180 = vst.msk [vmem:[#allocation2] sm:$0xf] %vm3179_vm10, %v3072_v63  ;;  %v3461_v24 = vpop.permute.xlu0 %3460  ;;  %v4222_v39 = vld [vmem:[#allocation2 + $0x50] sm:$0xff]  ;;  %v2975_v63 = vrot.slane %v2973_v50, 6  ;;  %v2517_v11 = vsel %vm5235_vm15, %v2515_v20, %v2516_v37  ;;  %v3251_v20 = vld [vmem:[%s4447_s28 + $0x9c] sm:$0xf] }
 0x2de   : > { %3540 = vst.msk [vmem:[#allocation2 + $0x74] sm:$0xf] %vm3510_vm11, %v3461_v24  ;;  %4201 = vmatmul.msk.bf16.gmra.mxu2 %vm3713_vm12, %v4222_v39  ;;  %v2491_v39 = vrot.slane %v2489_v2, 4 }
 0x2df   : > { %3511 = vst.msk [vmem:[#allocation2] sm:$0xf] %vm3510_vm11, %v3403_v15  ;;  %v2976_v15 = vshll.u32 %v2690_v28, 16  ;;  %v2670_v28 = vld [vmem:[%s4447_s28 + $0x2c] sm:$0xf] }
 0x2e0   : > { %v2776_v36 = vshll.u32 %v2670_v28, 16 }
 0x2e1   : > { %3101 = vrot.lane.b32.xlu2 %v2870_v51, %s4371_s8  ;;  %v2978_v0 = vrot.slane %v2976_v15, 7  ;;  %v3372_v15 = vrot.slane %v3370_v3, 4 }
 0x2e2   : > { %3412 = vrot.lane.b32.xlu1 %v3311_v30, %s4372_s9  ;;  %v3058_v30 = vrot.slane %v3056_v47, 7  ;;  %v3377_v47 = vsel %vm5570_vm7, %v3375_v33, %v3376_v48  ;;  %v2778_v3 = vrot.slane %v2776_v36, 7 }
 0x2e3   : > { %3410 = vrot.lane.b32.xlu0 %v3308_v55, %s4372_s9  ;;  %v2579_v52 = vpop.permute.xlu2 %2578  ;;  %v2979_v6 = vor.u32 %v2978_v0, %v2975_v63  ;;  %v2493_v55 = vsel %vm5235_vm15, %v2491_v39, %v2492_v58  ;;  %v2971_v58 = vrot.slane %v5988_v49, 4  ;;  %v3374_v0 = vsel %vm5570_vm7, %v3372_v15, %v3373_v12  ;;  %v3252_v39 = vld [vmem:[%s4447_s28 + $0xa0] sm:$0x7]  ;;  %v3233_v12 = vld [vmem:[%s4447_s28 + $0x54] sm:$0xf] }
 0x2e4   : > { %v3094_v23 = vpop.permute.xlu1 %3093  ;;  %2657 = vst.msk [vmem:[#allocation2 + $0x78] sm:$0xf] %vm2626_vm8, %v2579_v52 }
 0x2e5   : > { %3191 = vst.msk [vmem:[#allocation2 + $0x2c] sm:$0xf] %vm3179_vm10, %v3094_v23  ;;  %v3092_v43 = vpop.permute.xlu0 %3091  ;;  %v4226_v1 = vld [vmem:[#allocation2 + $0x70] sm:$0xff]  ;;  %v2981_v40 = vrot.slane %v2979_v6, 4  ;;  %v2980_v52 = vsel %vm5534_vm4, %v2971_v58, %v2979_v6  ;;  %v3400_v6 = vrot.slane %v3252_v39, 7 }
 0x2e6   : > { %3190 = vst.msk [vmem:[#allocation2 + $0x28] sm:$0xf] %vm3179_vm10, %v3092_v43  ;;  %4205 = vmatmul.msk.bf16.vlgmr.msra.gmra.mxu3 %vm3713_vm12, %v4226_v1  ;;  %v3066_v43 = vshll.u32 %v2699_v9, 16  ;;  %v3396_v9 = vrot.slane %v3394_v53, 4 }
 0x2e7   : > { %3522 = vst.msk [vmem:[#allocation2 + $0x2c] sm:$0xf] %vm3510_vm11, %v3425_v29  ;;  %v3055_v29 = vrot.slane %v3053_v13, 6  ;;  %v2990_v49 = vsel %vm5534_vm4, %v2981_v40, %v5643_v32  ;;  %v2680_v32 = vld [vmem:[%s4447_s28 + $0x54] sm:$0xf] }
 0x2e8   : > { %v3068_v35 = vrot.slane %v3066_v43, 7  ;;  %v2873_v57 = vshrl.u32 %v2680_v32, 16  ;;  %v2876_v63 = vshll.u32 %v2680_v32, 16 }
 0x2e9   : > { %3430 = vrot.lane.b32.xlu2 %v3338_v19, %s4372_s9  ;;  %v3059_v51 = vor.u32 %v3058_v30, %v3055_v29 }
 0x2ea   : > { %2570 = vrot.lane.b32.xlu1 %v2490_v10, %s4370_s7  ;;  %v3065_v10 = vrot.slane %v3063_v26, 6  ;;  %v2878_v29 = vrot.slane %v2876_v63, 7 }
 0x2eb   : > { %3432 = vrot.lane.b32.xlu0 %v3341_v27, %s4372_s9  ;;  %v3118_v7 = vpop.permute.xlu2 %3117  ;;  %v3060_v60 = vsel %vm5534_vm4, %v3051_v14, %v3059_v51  ;;  %v2773_v27 = vshrl.u32 %v2670_v28, 16  ;;  %v3061_v37 = vrot.slane %v3059_v51, 4 }
 0x2ec   : > { %v3423_v18 = vpop.permute.xlu1 %3422  ;;  %v3069_v13 = vor.u32 %v3068_v35, %v3065_v10 }
 0x2ed   : > { %3521 = vst.msk [vmem:[#allocation2 + $0x28] sm:$0xf] %vm3510_vm11, %v3423_v18  ;;  %v3405_v24 = vpop.permute.xlu0 %3404  ;;  %v2775_v31 = vrot.slane %v2773_v27, 6 }
 0x2ee   : > { %3512 = vst.msk [vmem:[#allocation2 + $0x4] sm:$0xf] %vm3510_vm11, %v3405_v24  ;;  %v3397_v24 = vrot.slane %v3251_v20, 7 }
 0x2ef   : > { %v2779_v48 = vor.u32 %v2778_v3, %v2775_v31  ;;  %v6264_v3 = vld [vmem:[%s6416_s2] ss:$0 sm:$0xff] }
 0x2f0   : > { %v3398_v4 = vsel %vm5570_vm7, %v3396_v9, %v3397_v24 }
 0x2f1   : > { %2572 = vrot.lane.b32.xlu2 %v2493_v55, %s4370_s7  ;;  %v2780_v45 = vsel %vm5534_vm4, %v2771_v17, %v2779_v48 }
 0x2f2   : > { %2588 = vrot.lane.b32.xlu1 %v2517_v11, %s4370_s7  ;;  %v2875_v11 = vrot.slane %v2873_v57, 6 }
 0x2f3   : > { %2586 = vrot.lane.b32.xlu0 %v2514_v56, %s4370_s7  ;;  %v3447_v1 = vpop.permute.xlu2 %3446  ;;  %v3399_v56 = vrot.slane %v3397_v24, 4 }
 0x2f4   : > { %v2565_v2 = vpop.permute.xlu1 %2564  ;;  %v4217_v23 = vld [vmem:[#allocation2 + $0x28] sm:$0xff]  ;;  %v2879_v51 = vor.u32 %v2878_v29, %v2875_v11 }
 0x2f5   : > { %2650 = vst.msk [vmem:[#allocation2 + $0x5c] sm:$0xf] %vm2626_vm8, %v2565_v2  ;;  %v2563_v46 = vpop.permute.xlu0 %2562  ;;  %v4212_v8 = vld [vmem:[#allocation2] sm:$0xff]  ;;  %4196 = vmatmul.msk.bf16.gmra.mxu1 %vm3713_vm12, %v4217_v23  ;;  %v3401_v62 = vsel %vm5570_vm7, %v3399_v56, %v3400_v6  ;;  %v2871_v23 = vrot.slane %v6086_v38, 4 }
 0x2f6   : > { %2649 = vst.msk [vmem:[#allocation2 + $0x58] sm:$0xf] %vm2626_vm8, %v2563_v46  ;;  %4191 = vmatmul.msk.bf16.vlgmr.msra.gmra.mxu0 %vm3713_vm12, %v4212_v8  ;;  %v2881_v53 = vrot.slane %v2879_v51, 4  ;;  %v3223_v46 = vld [vmem:[%s4447_s28 + $0x2c] sm:$0xf]  ;;  %v2781_v8 = vrot.slane %v2779_v48, 4 }
 0x2f7   : > { %3203 = vst.msk [vmem:[#allocation2 + $0x5c] sm:$0xf] %vm3179_vm10, %v3118_v7  ;;  %v3070_v7 = vsel %vm5534_vm4, %v3061_v37, %v3069_v13  ;;  %v2880_v43 = vsel %vm5534_vm4, %v2871_v23, %v2879_v51  ;;  %s161_s28 = sand.u32 1, %s4355_s13  }
 0x2f8   : > { %v2890_v26 = vsel %vm5534_vm4, %v2881_v53, %v5516_v42  ;;  %v2790_v38 = vsel %vm5534_vm4, %v2781_v8, %v5595_v41  ;;  %s4249_s6 = smul.u32 288, %s161_s28  ;;  %s4016_s19 = scalar_lea.sflag [#allocation4], %s161_s28 }
 0x2f9   : > { %3123 = vrot.lane.b32.xlu2 %v2980_v52, %s4371_s8 }
 0x2fa   : > { %3139 = vrot.lane.b32.xlu1 %v3060_v60, %s4371_s8  ;;  %v3342_v60 = vrot.slane %v3340_v25, 4  ;;  %s6274_s7 = scalar_lea.vmem [#allocation3], %s4249_s6 }
 0x2fb   : > { %3125 = vrot.lane.b32.xlu0 %v2990_v49, %s4371_s8  ;;  %v3465_v18 = vpop.permute.xlu2 %3464  ;;  %v3343_v49 = vrot.slane %v3233_v12, 7 }
 0x2fc   : > { %v3116_v50 = vpop.permute.xlu1 %3115 }
 0x2fd   : > { %3202 = vst.msk [vmem:[#allocation2 + $0x58] sm:$0xf] %vm3179_vm10, %v3116_v50  ;;  %v2581_v19 = vpop.permute.xlu0 %2580  ;;  %v3344_v16 = vsel %vm5570_vm7, %v3342_v60, %v3343_v49  ;;  %v3345_v27 = vrot.slane %v3343_v49, 4 }
 0x2fe   : > { %2658 = vst.msk [vmem:[#allocation2 + $0x7c] sm:$0xf] %vm2626_vm8, %v2581_v19 }
 0x2ff   : > { %3533 = vst.msk [vmem:[#allocation2 + $0x58] sm:$0xf] %vm3510_vm11, %v3447_v1  ;;  %v3313_v1 = vrot.slane %v3223_v46, 7 }
 0x301   : > { %3141 = vrot.lane.b32.xlu2 %v3070_v7, %s4371_s8  ;;  %v3315_v42 = vrot.slane %v3313_v1, 4  ;;  %v3314_v44 = vsel %vm5570_vm7, %v3312_v54, %v3313_v1 }
 0x302   : > { %3456 = vrot.lane.b32.xlu1 %v3377_v47, %s4372_s9 }
 0x303   : > { %3454 = vrot.lane.b32.xlu0 %v3374_v0, %s4372_s9  ;;  %v3096_v14 = vpop.permute.xlu2 %3095  ;;  %v3317_v25 = vsel %vm5570_vm7, %v3315_v42, %v3316_v34  ;;  %v3347_v34 = vsel %vm5570_vm7, %v3345_v27, %v3346_v5 }
 0x304   : > { %v3134_v30 = vpop.permute.xlu1 %3133  ;;  %3192 = vst.msk [vmem:[#allocation2 + $0x30] sm:$0xf] %vm3179_vm10, %v3096_v14 }
 0x305   : > { %3211 = vst.msk [vmem:[#allocation2 + $0x7c] sm:$0xf] %vm3179_vm10, %v3134_v30  ;;  %v3132_v55 = vpop.permute.xlu0 %3131 }
 0x306   : > { %3210 = vst.msk [vmem:[#allocation2 + $0x78] sm:$0xf] %vm3179_vm10, %v3132_v55 }
 0x307   : > { %3542 = vst.msk [vmem:[#allocation2 + $0x7c] sm:$0xf] %vm3510_vm11, %v3465_v18 }
 0x309   : > { %3470 = vrot.lane.b32.xlu2 %v3398_v4, %s4372_s9 }
 0x30a   : > { %3083 = vrot.lane.b32.xlu1 %v2780_v45, %s4371_s8 }
 0x30b   : > { %3472 = vrot.lane.b32.xlu0 %v3401_v62, %s4372_s9  ;;  %v3409_v58 = vpop.permute.xlu2 %3408 }
 0x30c   : > { %v3463_v2 = vpop.permute.xlu1 %3462 }
 0x30d   : > { %3541 = vst.msk [vmem:[#allocation2 + $0x78] sm:$0xf] %vm3510_vm11, %v3463_v2  ;;  %v3449_v40 = vpop.permute.xlu0 %3448 }
 0x30e   : > { %3534 = vst.msk [vmem:[#allocation2 + $0x5c] sm:$0xf] %vm3510_vm11, %v3449_v40 }
 0x311   : > { %3085 = vrot.lane.b32.xlu2 %v2790_v38, %s4371_s8 }
 0x312   : > { %3105 = vrot.lane.b32.xlu1 %v2890_v26, %s4371_s8 }
 0x313   : > { %3103 = vrot.lane.b32.xlu0 %v2880_v43, %s4371_s8  ;;  %v2567_v41 = vpop.permute.xlu2 %2566  ;;  %s4251_s8 = smul.u32 288, %s4415_s16  ;;  %s4028_s16 = sshll.u32 %s6274_s7, 4  ;;  %s4029_s16 = int_to_ptr.vmem [resolvable:$true] %s4028_s16 }
 0x314   : > { %v3078_v28 = vpop.permute.xlu1 %3077  ;;  %v4227_v52 = vld [vmem:[#allocation2 + $0x78] sm:$0xff]  ;;  %2651 = vst.msk [vmem:[#allocation2 + $0x60] sm:$0xf] %vm2626_vm8, %v2567_v41 }
 0x315   : > { %3183 = vst.msk [vmem:[#allocation2 + $0xc] sm:$0xf] %vm3179_vm10, %v3078_v28  ;;  %v3076_v10 = vpop.permute.xlu0 %3075  ;;  %v4223_v35 = vld [vmem:[#allocation2 + $0x58] sm:$0xff]  ;;  %4206 = vmatmul.msk.bf16.gmra.mxu3 %vm3713_vm12, %v4227_v52  ;;  %s4027_s11 = scalar_lea.hbm %s6417_s3, %s4251_s8 }
 0x316   : > { %3182 = vst.msk [vmem:[#allocation2 + $0x8] sm:$0xf] %vm3179_vm10, %v3076_v10  ;;  %4202 = vmatmul.msk.bf16.gmra.mxu2 %vm3713_vm12, %v4223_v35  ;;  %s4030_s17 = sshll.u32 %s4027_s11, 4  ;;  %s4031_s17 = int_to_ptr.hbm [resolvable:$true] %s4030_s17 }
 0x317   : > { %3514 = vst.msk [vmem:[#allocation2 + $0xc] sm:$0xf] %vm3510_vm11, %v3409_v58  ;;  %s4315_s20 = sshra.s32 %s4031_s17, 4  ;;  %s4316_s20 = int_to_ptr.hbm [resolvable:$true] %s4315_s20 }
 0x318   : > { %s4317_s24 = scalar_lea.hbm %s4316_s20, 288  ;;  %p4322_p0 = scmp.lt.s32.totalorder %s4316_s20, %s6417_s3 }
 0x319   : > { %3414 = vrot.lane.b32.xlu2 %v3314_v44, %s4372_s9  ;;  %p4318_p11 = scmp.ne.s32.totalorder %s4316_s20, %s4317_s24  ;;  %p4323_p1 = scmp.lt.s32.totalorder %s4321_s27, %s4317_s24 }
 0x31a   : > { %3434 = vrot.lane.b32.xlu1 %v3344_v16, %s4372_s9 }
 0x31b   : > { %3416 = vrot.lane.b32.xlu0 %v3317_v25, %s4372_s9  ;;  %v2585_v22 = vpop.permute.xlu2 %2584  ;;  %p4319_p12 = pnand %p4318_p11, %p4432_p5  ;;  %p4324_p2 = por %p4323_p1, %p4322_p0 }
 0x31c   : > { %v3407_v61 = vpop.permute.xlu1 %3406  ;;  %2660 = vst.msk [vmem:[#allocation2 + $0x84] sm:$0xf] %vm2626_vm8, %v2585_v22 }
 0x31d   : > { %3513 = vst.msk [vmem:[#allocation2 + $0x8] sm:$0xf] %vm3510_vm11, %v3407_v61  ;;  %v3098_v33 = vpop.permute.xlu0 %3097  ;;  %p4320_p13 = pneg %p4319_p12 }
 0x31e   : > { %3193 = vst.msk [vmem:[#allocation2 + $0x34] sm:$0xf] %vm3179_vm10, %v3098_v33 }
 0x31f   : > { %p4325_p3 = pnand %p4324_p2, %p4320_p13 }
 0x321   : > { %3436 = vrot.lane.b32.xlu2 %v3347_v34, %s4372_s9 }
 0x323   : > { %v3136_v32 = vpop.permute.xlu2 %3135 }
 0x324   : > { %v3429_v36 = vpop.permute.xlu1 %3428  ;;  %v4213_v50 = vld [vmem:[#allocation2 + $0x8] sm:$0xff] }
 0x325   : > { %3524 = vst.msk [vmem:[#allocation2 + $0x34] sm:$0xf] %vm3510_vm11, %v3429_v36  ;;  %v3427_v15 = vpop.permute.xlu0 %3426  ;;  %4192 = vmatmul.msk.bf16.gmra.mxu0 %vm3713_vm12, %v4213_v50 }
 0x326   : > { %3523 = vst.msk [vmem:[#allocation2 + $0x30] sm:$0xf] %vm3510_vm11, %v3427_v15 }
 0x32b   : > { %v3453_v5 = vpop.permute.xlu2 %3452 }
 0x32c   : > { %v2583_v19 = vpop.permute.xlu1 %2582 }
 0x32d   : > { %2659 = vst.msk [vmem:[#allocation2 + $0x80] sm:$0xf] %vm2626_vm8, %v2583_v19  ;;  %v2569_v20 = vpop.permute.xlu0 %2568  ;;  %v4218_v59 = vld [vmem:[#allocation2 + $0x30] sm:$0xff] }
 0x32e   : > { %2652 = vst.msk [vmem:[#allocation2 + $0x64] sm:$0xf] %vm2626_vm8, %v2569_v20  ;;  %4197 = vmatmul.msk.bf16.gmra.mxu1 %vm3713_vm12, %v4218_v59 }
 0x32f   : > { %3212 = vst.msk [vmem:[#allocation2 + $0x80] sm:$0xf] %vm3179_vm10, %v3136_v32 }
 0x333   : > { %v3080_v13 = vpop.permute.xlu2 %3079 }
 0x334   : > { %v3122_v21 = vpop.permute.xlu1 %3121  ;;  %3184 = vst.msk [vmem:[#allocation2 + $0x10] sm:$0xf] %vm3179_vm10, %v3080_v13 }
 0x335   : > { %3205 = vst.msk [vmem:[#allocation2 + $0x64] sm:$0xf] %vm3179_vm10, %v3122_v21  ;;  %v3120_v37 = vpop.permute.xlu0 %3119 }
 0x336   : > { %3204 = vst.msk [vmem:[#allocation2 + $0x60] sm:$0xf] %vm3179_vm10, %v3120_v37 }
 0x337   : > { %3536 = vst.msk [vmem:[#allocation2 + $0x64] sm:$0xf] %vm3510_vm11, %v3453_v5 }
 0x33b   : > { %v3102_v31 = vpop.permute.xlu2 %3101 }
 0x33c   : > { %v3451_v47 = vpop.permute.xlu1 %3450  ;;  %3195 = vst.msk [vmem:[#allocation2 + $0x3c] sm:$0xf] %vm3179_vm10, %v3102_v31 }
 0x33d   : > { %3535 = vst.msk [vmem:[#allocation2 + $0x60] sm:$0xf] %vm3510_vm11, %v3451_v47  ;;  %v3138_v18 = vpop.permute.xlu0 %3137 }
 0x33e   : > { %3213 = vst.msk [vmem:[#allocation2 + $0x84] sm:$0xf] %vm3179_vm10, %v3138_v18 }
 0x341   : > { %v3826_v57 = vpop.f32.mrf.mxu2 }
 0x342   : > { %v3827_v63 = vadd.f32 %v6264_v3, %v3826_v57 }
 0x343   : > { %v3431_v11 = vpop.permute.xlu2 %3430 }
 0x344   : > { %v3469_v0 = vpop.permute.xlu1 %3468  ;;  %v4224_v24 = vld [vmem:[#allocation2 + $0x60] sm:$0xff]  ;;  %vm3889_vm13 = vcmp.ge.f32.partialorder %v3827_v63, 0.0  ;;  %v3925_v39 = vmul.f32 0.1, %v3827_v63  ;;  %v3801_v17 = vpop.f32.mrf.mxu1 }
 0x345   : > { %3544 = vst.msk [vmem:[#allocation2 + $0x84] sm:$0xf] %vm3510_vm11, %v3469_v0  ;;  %v3467_v7 = vpop.permute.xlu0 %3466  ;;  %v3802_v48 = vadd.f32 %v6264_v3, %v3801_v17  ;;  %4203 = vmatmul.msk.bf16.gmra.mxu2 %vm3713_vm12, %v4224_v24 }
 0x346   : > { %3543 = vst.msk [vmem:[#allocation2 + $0x80] sm:$0xf] %vm3510_vm11, %v3467_v7  ;;  %v3961_v29 = vsel %vm3889_vm13, %v3827_v63, %v3925_v39 }
 0x347   : > { %3997 = vst [vmem:[%s6274_s7 + $0x90] sm:$0xff] %v3961_v29  ;;  %vm3879_vm14 = vcmp.ge.f32.partialorder %v3802_v48, 0.0  ;;  %v3915_v30 = vmul.f32 0.1, %v3802_v48 }
 0x349   : > { %v3951_v56 = vsel %vm3879_vm14, %v3802_v48, %v3915_v30  ;;  %v3828_v6 = vpop.f32.mrf.mxu2 }
 0x34a   : > { %3987 = vst [vmem:[%s6274_s7 + $0x40] sm:$0xff] %v3951_v56  ;;  %v3829_v55 = vadd.f32 %v6264_v3, %v3828_v6 }
 0x34b   : > { %v2573_v53 = vpop.permute.xlu2 %2572 }
 0x34c   : > { %v3100_v9 = vpop.permute.xlu1 %3099  ;;  %vm3890_vm15 = vcmp.ge.f32.partialorder %v3829_v55, 0.0  ;;  %v3926_v14 = vmul.f32 0.1, %v3829_v55  ;;  %v3803_v51 = vpop.f32.mrf.mxu1  ;;  %2654 = vst.msk [vmem:[#allocation2 + $0x6c] sm:$0xf] %vm2626_vm8, %v2573_v53 }
 0x34d   : > { %3194 = vst.msk [vmem:[#allocation2 + $0x38] sm:$0xf] %vm3179_vm10, %v3100_v9  ;;  %v3082_v45 = vpop.permute.xlu0 %3081  ;;  %v4228_v62 = vld [vmem:[#allocation2 + $0x80] sm:$0xff]  ;;  %v3804_v4 = vadd.f32 %v6264_v3, %v3803_v51 }
 0x34e   : > { %3185 = vst.msk [vmem:[#allocation2 + $0x14] sm:$0xf] %vm3179_vm10, %v3082_v45  ;;  %v3962_v2 = vsel %vm3890_vm15, %v3829_v55, %v3926_v14  ;;  %4207 = vmatmul.msk.bf16.gmra.mxu3 %vm3713_vm12, %v4228_v62 }
 0x34f   : > { %3525 = vst.msk [vmem:[#allocation2 + $0x38] sm:$0xf] %vm3510_vm11, %v3431_v11  ;;  %vm3880_vm0 = vcmp.ge.f32.partialorder %v3804_v4, 0.0  ;;  %v3916_v23 = vmul.f32 0.1, %v3804_v4 }
 0x350   : > { %3998 = vst [vmem:[%s6274_s7 + $0x98] sm:$0xff] %v3962_v2 }
 0x351   : > { %v3952_v40 = vsel %vm3880_vm0, %v3804_v4, %v3916_v23 }
 0x352   : > { %3988 = vst [vmem:[%s6274_s7 + $0x48] sm:$0xff] %v3952_v40 }
 0x353   : > { %v3124_v58 = vpop.permute.xlu2 %3123 }
 0x354   : > { %v3413_v46 = vpop.permute.xlu1 %3412 }
 0x355   : > { %3516 = vst.msk [vmem:[#allocation2 + $0x14] sm:$0xf] %vm3510_vm11, %v3413_v46  ;;  %v3411_v8 = vpop.permute.xlu0 %3410 }
 0x356   : > { %3515 = vst.msk [vmem:[#allocation2 + $0x10] sm:$0xf] %vm3510_vm11, %v3411_v8 }
 0x35b   : > { %v3142_v1 = vpop.permute.xlu2 %3141 }
 0x35c   : > { %v2571_v26 = vpop.permute.xlu1 %2570 }
 0x35d   : > { %2653 = vst.msk [vmem:[#allocation2 + $0x68] sm:$0xf] %vm2626_vm8, %v2571_v26  ;;  %v3433_v43 = vpop.permute.xlu0 %3432  ;;  %v4214_v12 = vld [vmem:[#allocation2 + $0x10] sm:$0xff] }
 0x35e   : > { %3526 = vst.msk [vmem:[#allocation2 + $0x3c] sm:$0xf] %vm3510_vm11, %v3433_v43  ;;  %4193 = vmatmul.msk.bf16.gmra.mxu0 %vm3713_vm12, %v4214_v12 }
 0x35f   : > { %3206 = vst.msk [vmem:[#allocation2 + $0x68] sm:$0xf] %vm3179_vm10, %v3124_v58 }
 0x361   : > { %v3831_v38 = vpop.f32.mrf.mxu2 }
 0x362   : > { %v3832_v60 = vadd.f32 %v6264_v3, %v3831_v38 }
 0x363   : > { %v3471_v10 = vpop.permute.xlu2 %3470 }
 0x364   : > { %v2589_v49 = vpop.permute.xlu1 %2588  ;;  %vm3891_vm1 = vcmp.ge.f32.partialorder %v3832_v60, 0.0  ;;  %v3927_v28 = vmul.f32 0.1, %v3832_v60 }
 0x365   : > { %2662 = vst.msk [vmem:[#allocation2 + $0x8c] sm:$0xf] %vm2626_vm8, %v2589_v49  ;;  %v2587_v52 = vpop.permute.xlu0 %2586  ;;  %v4219_v42 = vld [vmem:[#allocation2 + $0x38] sm:$0xff] }
 0x366   : > { %2661 = vst.msk [vmem:[#allocation2 + $0x88] sm:$0xf] %vm2626_vm8, %v2587_v52  ;;  %v3963_v35 = vsel %vm3891_vm1, %v3832_v60, %v3927_v28  ;;  %4198 = vmatmul.msk.bf16.gmra.mxu1 %vm3713_vm12, %v4219_v42 }
 0x367   : > { %3215 = vst.msk [vmem:[#allocation2 + $0x8c] sm:$0xf] %vm3179_vm10, %v3142_v1 }
 0x368   : > { %3999 = vst [vmem:[%s6274_s7 + $0xa0] sm:$0xff] %v3963_v35 }
 0x369   : > { %v3833_v54 = vpop.f32.mrf.mxu2  ;;  %v3851_v41 = vpop.f32.mrf.mxu3 }
 0x36a   : > { %v3834_v16 = vadd.f32 %v6264_v3, %v3833_v54  ;;  %v3852_v25 = vadd.f32 %v6264_v3, %v3851_v41 }
 0x36b   : > { %v3086_v36 = vpop.permute.xlu2 %3085 }
 0x36c   : > { %v3140_v44 = vpop.permute.xlu1 %3139  ;;  %vm3892_vm2 = vcmp.ge.f32.partialorder %v3834_v16, 0.0  ;;  %v3928_v61 = vmul.f32 0.1, %v3834_v16  ;;  %vm3899_vm3 = vcmp.ge.f32.partialorder %v3852_v25, 0.0  ;;  %v3935_v33 = vmul.f32 0.1, %v3852_v25 }
 0x36d   : > { %v3126_v27 = vpop.permute.xlu0 %3125  ;;  %3214 = vst.msk [vmem:[#allocation2 + $0x88] sm:$0xf] %vm3179_vm10, %v3140_v44 }
 0x36e   : > { %v3964_v22 = vsel %vm3892_vm2, %v3834_v16, %v3928_v61  ;;  %v3971_v34 = vsel %vm3899_vm3, %v3852_v25, %v3935_v33  ;;  %3207 = vst.msk [vmem:[#allocation2 + $0x6c] sm:$0xf] %vm3179_vm10, %v3126_v27 }
 0x36f   : > { %4000 = vst [vmem:[%s6274_s7 + $0xa8] sm:$0xff] %v3964_v22 }
 0x370   : > { %4007 = vst [vmem:[%s6274_s7 + $0xe0] sm:$0xff] %v3971_v34 }
 0x371   : > { %v3853_v50 = vpop.f32.mrf.mxu3  ;;  %3545 = vst.msk [vmem:[#allocation2 + $0x88] sm:$0xf] %vm3510_vm11, %v3471_v10 }
 0x372   : > { %v3854_v15 = vadd.f32 %v6264_v3, %v3853_v50  ;;  %v3806_v32 = vpop.f32.mrf.mxu1  ;;  %3187 = vst.msk [vmem:[#allocation2 + $0x1c] sm:$0xf] %vm3179_vm10, %v3086_v36 }
 0x373   : > { %v3781_v20 = vpop.f32.mrf.mxu0  ;;  %v3807_v59 = vadd.f32 %v6264_v3, %v3806_v32  ;;  %v3415_v63 = vpop.permute.xlu2 %3414 }
 0x374   : > { %v3457_v19 = vpop.permute.xlu1 %3456  ;;  %vm3900_vm4 = vcmp.ge.f32.partialorder %v3854_v15, 0.0  ;;  %v3936_v5 = vmul.f32 0.1, %v3854_v15  ;;  %v3782_v37 = vadd.f32 %v6264_v3, %v3781_v20 }
 0x375   : > { %3538 = vst.msk [vmem:[#allocation2 + $0x6c] sm:$0xf] %vm3510_vm11, %v3457_v19  ;;  %v3455_v21 = vpop.permute.xlu0 %3454  ;;  %vm3881_vm5 = vcmp.ge.f32.partialorder %v3807_v59, 0.0  ;;  %v3917_v13 = vmul.f32 0.1, %v3807_v59 }
 0x376   : > { %3537 = vst.msk [vmem:[#allocation2 + $0x68] sm:$0xf] %vm3510_vm11, %v3455_v21  ;;  %v3972_v47 = vsel %vm3900_vm4, %v3854_v15, %v3936_v5  ;;  %vm3871_vm6 = vcmp.ge.f32.partialorder %v3782_v37, 0.0  ;;  %v3907_v18 = vmul.f32 0.1, %v3782_v37 }
 0x377   : > { %4008 = vst [vmem:[%s6274_s7 + $0xe8] sm:$0xff] %v3972_v47  ;;  %v3953_v31 = vsel %vm3881_vm5, %v3807_v59, %v3917_v13 }
 0x378   : > { %v3943_v57 = vsel %vm3871_vm6, %v3782_v37, %v3907_v18  ;;  %3989 = vst [vmem:[%s6274_s7 + $0x50] sm:$0xff] %v3953_v31 }
 0x379   : > { %3979 = vst [vmem:[%s6274_s7] sm:$0xff] %v3943_v57 }
 0x37a   : > { %v3808_v0 = vpop.f32.mrf.mxu1 }
 0x37b   : > { %v3783_v39 = vpop.f32.mrf.mxu0  ;;  %v3809_v7 = vadd.f32 %v6264_v3, %v3808_v0  ;;  %v3437_v9 = vpop.permute.xlu2 %3436 }
 0x37c   : > { %v3084_v24 = vpop.permute.xlu1 %3083  ;;  %v3784_v48 = vadd.f32 %v6264_v3, %v3783_v39 }
 0x37d   : > { %3186 = vst.msk [vmem:[#allocation2 + $0x18] sm:$0xf] %vm3179_vm10, %v3084_v24  ;;  %v3473_v17 = vpop.permute.xlu0 %3472  ;;  %v4225_v11 = vld [vmem:[#allocation2 + $0x68] sm:$0xff]  ;;  %vm3882_vm7 = vcmp.ge.f32.partialorder %v3809_v7, 0.0  ;;  %v3918_v29 = vmul.f32 0.1, %v3809_v7 }
 0x37e   : > { %3546 = vst.msk [vmem:[#allocation2 + $0x8c] sm:$0xf] %vm3510_vm11, %v3473_v17  ;;  %vm3872_vm8 = vcmp.ge.f32.partialorder %v3784_v48, 0.0  ;;  %v3908_v30 = vmul.f32 0.1, %v3784_v48  ;;  %4204 = vmatmul.msk.bf16.gmra.mxu2 %vm3713_vm12, %v4225_v11 }
 0x37f   : > { %3517 = vst.msk [vmem:[#allocation2 + $0x18] sm:$0xf] %vm3510_vm11, %v3415_v63  ;;  %v3954_v56 = vsel %vm3882_vm7, %v3809_v7, %v3918_v29 }
 0x380   : > { %v3944_v6 = vsel %vm3872_vm8, %v3784_v48, %v3908_v30  ;;  %3990 = vst [vmem:[%s6274_s7 + $0x58] sm:$0xff] %v3954_v56 }
 0x381   : > { %3980 = vst [vmem:[%s6274_s7 + $0x8] sm:$0xff] %v3944_v6 }
 0x384   : > { %v3106_v55 = vpop.permute.xlu1 %3105 }
 0x385   : > { %3197 = vst.msk [vmem:[#allocation2 + $0x44] sm:$0xf] %vm3179_vm10, %v3106_v55  ;;  %v3104_v14 = vpop.permute.xlu0 %3103  ;;  %v4229_v45 = vld [vmem:[#allocation2 + $0x88] sm:$0xff] }
 0x386   : > { %3196 = vst.msk [vmem:[#allocation2 + $0x40] sm:$0xf] %vm3179_vm10, %v3104_v14  ;;  %4208 = vmatmul.msk.bf16.gmra.mxu3 %vm3713_vm12, %v4229_v45 }
 0x387   : > { %3528 = vst.msk [vmem:[#allocation2 + $0x44] sm:$0xf] %vm3510_vm11, %v3437_v9 }
 0x38c   : > { %v3435_v51 = vpop.permute.xlu1 %3434 }
 0x38d   : > { %3527 = vst.msk [vmem:[#allocation2 + $0x40] sm:$0xf] %vm3510_vm11, %v3435_v51  ;;  %v3417_v62 = vpop.permute.xlu0 %3416 }
 0x38e   : > { %3518 = vst.msk [vmem:[#allocation2 + $0x1c] sm:$0xf] %vm3510_vm11, %v3417_v62 }
 0x394   : > { %v4220_v4 = vld [vmem:[#allocation2 + $0x40] sm:$0xff] }
 0x395   : > { %v4215_v53 = vld [vmem:[#allocation2 + $0x18] sm:$0xff]  ;;  %4199 = vmatmul.msk.bf16.gmra.mxu1 %vm3713_vm12, %v4220_v4 }
 0x396   : > { %4194 = vmatmul.msk.bf16.gmra.mxu0 %vm3713_vm12, %v4215_v53 }
 0x398   : > { %v3856_v2 = vpop.f32.mrf.mxu3 }
 0x399   : > { %v3836_v23 = vpop.f32.mrf.mxu2  ;;  %v3857_v40 = vadd.f32 %v6264_v3, %v3856_v2 }
 0x39a   : > { %v3837_v46 = vadd.f32 %v6264_v3, %v3836_v23 }
 0x39b   : > { %vm3901_vm9 = vcmp.ge.f32.partialorder %v3857_v40, 0.0  ;;  %v3937_v8 = vmul.f32 0.1, %v3857_v40 }
 0x39c   : > { %vm3893_vm10 = vcmp.ge.f32.partialorder %v3837_v46, 0.0  ;;  %v3929_v58 = vmul.f32 0.1, %v3837_v46 }
 0x39d   : > { %v3973_v26 = vsel %vm3901_vm9, %v3857_v40, %v3937_v8 }
 0x39e   : > { %v3965_v43 = vsel %vm3893_vm10, %v3837_v46, %v3929_v58  ;;  %4009 = vst [vmem:[%s6274_s7 + $0xf0] sm:$0xff] %v3973_v26 }
 0x39f   : > { %4001 = vst [vmem:[%s6274_s7 + $0xb0] sm:$0xff] %v3965_v43 }
 0x3a0   : > { %v3858_v12 = vpop.f32.mrf.mxu3 }
 0x3a1   : > { %v3838_v1 = vpop.f32.mrf.mxu2  ;;  %v3859_v38 = vadd.f32 %v6264_v3, %v3858_v12 }
 0x3a2   : > { %v3839_v60 = vadd.f32 %v6264_v3, %v3838_v1  ;;  %v3786_v49 = vpop.f32.mrf.mxu0 }
 0x3a3   : > { %vm3902_vm11 = vcmp.ge.f32.partialorder %v3859_v38, 0.0  ;;  %v3938_v28 = vmul.f32 0.1, %v3859_v38  ;;  %v3787_v52 = vadd.f32 %v6264_v3, %v3786_v49 }
 0x3a4   : > { %vm3894_vm12 = vcmp.ge.f32.partialorder %v3839_v60, 0.0  ;;  %v3930_v42 = vmul.f32 0.1, %v3839_v60 }
 0x3a5   : > { %v3974_v10 = vsel %vm3902_vm11, %v3859_v38, %v3938_v28  ;;  %vm3873_vm13 = vcmp.ge.f32.partialorder %v3787_v52, 0.0  ;;  %v3909_v35 = vmul.f32 0.1, %v3787_v52 }
 0x3a6   : > { %v3966_v54 = vsel %vm3894_vm12, %v3839_v60, %v3930_v42  ;;  %4010 = vst [vmem:[%s6274_s7 + $0xf8] sm:$0xff] %v3974_v10 }
 0x3a7   : > { %4002 = vst [vmem:[%s6274_s7 + $0xb8] sm:$0xff] %v3966_v54  ;;  %v3945_v41 = vsel %vm3873_vm13, %v3787_v52, %v3909_v35 }
 0x3a8   : > { %3981 = vst [vmem:[%s6274_s7 + $0x10] sm:$0xff] %v3945_v41 }
 0x3aa   : > { %v3788_v16 = vpop.f32.mrf.mxu0 }
 0x3ab   : > { %v3789_v25 = vadd.f32 %v6264_v3, %v3788_v16  ;;  %v3811_v44 = vpop.f32.mrf.mxu1 }
 0x3ac   : > { %v3812_v61 = vadd.f32 %v6264_v3, %v3811_v44 }
 0x3ad   : > { %vm3874_vm14 = vcmp.ge.f32.partialorder %v3789_v25, 0.0  ;;  %v3910_v33 = vmul.f32 0.1, %v3789_v25 }
 0x3ae   : > { %vm3883_vm15 = vcmp.ge.f32.partialorder %v3812_v61, 0.0  ;;  %v3919_v27 = vmul.f32 0.1, %v3812_v61 }
 0x3af   : > { %v3946_v22 = vsel %vm3874_vm14, %v3789_v25, %v3910_v33 }
 0x3b0   : > { %3982 = vst [vmem:[%s6274_s7 + $0x18] sm:$0xff] %v3946_v22  ;;  %v3955_v34 = vsel %vm3883_vm15, %v3812_v61, %v3919_v27 }
 0x3b1   : > { %3991 = vst [vmem:[%s6274_s7 + $0x60] sm:$0xff] %v3955_v34 }
 0x3b3   : > { %v3813_v36 = vpop.f32.mrf.mxu1 }
 0x3b4   : > { %v3814_v50 = vadd.f32 %v6264_v3, %v3813_v36 }
 0x3b6   : > { %vm3884_vm0 = vcmp.ge.f32.partialorder %v3814_v50, 0.0  ;;  %v3920_v15 = vmul.f32 0.1, %v3814_v50 }
 0x3b8   : > { %v3956_v32 = vsel %vm3884_vm0, %v3814_v50, %v3920_v15 }
 0x3b9   : > { %3992 = vst [vmem:[%s6274_s7 + $0x68] sm:$0xff] %v3956_v32 }
 0x3c8   : > { %v3841_v19 = vpop.f32.mrf.mxu2 }
 0x3c9   : > { %v3842_v20 = vadd.f32 %v6264_v3, %v3841_v19 }
 0x3cb   : > { %vm3895_vm1 = vcmp.ge.f32.partialorder %v3842_v20, 0.0  ;;  %v3931_v59 = vmul.f32 0.1, %v3842_v20 }
 0x3cd   : > { %v3967_v5 = vsel %vm3895_vm1, %v3842_v20, %v3931_v59 }
 0x3ce   : > { %4003 = vst [vmem:[%s6274_s7 + $0xc0] sm:$0xff] %v3967_v5 }
 0x3d0   : > { %v3843_v21 = vpop.f32.mrf.mxu2 }
 0x3d1   : > { %v3844_v37 = vadd.f32 %v6264_v3, %v3843_v21  ;;  %v3861_v13 = vpop.f32.mrf.mxu3 }
 0x3d2   : > { %v3862_v47 = vadd.f32 %v6264_v3, %v3861_v13 }
 0x3d3   : > { %vm3896_vm2 = vcmp.ge.f32.partialorder %v3844_v37, 0.0  ;;  %v3932_v18 = vmul.f32 0.1, %v3844_v37 }
 0x3d4   : > { %vm3903_vm3 = vcmp.ge.f32.partialorder %v3862_v47, 0.0  ;;  %v3939_v31 = vmul.f32 0.1, %v3862_v47 }
 0x3d5   : > { %v3968_v57 = vsel %vm3896_vm2, %v3844_v37, %v3932_v18 }
 0x3d6   : > { %4004 = vst [vmem:[%s6274_s7 + $0xc8] sm:$0xff] %v3968_v57  ;;  %v3975_v63 = vsel %vm3903_vm3, %v3862_v47, %v3939_v31 }
 0x3d7   : > { %4011 = vst [vmem:[%s6274_s7 + $0x100] sm:$0xff] %v3975_v63 }
 0x3d9   : > { %v3863_v0 = vpop.f32.mrf.mxu3 }
 0x3da   : > { %v3864_v24 = vadd.f32 %v6264_v3, %v3863_v0 }
 0x3db   : > { %v3791_v39 = vpop.f32.mrf.mxu0 }
 0x3dc   : > { %vm3904_vm4 = vcmp.ge.f32.partialorder %v3864_v24, 0.0  ;;  %v3940_v7 = vmul.f32 0.1, %v3864_v24  ;;  %v3792_v17 = vadd.f32 %v6264_v3, %v3791_v39 }
 0x3de   : > { %v3976_v48 = vsel %vm3904_vm4, %v3864_v24, %v3940_v7  ;;  %vm3875_vm5 = vcmp.ge.f32.partialorder %v3792_v17, 0.0  ;;  %v3911_v11 = vmul.f32 0.1, %v3792_v17 }
 0x3df   : > { %4012 = vst [vmem:[%s6274_s7 + $0x108] sm:$0xff] %v3976_v48 }
 0x3e0   : > { %v3947_v29 = vsel %vm3875_vm5, %v3792_v17, %v3911_v11 }
 0x3e1   : > { %3983 = vst [vmem:[%s6274_s7 + $0x20] sm:$0xff] %v3947_v29 }
 0x3e3   : > { %v3793_v30 = vpop.f32.mrf.mxu0  ;;  %v3816_v56 = vpop.f32.mrf.mxu1 }
 0x3e4   : > { %v3794_v6 = vadd.f32 %v6264_v3, %v3793_v30  ;;  %v3817_v55 = vadd.f32 %v6264_v3, %v3816_v56 }
 0x3e6   : > { %vm3876_vm6 = vcmp.ge.f32.partialorder %v3794_v6, 0.0  ;;  %v3912_v9 = vmul.f32 0.1, %v3794_v6  ;;  %vm3885_vm7 = vcmp.ge.f32.partialorder %v3817_v55, 0.0  ;;  %v3921_v14 = vmul.f32 0.1, %v3817_v55 }
 0x3e8   : > { %v3948_v45 = vsel %vm3876_vm6, %v3794_v6, %v3912_v9  ;;  %v3957_v51 = vsel %vm3885_vm7, %v3817_v55, %v3921_v14 }
 0x3e9   : > { %3984 = vst [vmem:[%s6274_s7 + $0x28] sm:$0xff] %v3948_v45 }
 0x3ea   : > { %3993 = vst [vmem:[%s6274_s7 + $0x70] sm:$0xff] %v3957_v51 }
 0x3eb   : > { %v3818_v62 = vpop.f32.mrf.mxu1 }
 0x3ec   : > { %v3819_v4 = vadd.f32 %v6264_v3, %v3818_v62 }
 0x3ee   : > { %vm3886_vm8 = vcmp.ge.f32.partialorder %v3819_v4, 0.0  ;;  %v3922_v53 = vmul.f32 0.1, %v3819_v4 }
 0x3f0   : > { %v3958_v2 = vsel %vm3886_vm8, %v3819_v4, %v3922_v53 }
 0x3f1   : > { %3994 = vst [vmem:[%s6274_s7 + $0x78] sm:$0xff] %v3958_v2 }
 0x401   : > { %v3846_v23 = vpop.f32.mrf.mxu2 }
 0x402   : > { %v3847_v40 = vadd.f32 %v6264_v3, %v3846_v23 }
 0x404   : > { %vm3897_vm9 = vcmp.ge.f32.partialorder %v3847_v40, 0.0  ;;  %v3933_v46 = vmul.f32 0.1, %v3847_v40 }
 0x406   : > { %v3969_v8 = vsel %vm3897_vm9, %v3847_v40, %v3933_v46 }
 0x407   : > { %4005 = vst [vmem:[%s6274_s7 + $0xd0] sm:$0xff] %v3969_v8 }
 0x409   : > { %v3848_v58 = vpop.f32.mrf.mxu2  ;;  %v3866_v26 = vpop.f32.mrf.mxu3 }
 0x40a   : > { %v3849_v43 = vadd.f32 %v6264_v3, %v3848_v58  ;;  %v3867_v12 = vadd.f32 %v6264_v3, %v3866_v26 }
 0x40c   : > { %vm3898_vm10 = vcmp.ge.f32.partialorder %v3849_v43, 0.0  ;;  %v3934_v1 = vmul.f32 0.1, %v3849_v43  ;;  %vm3905_vm11 = vcmp.ge.f32.partialorder %v3867_v12, 0.0  ;;  %v3941_v38 = vmul.f32 0.1, %v3867_v12 }
 0x40e   : > { %v3970_v60 = vsel %vm3898_vm10, %v3849_v43, %v3934_v1  ;;  %v3977_v49 = vsel %vm3905_vm11, %v3867_v12, %v3941_v38 }
 0x40f   : > { %4006 = vst [vmem:[%s6274_s7 + $0xd8] sm:$0xff] %v3970_v60 }
 0x410   : > { %4013 = vst [vmem:[%s6274_s7 + $0x110] sm:$0xff] %v3977_v49 }
 0x411   : > { %v3868_v28 = vpop.f32.mrf.mxu3 }
 0x412   : > { %v3869_v52 = vadd.f32 %v6264_v3, %v3868_v28  ;;  %v3821_v42 = vpop.f32.mrf.mxu1 }
 0x413   : > { %v3796_v10 = vpop.f32.mrf.mxu0  ;;  %v3822_v35 = vadd.f32 %v6264_v3, %v3821_v42 }
 0x414   : > { %vm3906_vm12 = vcmp.ge.f32.partialorder %v3869_v52, 0.0  ;;  %v3942_v54 = vmul.f32 0.1, %v3869_v52  ;;  %v3797_v41 = vadd.f32 %v6264_v3, %v3796_v10 }
 0x415   : > { %vm3887_vm13 = vcmp.ge.f32.partialorder %v3822_v35, 0.0  ;;  %v3923_v16 = vmul.f32 0.1, %v3822_v35 }
 0x416   : > { %v3978_v25 = vsel %vm3906_vm12, %v3869_v52, %v3942_v54  ;;  %vm3877_vm14 = vcmp.ge.f32.partialorder %v3797_v41, 0.0  ;;  %v3913_v44 = vmul.f32 0.1, %v3797_v41 }
 0x417   : > { %4014 = vst [vmem:[%s6274_s7 + $0x118] sm:$0xff] %v3978_v25  ;;  %v3959_v61 = vsel %vm3887_vm13, %v3822_v35, %v3923_v16 }
 0x418   : > { %v3949_v33 = vsel %vm3877_vm14, %v3797_v41, %v3913_v44  ;;  %3995 = vst [vmem:[%s6274_s7 + $0x80] sm:$0xff] %v3959_v61 }
 0x419   : > { %3985 = vst [vmem:[%s6274_s7 + $0x30] sm:$0xff] %v3949_v33 }
 0x41a   : > { %v3823_v27 = vpop.f32.mrf.mxu1 }
 0x41b   : > { %v3798_v22 = vpop.f32.mrf.mxu0  ;;  %v3824_v34 = vadd.f32 %v6264_v3, %v3823_v27 }
 0x41c   : > { %v3799_v36 = vadd.f32 %v6264_v3, %v3798_v22 }
 0x41d   : > { %vm3888_vm15 = vcmp.ge.f32.partialorder %v3824_v34, 0.0  ;;  %v3924_v50 = vmul.f32 0.1, %v3824_v34 }
 0x41e   : > { %vm3878_vm0 = vcmp.ge.f32.partialorder %v3799_v36, 0.0  ;;  %v3914_v15 = vmul.f32 0.1, %v3799_v36 }
 0x41f   : > { %v3960_v32 = vsel %vm3888_vm15, %v3824_v34, %v3924_v50 }
 0x420   : > { %v3950_v19 = vsel %vm3878_vm0, %v3799_v36, %v3914_v15  ;;  %3996 = vst [vmem:[%s6274_s7 + $0x88] sm:$0xff] %v3960_v32 }
 0x421   : > { %3986 = vst [vmem:[%s6274_s7 + $0x38] sm:$0xff] %v3950_v19 }
 0x422   : > { %4328 = shalt.err (!%p4325_p3)
}
 0x423   : > { %s4373_s28 = smov 128  }
 0x424   : > { %4252 = dma.vmem_to_hbm [thread:$0]  (%p4432_p5), %s4029_s16, 4608, %s4031_s17, %s4016_s19, %s4373_s28, %s4373_s28, %s4365_s29  }
 0x425 PF: > { %p4258_p4 = scmp.ge.s32.totalorder %s4363_s15, 2  ;;  %s4045_s5 = sand.u32 1, %s4351_s12  }
 0x426   : > { %s4046_s6 = scalar_lea.sflag [#allocation4], %s4045_s5 }
 0x427   : > { %p4255_p7 = pnand %p4258_p4, %p4436_p6 }
 0x429   : > { %p4256_p8 = pneg %p4255_p7 }
 0x42b   : > { %4346 = dma.done.wait (%p4256_p8), %s4046_s6, 4608  }
 0x42c   : > { %4348 = vsyncadd (%p4256_p8), %s4046_s6, 4294962688  ;;  %p13_p9 = scmp.ge.s32.totalorder %s4419_s18, 4   ;;  %s6432_s12 = smov %s4355_s13 }
 0x42d   : > { %s6433_s13 = smov %s4359_s14  ;;  %s6434_s14 = smov %s4430_s21 }
 0x42e   : > { %s6435_s15 = smov %s4419_s18  ;;  %15 = sbr.rel (!%p13_p9) target bundleno = 3 (0x3), region = 67 }
 0x433   :  { %4052 = vsyncpa [#allocation4], 1 }
 0x434   :  { %4054 = vsyncpa [#allocation4 + $0x1], 1 }

</bundles_post_ra>
